<compile_context>
chip_gen: v6e
topology: v6e:2x2x1
jax: 0.10.0
libtpu: 0.0.40
codegen_flags: <defaults>
</compile_context>

<pallas_src>
import jax
import jax.numpy as jnp
import numpy as np
from jax.experimental import pallas as pl
from jax.experimental.pallas import tpu as pltpu


# --------------------------- static network geometry ----------------------- #
KSIZE = 5
# conv1: [B,3,32,32] -> conv5x5 (3->6) -> ReLU -> 2x2 maxpool -> [B,6,14,14]
H1 = W1 = 32
C1, O1 = 3, 6
HP1 = WP1 = 14                    # pooled output height / width
HH1 = H1 // 2                     # rows per parity plane (16)
WC1 = W1 * C1                     # 96   merged (w, c) lane width
WPN1 = WP1 * O1                   # 84   merged (ow, o) lane width
# conv2: [B,6,14,14] -> conv5x5 (6->16) -> ReLU -> 2x2 maxpool -> [B,16,5,5]
H2 = W2 = 14
C2, O2 = 6, 16
HP2 = WP2 = 5
HH2 = H2 // 2                     # 7
WC2 = W2 * C2                     # 84
WPN2 = WP2 * O2                   # 80
PW_OFF = 128                      # lane offset of the odd ow-phase weight half
TB_MAX = 128                      # batch rows per grid step


# ----------------------------- Pallas kernels ------------------------------ #

def _conv_pool(x_ref, wt_ref, hp, hhalf, wpn):
    """Fused VALID 5x5 conv + 2x2 max-pool on a parity-row-ordered block.

    x_ref : [2*hhalf, tb, W*C]  rows ordered (h%2, h//2), lanes = (w, c) merged
    wt_ref: [5, W*C, 256]       per-kh Toeplitz weights; lanes [0:wpn] = ow phase 0,
                                lanes [128:128+wpn] = ow phase 1
    returns pooled pre-activation [hp*tb, wpn] (f32), rows ordered (q, b).
    """
    tb = x_ref.shape[1]
    wc = x_ref.shape[2]
    res = None
    for po in range(2):                       # pre-pool row phase: oh = 2q + po
        acc = None
        for kh in range(KSIZE):
            s = po + kh                       # input row: h = 2q + s
            start = (s % 2) * hhalf + s // 2  # contiguous in the parity-ordered rows
            slab = x_ref[start:start + hp].reshape(hp * tb, wc)     # layout-trivial
            d = jnp.dot(slab, wt_ref[kh], preferred_element_type=jnp.float32)
            acc = d if acc is None else acc + d
        res = acc if res is None else jnp.maximum(res, acc)
    # max over the two ow phases packed in the two 128-lane halves (tile-aligned)
    return jnp.maximum(res[:, :wpn], res[:, PW_OFF:PW_OFF + wpn])


def _conv1_kernel(x_ref, wt_ref, b_ref, o_ref):
    """conv1 + bias + ReLU + pool; output stored in conv2's parity-row layout."""
    tb = o_ref.shape[1]
    pooled = _conv_pool(x_ref, wt_ref, HP1, HH1, WPN1)               # [14*tb, 84] f32
    y = jnp.maximum(pooled + b_ref[...], 0.0).astype(o_ref.dtype)
    for q in range(HP1):                                             # even q rows, then odd
        o_ref[(q % 2) * (HP1 // 2) + q // 2] = y[q * tb:(q + 1) * tb, :]


def _conv2_mlp_kernel(x_ref, wt_ref, b_ref, fw1_ref, fb1_ref,
                      fw2_ref, fb2_ref, fw3_ref, fb3_ref, o_ref):
    """conv2 + bias + ReLU + pool fused with fc1+ReLU -> fc2+ReLU -> fc3."""
    tb = o_ref.shape[0]
    pooled = _conv_pool(x_ref, wt_ref, HP2, HH2, WPN2)               # [5*tb, 80] f32
    act = jnp.maximum(pooled + b_ref[...], 0.0).astype(jnp.bfloat16)
    # fc1 over the (h, w, c)-flattened 400-vector == sum over the 5 pooled rows
    h = None
    for q in range(HP2):
        d = jnp.dot(act[q * tb:(q + 1) * tb, :], fw1_ref[q],
                    preferred_element_type=jnp.float32)
        h = d if h is None else h + d
    h = jnp.maximum(h + fb1_ref[...], 0.0).astype(jnp.bfloat16)      # [tb, 128]
    h = jnp.dot(h, fw2_ref[...], preferred_element_type=jnp.float32) + fb2_ref[...]
    h = jnp.maximum(h, 0.0).astype(jnp.bfloat16)                     # [tb, 128]
    out = jnp.dot(h, fw3_ref[...], preferred_element_type=jnp.float32) + fb3_ref[...]
    o_ref[...] = out.astype(o_ref.dtype)


# ----------------------------- pallas_call wrappers ------------------------ #

_COMPILER_PARAMS = pltpu.CompilerParams(
    dimension_semantics=("parallel",),
    vmem_limit_bytes=32 * 1024 * 1024,
)


def _full_spec(shape):
    n = len(shape)
    return pl.BlockSpec(shape, lambda i: (0,) * n)


def conv1_forward(xm, wt, brow, *, tb):
    hrows, bp, wc = xm.shape                      # (32, Bp, 96)
    grid = (bp // tb,)
    return pl.pallas_call(
        _conv1_kernel,
        out_shape=jax.ShapeDtypeStruct((HP1, bp, WPN1), jnp.bfloat16),
        grid=grid,
        in_specs=[
            pl.BlockSpec((hrows, tb, wc), lambda i: (0, i, 0)),
            _full_spec(wt.shape),
            _full_spec(brow.shape),
        ],
        out_specs=pl.BlockSpec((HP1, tb, WPN1), lambda i: (0, i, 0)),
        compiler_params=_COMPILER_PARAMS,
    )(xm, wt, brow)


def conv2_mlp_forward(y1, wt, brow, fw1, fb1, fw2, fb2, fw3, fb3, *, tb):
    hrows, bp, wc = y1.shape                      # (14, Bp, 84)
    grid = (bp // tb,)
    return pl.pallas_call(
        _conv2_mlp_kernel,
        out_shape=jax.ShapeDtypeStruct((bp, 10), jnp.float32),
        grid=grid,
        in_specs=[
            pl.BlockSpec((hrows, tb, wc), lambda i: (0, i, 0)),
            _full_spec(wt.shape), _full_spec(brow.shape),
            _full_spec(fw1.shape), _full_spec(fb1.shape),
            _full_spec(fw2.shape), _full_spec(fb2.shape),
            _full_spec(fw3.shape), _full_spec(fb3.shape),
        ],
        out_specs=pl.BlockSpec((tb, 10), lambda i: (i, 0)),
        compiler_params=_COMPILER_PARAMS,
    )(y1, wt, brow, fw1, fb1, fw2, fb2, fw3, fb3)


# ------------------------------ parameter prep ----------------------------- #

def conv_toeplitz_pool(w_oikk, w_in, *, pool=2, half_off=PW_OFF):
    """PyTorch conv weight [O,C,k,k] -> per-kh, pooled-ow-phase Toeplitz weights.

    Returns [k, w_in*C, 2*half_off] with
      out[kh, w*C + c, pw*half_off + p*O + o] = w_oikk[o, c, kh, w - (pool*p + pw)]
    (zero when the kw offset is out of range), so a row-slab
    X[(q,b), w*C+c] = x[b, h, w, c] times out[kh] accumulates kernel-row kh of the
    conv for output columns ow = pool*p + pw.
    """
    O, C, k, _ = w_oikk.shape
    wo = w_in - k + 1
    wp = wo // pool
    assert wp * O <= half_off
    wk = jnp.transpose(w_oikk, (2, 3, 1, 0)).astype(jnp.float32)     # [kh, kw, C, O]
    w_idx = np.arange(w_in)[:, None, None]
    p_idx = np.arange(wp)[None, :, None]
    kw_idx = np.arange(k)[None, None, :]
    halves = []
    for pw in range(pool):
        sel = (w_idx == pool * p_idx + pw + kw_idx).astype(np.float32)   # [w_in, wp, k]
        m = jnp.einsum("wpk,hkco->hwcpo", jnp.asarray(sel), wk)
        m = m.reshape(k, w_in * C, wp * O)
        halves.append(jnp.pad(m, ((0, 0), (0, 0), (0, half_off - wp * O))))
    return jnp.concatenate(halves, axis=-1)


def fc1_rows_chw_to_hwc(fw1_in_out, C=16, H=5, W=5):
    """Permute fc1 rows from PyTorch's (c,h,w) flatten order to our (h,w,c) order."""
    m = np.arange(C * H * W)
    h = m // (W * C)
    w = (m % (W * C)) // C
    c = m % C
    return fw1_in_out[c * (H * W) + h * W + w, :]


def init_torch_params(key):
    """PyTorch-layout params with uniform(-1/sqrt(fan_in), 1/sqrt(fan_in)) init."""
    keys = jax.random.split(key, 10)

    def unif(k, shape, fan_in):
        bound = 1.0 / jnp.sqrt(jnp.float32(fan_in))
        return jax.random.uniform(k, shape, jnp.float32, -bound, bound)

    return {
        "conv1_w": unif(keys[0], (6, 3, 5, 5), 3 * 5 * 5),
        "conv1_b": unif(keys[1], (6,), 3 * 5 * 5),
        "conv2_w": unif(keys[2], (16, 6, 5, 5), 6 * 5 * 5),
        "conv2_b": unif(keys[3], (16,), 6 * 5 * 5),
        "fc1_w": unif(keys[4], (120, 400), 400), "fc1_b": unif(keys[5], (120,), 400),
        "fc2_w": unif(keys[6], (84, 120), 120), "fc2_b": unif(keys[7], (84,), 120),
        "fc3_w": unif(keys[8], (10, 84), 84),   "fc3_b": unif(keys[9], (10,), 84),
    }


def prepare_params(tp):
    """Convert PyTorch-layout params to kernel-friendly bf16/padded layouts."""
    fw1 = fc1_rows_chw_to_hwc(tp["fc1_w"].T)                         # [400, 120], (h,w,c) rows
    return {
        "wt1": conv_toeplitz_pool(tp["conv1_w"], W1).astype(jnp.bfloat16),   # [5, 96, 256]
        "b1row": jnp.tile(tp["conv1_b"], WP1).reshape(1, WPN1).astype(jnp.float32),
        "wt2": conv_toeplitz_pool(tp["conv2_w"], W2).astype(jnp.bfloat16),   # [5, 84, 256]
        "b2row": jnp.tile(tp["conv2_b"], WP2).reshape(1, WPN2).astype(jnp.float32),
        # MLP weights [in, out], hidden dims zero-padded to 128 lanes.
        "fw1": jnp.pad(fw1, ((0, 0), (0, 8))).reshape(HP2, WPN2, 128).astype(jnp.bfloat16),
        "fb1": jnp.pad(tp["fc1_b"], (0, 8)).reshape(1, 128).astype(jnp.float32),
        "fw2": jnp.pad(tp["fc2_w"].T, ((0, 8), (0, 44))).astype(jnp.bfloat16),   # [128,128]
        "fb2": jnp.pad(tp["fc2_b"], (0, 44)).reshape(1, 128).astype(jnp.float32),
        "fw3": jnp.pad(tp["fc3_w"].T, ((0, 44), (0, 0))).astype(jnp.bfloat16),   # [128, 10]
        "fb3": tp["fc3_b"].reshape(1, 10).astype(jnp.float32),
    }


# ------------------------------ forward pass ------------------------------- #

def _round_up(v, m):
    return -(-v // m) * m


def _pick_batch_tile(b):
    tb = min(TB_MAX, _round_up(b, 8))
    # >= 2 grid steps when practical so v7x's 2nd TensorCore is used.
    if b >= 16 and _round_up(b, tb) // tb < 2:
        tb = max(8, _round_up(-(-b // 2), 8))
    return tb, _round_up(b, tb)


def net_forward(x_nchw, params):
    b = x_nchw.shape[0]
    tb, bp = _pick_batch_tile(b)
    x = x_nchw.astype(jnp.float32)
    if bp != b:
        x = jnp.pad(x, ((0, bp - b), (0, 0), (0, 0), (0, 0)))

    # NCHW -> [H, B, W*C] with rows reordered (even h first, then odd h), bf16 DMA path.
    xm = jnp.transpose(x, (2, 0, 3, 1)).reshape(H1, bp, WC1)
    perm = np.concatenate([np.arange(0, H1, 2), np.arange(1, H1, 2)])
    xm = xm[perm].astype(jnp.bfloat16)                               # [32, Bp, 96]

    # conv1 + ReLU + pool (output already in conv2's parity-ordered row layout).
    y1 = conv1_forward(xm, params["wt1"], params["b1row"], tb=tb)    # [14, Bp, 84] bf16

    # conv2 + ReLU + pool + fc1/fc2/fc3, all in one kernel.
    out = conv2_mlp_forward(y1, params["wt2"], params["b2row"],
                            params["fw1"], params["fb1"],
                            params["fw2"], params["fb2"],
                            params["fw3"], params["fb3"], tb=tb)     # [Bp, 10] f32
    return out[:b]


# Pure-JAX reference (PyTorch-layout params) for a correctness sanity check.
def net_forward_ref(x_nchw, tp):
    x = x_nchw.astype(jnp.float32)

    def conv(z, w, b):
        return jax.lax.conv(z, w, (1, 1), "VALID") + b[None, :, None, None]

    def pool(z):
        return jax.lax.reduce_window(z, -jnp.inf, jax.lax.max,
                                     (1, 1, 2, 2), (1, 1, 2, 2), "VALID")

    y = pool(jax.nn.relu(conv(x, tp["conv1_w"], tp["conv1_b"])))
    y = pool(jax.nn.relu(conv(y, tp["conv2_w"], tp["conv2_b"])))
    y = y.reshape(y.shape[0], -1)                     # NCHW flatten (c,h,w)
    y = jax.nn.relu(y @ tp["fc1_w"].T + tp["fc1_b"])
    y = jax.nn.relu(y @ tp["fc2_w"].T + tp["fc2_b"])
    return y @ tp["fc3_w"].T + tp["fc3_b"]


if __name__ == "__main__":
    key = jax.random.PRNGKey(0)
    k_x, k_p = jax.random.split(key)

    # fc1 (16*5*5 inputs) implies 32x32 spatial input, 3 channels.
    x = jax.random.normal(k_x, (2, 3, 32, 32), dtype=jnp.float32)
    torch_params = init_torch_params(k_p)
    params = prepare_params(torch_params)

    out = jax.block_until_ready(jax.jit(net_forward)(x, params))
    assert out.shape == (2, 10), out.shape

    ref = jax.block_until_ready(jax.jit(net_forward_ref)(x, torch_params))
    max_err = float(jnp.max(jnp.abs(out - ref)))
    assert bool(jnp.allclose(out, ref, atol=1e-1, rtol=1e-1)), max_err

    print("KERNEL_OK")
</pallas_src>

<mosaic_0001>
module attributes {stable_mosaic.version = 11 : i64} {
  func.func @_conv1_kernel(%arg0: i32, %arg1: memref<32x8x96xbf16, #tpu.memory_space<vmem>>, %arg2: memref<5x96x256xbf16, #tpu.memory_space<vmem>>, %arg3: memref<1x84xf32, #tpu.memory_space<vmem>>, %arg4: memref<14x8x84xbf16, #tpu.memory_space<vmem>>) attributes {dimension_semantics = [#tpu.dimension_semantics<parallel>], iteration_bounds = array<i64: 1>, scalar_prefetch = 0 : i64, scratch_operands = 0 : i64, tpu.core_type = #tpu.core_type<tc>, window_params = [{transform_indices = @transform_0, window_bounds = array<i64: 32, 8, 96>}, {pipeline_mode = #tpu.pipeline_mode<synchronous>, transform_indices = @transform_1, window_bounds = array<i64: 5, 96, 256>}, {pipeline_mode = #tpu.pipeline_mode<synchronous>, transform_indices = @transform_2, window_bounds = array<i64: 1, 84>}, {transform_indices = @transform_3, window_bounds = array<i64: 14, 8, 84>}]} {
    %c0 = arith.constant 0 : index
    %c0_0 = arith.constant 0 : index
    %c0_1 = arith.constant 0 : index
    %0 = vector.load %arg1[%c0, %c0_0, %c0_1] : memref<32x8x96xbf16, #tpu.memory_space<vmem>>, vector<14x8x96xbf16>
    %1 = vector.shape_cast %0 : vector<14x8x96xbf16> to vector<112x96xbf16>
    %c0_2 = arith.constant 0 : index
    %c0_3 = arith.constant 0 : index
    %c0_4 = arith.constant 0 : index
    %2 = vector.load %arg2[%c0_2, %c0_3, %c0_4] : memref<5x96x256xbf16, #tpu.memory_space<vmem>>, vector<1x96x256xbf16>
    %3 = vector.shape_cast %2 : vector<1x96x256xbf16> to vector<96x256xbf16>
    %cst = arith.constant dense<0.000000e+00> : vector<112x256xf32>
    %4 = tpu.matmul %1, %3, %cst {dimension_numbers = #tpu.dot_dimension_numbers<[1], [0], [0], [1], [0, 0, 1, 1], [], []>} : vector<112x96xbf16>, vector<96x256xbf16>, vector<112x256xf32> -> vector<112x256xf32>
    %c16 = arith.constant 16 : index
    %c0_5 = arith.constant 0 : index
    %c0_6 = arith.constant 0 : index
    %5 = vector.load %arg1[%c16, %c0_5, %c0_6] : memref<32x8x96xbf16, #tpu.memory_space<vmem>>, vector<14x8x96xbf16>
    %6 = vector.shape_cast %5 : vector<14x8x96xbf16> to vector<112x96xbf16>
    %c1 = arith.constant 1 : index
    %c0_7 = arith.constant 0 : index
    %c0_8 = arith.constant 0 : index
    %7 = vector.load %arg2[%c1, %c0_7, %c0_8] : memref<5x96x256xbf16, #tpu.memory_space<vmem>>, vector<1x96x256xbf16>
    %8 = vector.shape_cast %7 : vector<1x96x256xbf16> to vector<96x256xbf16>
    %cst_9 = arith.constant dense<0.000000e+00> : vector<112x256xf32>
    %9 = tpu.matmul %6, %8, %cst_9 {dimension_numbers = #tpu.dot_dimension_numbers<[1], [0], [0], [1], [0, 0, 1, 1], [], []>} : vector<112x96xbf16>, vector<96x256xbf16>, vector<112x256xf32> -> vector<112x256xf32>
    %10 = arith.addf %4, %9 : vector<112x256xf32>
    %c1_10 = arith.constant 1 : index
    %c0_11 = arith.constant 0 : index
    %c0_12 = arith.constant 0 : index
    %11 = vector.load %arg1[%c1_10, %c0_11, %c0_12] : memref<32x8x96xbf16, #tpu.memory_space<vmem>>, vector<14x8x96xbf16>
    %12 = vector.shape_cast %11 : vector<14x8x96xbf16> to vector<112x96xbf16>
    %c2 = arith.constant 2 : index
    %c0_13 = arith.constant 0 : index
    %c0_14 = arith.constant 0 : index
    %13 = vector.load %arg2[%c2, %c0_13, %c0_14] : memref<5x96x256xbf16, #tpu.memory_space<vmem>>, vector<1x96x256xbf16>
    %14 = vector.shape_cast %13 : vector<1x96x256xbf16> to vector<96x256xbf16>
    %cst_15 = arith.constant dense<0.000000e+00> : vector<112x256xf32>
    %15 = tpu.matmul %12, %14, %cst_15 {dimension_numbers = #tpu.dot_dimension_numbers<[1], [0], [0], [1], [0, 0, 1, 1], [], []>} : vector<112x96xbf16>, vector<96x256xbf16>, vector<112x256xf32> -> vector<112x256xf32>
    %16 = arith.addf %10, %15 : vector<112x256xf32>
    %c17 = arith.constant 17 : index
    %c0_16 = arith.constant 0 : index
    %c0_17 = arith.constant 0 : index
    %17 = vector.load %arg1[%c17, %c0_16, %c0_17] : memref<32x8x96xbf16, #tpu.memory_space<vmem>>, vector<14x8x96xbf16>
    %18 = vector.shape_cast %17 : vector<14x8x96xbf16> to vector<112x96xbf16>
    %c3 = arith.constant 3 : index
    %c0_18 = arith.constant 0 : index
    %c0_19 = arith.constant 0 : index
    %19 = vector.load %arg2[%c3, %c0_18, %c0_19] : memref<5x96x256xbf16, #tpu.memory_space<vmem>>, vector<1x96x256xbf16>
    %20 = vector.shape_cast %19 : vector<1x96x256xbf16> to vector<96x256xbf16>
    %cst_20 = arith.constant dense<0.000000e+00> : vector<112x256xf32>
    %21 = tpu.matmul %18, %20, %cst_20 {dimension_numbers = #tpu.dot_dimension_numbers<[1], [0], [0], [1], [0, 0, 1, 1], [], []>} : vector<112x96xbf16>, vector<96x256xbf16>, vector<112x256xf32> -> vector<112x256xf32>
    %22 = arith.addf %16, %21 : vector<112x256xf32>
    %c2_21 = arith.constant 2 : index
    %c0_22 = arith.constant 0 : index
    %c0_23 = arith.constant 0 : index
    %23 = vector.load %arg1[%c2_21, %c0_22, %c0_23] : memref<32x8x96xbf16, #tpu.memory_space<vmem>>, vector<14x8x96xbf16>
    %24 = vector.shape_cast %23 : vector<14x8x96xbf16> to vector<112x96xbf16>
    %c4 = arith.constant 4 : index
    %c0_24 = arith.constant 0 : index
    %c0_25 = arith.constant 0 : index
    %25 = vector.load %arg2[%c4, %c0_24, %c0_25] : memref<5x96x256xbf16, #tpu.memory_space<vmem>>, vector<1x96x256xbf16>
    %26 = vector.shape_cast %25 : vector<1x96x256xbf16> to vector<96x256xbf16>
    %cst_26 = arith.constant dense<0.000000e+00> : vector<112x256xf32>
    %27 = tpu.matmul %24, %26, %cst_26 {dimension_numbers = #tpu.dot_dimension_numbers<[1], [0], [0], [1], [0, 0, 1, 1], [], []>} : vector<112x96xbf16>, vector<96x256xbf16>, vector<112x256xf32> -> vector<112x256xf32>
    %28 = arith.addf %22, %27 : vector<112x256xf32>
    %c16_27 = arith.constant 16 : index
    %c0_28 = arith.constant 0 : index
    %c0_29 = arith.constant 0 : index
    %29 = vector.load %arg1[%c16_27, %c0_28, %c0_29] : memref<32x8x96xbf16, #tpu.memory_space<vmem>>, vector<14x8x96xbf16>
    %30 = vector.shape_cast %29 : vector<14x8x96xbf16> to vector<112x96xbf16>
    %c0_30 = arith.constant 0 : index
    %c0_31 = arith.constant 0 : index
    %c0_32 = arith.constant 0 : index
    %31 = vector.load %arg2[%c0_30, %c0_31, %c0_32] : memref<5x96x256xbf16, #tpu.memory_space<vmem>>, vector<1x96x256xbf16>
    %32 = vector.shape_cast %31 : vector<1x96x256xbf16> to vector<96x256xbf16>
    %cst_33 = arith.constant dense<0.000000e+00> : vector<112x256xf32>
    %33 = tpu.matmul %30, %32, %cst_33 {dimension_numbers = #tpu.dot_dimension_numbers<[1], [0], [0], [1], [0, 0, 1, 1], [], []>} : vector<112x96xbf16>, vector<96x256xbf16>, vector<112x256xf32> -> vector<112x256xf32>
    %c1_34 = arith.constant 1 : index
    %c0_35 = arith.constant 0 : index
    %c0_36 = arith.constant 0 : index
    %34 = vector.load %arg1[%c1_34, %c0_35, %c0_36] : memref<32x8x96xbf16, #tpu.memory_space<vmem>>, vector<14x8x96xbf16>
    %35 = vector.shape_cast %34 : vector<14x8x96xbf16> to vector<112x96xbf16>
    %c1_37 = arith.constant 1 : index
    %c0_38 = arith.constant 0 : index
    %c0_39 = arith.constant 0 : index
    %36 = vector.load %arg2[%c1_37, %c0_38, %c0_39] : memref<5x96x256xbf16, #tpu.memory_space<vmem>>, vector<1x96x256xbf16>
    %37 = vector.shape_cast %36 : vector<1x96x256xbf16> to vector<96x256xbf16>
    %cst_40 = arith.constant dense<0.000000e+00> : vector<112x256xf32>
    %38 = tpu.matmul %35, %37, %cst_40 {dimension_numbers = #tpu.dot_dimension_numbers<[1], [0], [0], [1], [0, 0, 1, 1], [], []>} : vector<112x96xbf16>, vector<96x256xbf16>, vector<112x256xf32> -> vector<112x256xf32>
    %39 = arith.addf %33, %38 : vector<112x256xf32>
    %c17_41 = arith.constant 17 : index
    %c0_42 = arith.constant 0 : index
    %c0_43 = arith.constant 0 : index
    %40 = vector.load %arg1[%c17_41, %c0_42, %c0_43] : memref<32x8x96xbf16, #tpu.memory_space<vmem>>, vector<14x8x96xbf16>
    %41 = vector.shape_cast %40 : vector<14x8x96xbf16> to vector<112x96xbf16>
    %c2_44 = arith.constant 2 : index
    %c0_45 = arith.constant 0 : index
    %c0_46 = arith.constant 0 : index
    %42 = vector.load %arg2[%c2_44, %c0_45, %c0_46] : memref<5x96x256xbf16, #tpu.memory_space<vmem>>, vector<1x96x256xbf16>
    %43 = vector.shape_cast %42 : vector<1x96x256xbf16> to vector<96x256xbf16>
    %cst_47 = arith.constant dense<0.000000e+00> : vector<112x256xf32>
    %44 = tpu.matmul %41, %43, %cst_47 {dimension_numbers = #tpu.dot_dimension_numbers<[1], [0], [0], [1], [0, 0, 1, 1], [], []>} : vector<112x96xbf16>, vector<96x256xbf16>, vector<112x256xf32> -> vector<112x256xf32>
    %45 = arith.addf %39, %44 : vector<112x256xf32>
    %c2_48 = arith.constant 2 : index
    %c0_49 = arith.constant 0 : index
    %c0_50 = arith.constant 0 : index
    %46 = vector.load %arg1[%c2_48, %c0_49, %c0_50] : memref<32x8x96xbf16, #tpu.memory_space<vmem>>, vector<14x8x96xbf16>
    %47 = vector.shape_cast %46 : vector<14x8x96xbf16> to vector<112x96xbf16>
    %c3_51 = arith.constant 3 : index
    %c0_52 = arith.constant 0 : index
    %c0_53 = arith.constant 0 : index
    %48 = vector.load %arg2[%c3_51, %c0_52, %c0_53] : memref<5x96x256xbf16, #tpu.memory_space<vmem>>, vector<1x96x256xbf16>
    %49 = vector.shape_cast %48 : vector<1x96x256xbf16> to vector<96x256xbf16>
    %cst_54 = arith.constant dense<0.000000e+00> : vector<112x256xf32>
    %50 = tpu.matmul %47, %49, %cst_54 {dimension_numbers = #tpu.dot_dimension_numbers<[1], [0], [0], [1], [0, 0, 1, 1], [], []>} : vector<112x96xbf16>, vector<96x256xbf16>, vector<112x256xf32> -> vector<112x256xf32>
    %51 = arith.addf %45, %50 : vector<112x256xf32>
    %c18 = arith.constant 18 : index
    %c0_55 = arith.constant 0 : index
    %c0_56 = arith.constant 0 : index
    %52 = vector.load %arg1[%c18, %c0_55, %c0_56] : memref<32x8x96xbf16, #tpu.memory_space<vmem>>, vector<14x8x96xbf16>
    %53 = vector.shape_cast %52 : vector<14x8x96xbf16> to vector<112x96xbf16>
    %c4_57 = arith.constant 4 : index
    %c0_58 = arith.constant 0 : index
    %c0_59 = arith.constant 0 : index
    %54 = vector.load %arg2[%c4_57, %c0_58, %c0_59] : memref<5x96x256xbf16, #tpu.memory_space<vmem>>, vector<1x96x256xbf16>
    %55 = vector.shape_cast %54 : vector<1x96x256xbf16> to vector<96x256xbf16>
    %cst_60 = arith.constant dense<0.000000e+00> : vector<112x256xf32>
    %56 = tpu.matmul %53, %55, %cst_60 {dimension_numbers = #tpu.dot_dimension_numbers<[1], [0], [0], [1], [0, 0, 1, 1], [], []>} : vector<112x96xbf16>, vector<96x256xbf16>, vector<112x256xf32> -> vector<112x256xf32>
    %57 = arith.addf %51, %56 : vector<112x256xf32>
    %58 = arith.maximumf %28, %57 : vector<112x256xf32>
    %59 = vector.extract_strided_slice %58 {offsets = [0, 0], sizes = [112, 84], strides = [1, 1]} : vector<112x256xf32> to vector<112x84xf32>
    %60 = vector.extract_strided_slice %58 {offsets = [0, 128], sizes = [112, 84], strides = [1, 1]} : vector<112x256xf32> to vector<112x84xf32>
    %61 = arith.maximumf %59, %60 : vector<112x84xf32>
    %c0_61 = arith.constant 0 : index
    %c0_62 = arith.constant 0 : index
    %62 = vector.load %arg3[%c0_61, %c0_62] : memref<1x84xf32, #tpu.memory_space<vmem>>, vector<1x84xf32>
    %63 = vector.broadcast %62 : vector<1x84xf32> to vector<112x84xf32>
    %64 = arith.addf %61, %63 : vector<112x84xf32>
    %cst_63 = arith.constant 0.000000e+00 : f32
    %65 = vector.broadcast %cst_63 : f32 to vector<112x84xf32>
    %66 = arith.maximumf %64, %65 : vector<112x84xf32>
    %67 = arith.truncf %66 : vector<112x84xf32> to vector<112x84xbf16>
    %68 = vector.extract_strided_slice %67 {offsets = [0, 0], sizes = [8, 84], strides = [1, 1]} : vector<112x84xbf16> to vector<8x84xbf16>
    %c0_64 = arith.constant 0 : index
    %c0_65 = arith.constant 0 : index
    %c0_66 = arith.constant 0 : index
    %69 = vector.load %arg4[%c0_64, %c0_65, %c0_66] : memref<14x8x84xbf16, #tpu.memory_space<vmem>>, vector<1x8x84xbf16>
    %70 = vector.shape_cast %69 : vector<1x8x84xbf16> to vector<8x84xbf16>
    %71 = vector.shape_cast %68 : vector<8x84xbf16> to vector<1x8x84xbf16>
    tpu.vector_store %arg4[%c0_64, %c0_65, %c0_66], %71 {strides = array<i32>} : memref<14x8x84xbf16, #tpu.memory_space<vmem>>, vector<1x8x84xbf16>,
    %72 = vector.extract_strided_slice %67 {offsets = [8, 0], sizes = [8, 84], strides = [1, 1]} : vector<112x84xbf16> to vector<8x84xbf16>
    %c7 = arith.constant 7 : index
    %c0_67 = arith.constant 0 : index
    %c0_68 = arith.constant 0 : index
    %73 = vector.load %arg4[%c7, %c0_67, %c0_68] : memref<14x8x84xbf16, #tpu.memory_space<vmem>>, vector<1x8x84xbf16>
    %74 = vector.shape_cast %73 : vector<1x8x84xbf16> to vector<8x84xbf16>
    %75 = vector.shape_cast %72 : vector<8x84xbf16> to vector<1x8x84xbf16>
    tpu.vector_store %arg4[%c7, %c0_67, %c0_68], %75 {strides = array<i32>} : memref<14x8x84xbf16, #tpu.memory_space<vmem>>, vector<1x8x84xbf16>,
    %76 = vector.extract_strided_slice %67 {offsets = [16, 0], sizes = [8, 84], strides = [1, 1]} : vector<112x84xbf16> to vector<8x84xbf16>
    %c1_69 = arith.constant 1 : index
    %c0_70 = arith.constant 0 : index
    %c0_71 = arith.constant 0 : index
    %77 = vector.load %arg4[%c1_69, %c0_70, %c0_71] : memref<14x8x84xbf16, #tpu.memory_space<vmem>>, vector<1x8x84xbf16>
    %78 = vector.shape_cast %77 : vector<1x8x84xbf16> to vector<8x84xbf16>
    %79 = vector.shape_cast %76 : vector<8x84xbf16> to vector<1x8x84xbf16>
    tpu.vector_store %arg4[%c1_69, %c0_70, %c0_71], %79 {strides = array<i32>} : memref<14x8x84xbf16, #tpu.memory_space<vmem>>, vector<1x8x84xbf16>,
    %80 = vector.extract_strided_slice %67 {offsets = [24, 0], sizes = [8, 84], strides = [1, 1]} : vector<112x84xbf16> to vector<8x84xbf16>
    %c8 = arith.constant 8 : index
    %c0_72 = arith.constant 0 : index
    %c0_73 = arith.constant 0 : index
    %81 = vector.load %arg4[%c8, %c0_72, %c0_73] : memref<14x8x84xbf16, #tpu.memory_space<vmem>>, vector<1x8x84xbf16>
    %82 = vector.shape_cast %81 : vector<1x8x84xbf16> to vector<8x84xbf16>
    %83 = vector.shape_cast %80 : vector<8x84xbf16> to vector<1x8x84xbf16>
    tpu.vector_store %arg4[%c8, %c0_72, %c0_73], %83 {strides = array<i32>} : memref<14x8x84xbf16, #tpu.memory_space<vmem>>, vector<1x8x84xbf16>,
    %84 = vector.extract_strided_slice %67 {offsets = [32, 0], sizes = [8, 84], strides = [1, 1]} : vector<112x84xbf16> to vector<8x84xbf16>
    %c2_74 = arith.constant 2 : index
    %c0_75 = arith.constant 0 : index
    %c0_76 = arith.constant 0 : index
    %85 = vector.load %arg4[%c2_74, %c0_75, %c0_76] : memref<14x8x84xbf16, #tpu.memory_space<vmem>>, vector<1x8x84xbf16>
    %86 = vector.shape_cast %85 : vector<1x8x84xbf16> to vector<8x84xbf16>
    %87 = vector.shape_cast %84 : vector<8x84xbf16> to vector<1x8x84xbf16>
    tpu.vector_store %arg4[%c2_74, %c0_75, %c0_76], %87 {strides = array<i32>} : memref<14x8x84xbf16, #tpu.memory_space<vmem>>, vector<1x8x84xbf16>,
    %88 = vector.extract_strided_slice %67 {offsets = [40, 0], sizes = [8, 84], strides = [1, 1]} : vector<112x84xbf16> to vector<8x84xbf16>
    %c9 = arith.constant 9 : index
    %c0_77 = arith.constant 0 : index
    %c0_78 = arith.constant 0 : index
    %89 = vector.load %arg4[%c9, %c0_77, %c0_78] : memref<14x8x84xbf16, #tpu.memory_space<vmem>>, vector<1x8x84xbf16>
    %90 = vector.shape_cast %89 : vector<1x8x84xbf16> to vector<8x84xbf16>
    %91 = vector.shape_cast %88 : vector<8x84xbf16> to vector<1x8x84xbf16>
    tpu.vector_store %arg4[%c9, %c0_77, %c0_78], %91 {strides = array<i32>} : memref<14x8x84xbf16, #tpu.memory_space<vmem>>, vector<1x8x84xbf16>,
    %92 = vector.extract_strided_slice %67 {offsets = [48, 0], sizes = [8, 84], strides = [1, 1]} : vector<112x84xbf16> to vector<8x84xbf16>
    %c3_79 = arith.constant 3 : index
    %c0_80 = arith.constant 0 : index
    %c0_81 = arith.constant 0 : index
    %93 = vector.load %arg4[%c3_79, %c0_80, %c0_81] : memref<14x8x84xbf16, #tpu.memory_space<vmem>>, vector<1x8x84xbf16>
    %94 = vector.shape_cast %93 : vector<1x8x84xbf16> to vector<8x84xbf16>
    %95 = vector.shape_cast %92 : vector<8x84xbf16> to vector<1x8x84xbf16>
    tpu.vector_store %arg4[%c3_79, %c0_80, %c0_81], %95 {strides = array<i32>} : memref<14x8x84xbf16, #tpu.memory_space<vmem>>, vector<1x8x84xbf16>,
    %96 = vector.extract_strided_slice %67 {offsets = [56, 0], sizes = [8, 84], strides = [1, 1]} : vector<112x84xbf16> to vector<8x84xbf16>
    %c10 = arith.constant 10 : index
    %c0_82 = arith.constant 0 : index
    %c0_83 = arith.constant 0 : index
    %97 = vector.load %arg4[%c10, %c0_82, %c0_83] : memref<14x8x84xbf16, #tpu.memory_space<vmem>>, vector<1x8x84xbf16>
    %98 = vector.shape_cast %97 : vector<1x8x84xbf16> to vector<8x84xbf16>
    %99 = vector.shape_cast %96 : vector<8x84xbf16> to vector<1x8x84xbf16>
    tpu.vector_store %arg4[%c10, %c0_82, %c0_83], %99 {strides = array<i32>} : memref<14x8x84xbf16, #tpu.memory_space<vmem>>, vector<1x8x84xbf16>,
    %100 = vector.extract_strided_slice %67 {offsets = [64, 0], sizes = [8, 84], strides = [1, 1]} : vector<112x84xbf16> to vector<8x84xbf16>
    %c4_84 = arith.constant 4 : index
    %c0_85 = arith.constant 0 : index
    %c0_86 = arith.constant 0 : index
    %101 = vector.load %arg4[%c4_84, %c0_85, %c0_86] : memref<14x8x84xbf16, #tpu.memory_space<vmem>>, vector<1x8x84xbf16>
    %102 = vector.shape_cast %101 : vector<1x8x84xbf16> to vector<8x84xbf16>
    %103 = vector.shape_cast %100 : vector<8x84xbf16> to vector<1x8x84xbf16>
    tpu.vector_store %arg4[%c4_84, %c0_85, %c0_86], %103 {strides = array<i32>} : memref<14x8x84xbf16, #tpu.memory_space<vmem>>, vector<1x8x84xbf16>,
    %104 = vector.extract_strided_slice %67 {offsets = [72, 0], sizes = [8, 84], strides = [1, 1]} : vector<112x84xbf16> to vector<8x84xbf16>
    %c11 = arith.constant 11 : index
    %c0_87 = arith.constant 0 : index
    %c0_88 = arith.constant 0 : index
    %105 = vector.load %arg4[%c11, %c0_87, %c0_88] : memref<14x8x84xbf16, #tpu.memory_space<vmem>>, vector<1x8x84xbf16>
    %106 = vector.shape_cast %105 : vector<1x8x84xbf16> to vector<8x84xbf16>
    %107 = vector.shape_cast %104 : vector<8x84xbf16> to vector<1x8x84xbf16>
    tpu.vector_store %arg4[%c11, %c0_87, %c0_88], %107 {strides = array<i32>} : memref<14x8x84xbf16, #tpu.memory_space<vmem>>, vector<1x8x84xbf16>,
    %108 = vector.extract_strided_slice %67 {offsets = [80, 0], sizes = [8, 84], strides = [1, 1]} : vector<112x84xbf16> to vector<8x84xbf16>
    %c5 = arith.constant 5 : index
    %c0_89 = arith.constant 0 : index
    %c0_90 = arith.constant 0 : index
    %109 = vector.load %arg4[%c5, %c0_89, %c0_90] : memref<14x8x84xbf16, #tpu.memory_space<vmem>>, vector<1x8x84xbf16>
    %110 = vector.shape_cast %109 : vector<1x8x84xbf16> to vector<8x84xbf16>
    %111 = vector.shape_cast %108 : vector<8x84xbf16> to vector<1x8x84xbf16>
    tpu.vector_store %arg4[%c5, %c0_89, %c0_90], %111 {strides = array<i32>} : memref<14x8x84xbf16, #tpu.memory_space<vmem>>, vector<1x8x84xbf16>,
    %112 = vector.extract_strided_slice %67 {offsets = [88, 0], sizes = [8, 84], strides = [1, 1]} : vector<112x84xbf16> to vector<8x84xbf16>
    %c12 = arith.constant 12 : index
    %c0_91 = arith.constant 0 : index
    %c0_92 = arith.constant 0 : index
    %113 = vector.load %arg4[%c12, %c0_91, %c0_92] : memref<14x8x84xbf16, #tpu.memory_space<vmem>>, vector<1x8x84xbf16>
    %114 = vector.shape_cast %113 : vector<1x8x84xbf16> to vector<8x84xbf16>
    %115 = vector.shape_cast %112 : vector<8x84xbf16> to vector<1x8x84xbf16>
    tpu.vector_store %arg4[%c12, %c0_91, %c0_92], %115 {strides = array<i32>} : memref<14x8x84xbf16, #tpu.memory_space<vmem>>, vector<1x8x84xbf16>,
    %116 = vector.extract_strided_slice %67 {offsets = [96, 0], sizes = [8, 84], strides = [1, 1]} : vector<112x84xbf16> to vector<8x84xbf16>
    %c6 = arith.constant 6 : index
    %c0_93 = arith.constant 0 : index
    %c0_94 = arith.constant 0 : index
    %117 = vector.load %arg4[%c6, %c0_93, %c0_94] : memref<14x8x84xbf16, #tpu.memory_space<vmem>>, vector<1x8x84xbf16>
    %118 = vector.shape_cast %117 : vector<1x8x84xbf16> to vector<8x84xbf16>
    %119 = vector.shape_cast %116 : vector<8x84xbf16> to vector<1x8x84xbf16>
    tpu.vector_store %arg4[%c6, %c0_93, %c0_94], %119 {strides = array<i32>} : memref<14x8x84xbf16, #tpu.memory_space<vmem>>, vector<1x8x84xbf16>,
    %120 = vector.extract_strided_slice %67 {offsets = [104, 0], sizes = [8, 84], strides = [1, 1]} : vector<112x84xbf16> to vector<8x84xbf16>
    %c13 = arith.constant 13 : index
    %c0_95 = arith.constant 0 : index
    %c0_96 = arith.constant 0 : index
    %121 = vector.load %arg4[%c13, %c0_95, %c0_96] : memref<14x8x84xbf16, #tpu.memory_space<vmem>>, vector<1x8x84xbf16>
    %122 = vector.shape_cast %121 : vector<1x8x84xbf16> to vector<8x84xbf16>
    %123 = vector.shape_cast %120 : vector<8x84xbf16> to vector<1x8x84xbf16>
    tpu.vector_store %arg4[%c13, %c0_95, %c0_96], %123 {strides = array<i32>} : memref<14x8x84xbf16, #tpu.memory_space<vmem>>, vector<1x8x84xbf16>,
    return
  }
  func.func @transform_0(%arg0: i32) -> (i32, i32, i32) {
    %c0_i32 = arith.constant 0 : i32
    %c0_i32_0 = arith.constant 0 : i32
    %c0_i32_1 = arith.constant 0 : i32
    return %c0_i32, %arg0, %c0_i32_0 : i32, i32, i32
  }
  func.func @transform_1(%arg0: i32) -> (i32, i32, i32) {
    %c0_i32 = arith.constant 0 : i32
    %c0_i32_0 = arith.constant 0 : i32
    %c0_i32_1 = arith.constant 0 : i32
    %c0_i32_2 = arith.constant 0 : i32
    return %c0_i32, %c0_i32_0, %c0_i32_1 : i32, i32, i32
  }
  func.func @transform_2(%arg0: i32) -> (i32, i32) {
    %c0_i32 = arith.constant 0 : i32
    %c0_i32_0 = arith.constant 0 : i32
    %c0_i32_1 = arith.constant 0 : i32
    return %c0_i32, %c0_i32_0 : i32, i32
  }
  func.func @transform_3(%arg0: i32) -> (i32, i32, i32) {
    %c0_i32 = arith.constant 0 : i32
    %c0_i32_0 = arith.constant 0 : i32
    %c0_i32_1 = arith.constant 0 : i32
    return %c0_i32, %arg0, %c0_i32_0 : i32, i32, i32
  }
}

module attributes {stable_mosaic.version = 11 : i64} {
  func.func @_conv2_mlp_kernel(%arg0: i32, %arg1: memref<14x8x84xbf16, #tpu.memory_space<vmem>>, %arg2: memref<5x84x256xbf16, #tpu.memory_space<vmem>>, %arg3: memref<1x80xf32, #tpu.memory_space<vmem>>, %arg4: memref<5x80x128xbf16, #tpu.memory_space<vmem>>, %arg5: memref<1x128xf32, #tpu.memory_space<vmem>>, %arg6: memref<128x128xbf16, #tpu.memory_space<vmem>>, %arg7: memref<1x128xf32, #tpu.memory_space<vmem>>, %arg8: memref<128x10xbf16, #tpu.memory_space<vmem>>, %arg9: memref<1x10xf32, #tpu.memory_space<vmem>>, %arg10: memref<8x10xf32, #tpu.memory_space<vmem>>) attributes {dimension_semantics = [#tpu.dimension_semantics<parallel>], iteration_bounds = array<i64: 1>, scalar_prefetch = 0 : i64, scratch_operands = 0 : i64, tpu.core_type = #tpu.core_type<tc>, window_params = [{transform_indices = @transform_0, window_bounds = array<i64: 14, 8, 84>}, {pipeline_mode = #tpu.pipeline_mode<synchronous>, transform_indices = @transform_1, window_bounds = array<i64: 5, 84, 256>}, {pipeline_mode = #tpu.pipeline_mode<synchronous>, transform_indices = @transform_2, window_bounds = array<i64: 1, 80>}, {pipeline_mode = #tpu.pipeline_mode<synchronous>, transform_indices = @transform_3, window_bounds = array<i64: 5, 80, 128>}, {pipeline_mode = #tpu.pipeline_mode<synchronous>, transform_indices = @transform_4, window_bounds = array<i64: 1, 128>}, {pipeline_mode = #tpu.pipeline_mode<synchronous>, transform_indices = @transform_5, window_bounds = array<i64: 128, 128>}, {pipeline_mode = #tpu.pipeline_mode<synchronous>, transform_indices = @transform_6, window_bounds = array<i64: 1, 128>}, {pipeline_mode = #tpu.pipeline_mode<synchronous>, transform_indices = @transform_7, window_bounds = array<i64: 128, 10>}, {pipeline_mode = #tpu.pipeline_mode<synchronous>, transform_indices = @transform_8, window_bounds = array<i64: 1, 10>}, {transform_indices = @transform_9, window_bounds = array<i64: 8, 10>}]} {
    %c0 = arith.constant 0 : index
    %c0_0 = arith.constant 0 : index
    %c0_1 = arith.constant 0 : index
    %0 = vector.load %arg1[%c0, %c0_0, %c0_1] : memref<14x8x84xbf16, #tpu.memory_space<vmem>>, vector<5x8x84xbf16>
    %1 = vector.shape_cast %0 : vector<5x8x84xbf16> to vector<40x84xbf16>
    %c0_2 = arith.constant 0 : index
    %c0_3 = arith.constant 0 : index
    %c0_4 = arith.constant 0 : index
    %2 = vector.load %arg2[%c0_2, %c0_3, %c0_4] : memref<5x84x256xbf16, #tpu.memory_space<vmem>>, vector<1x84x256xbf16>
    %3 = vector.shape_cast %2 : vector<1x84x256xbf16> to vector<84x256xbf16>
    %cst = arith.constant dense<0.000000e+00> : vector<40x256xf32>
    %4 = tpu.matmul %1, %3, %cst {dimension_numbers = #tpu.dot_dimension_numbers<[1], [0], [0], [1], [0, 0, 1, 1], [], []>} : vector<40x84xbf16>, vector<84x256xbf16>, vector<40x256xf32> -> vector<40x256xf32>
    %c7 = arith.constant 7 : index
    %c0_5 = arith.constant 0 : index
    %c0_6 = arith.constant 0 : index
    %5 = vector.load %arg1[%c7, %c0_5, %c0_6] : memref<14x8x84xbf16, #tpu.memory_space<vmem>>, vector<5x8x84xbf16>
    %6 = vector.shape_cast %5 : vector<5x8x84xbf16> to vector<40x84xbf16>
    %c1 = arith.constant 1 : index
    %c0_7 = arith.constant 0 : index
    %c0_8 = arith.constant 0 : index
    %7 = vector.load %arg2[%c1, %c0_7, %c0_8] : memref<5x84x256xbf16, #tpu.memory_space<vmem>>, vector<1x84x256xbf16>
    %8 = vector.shape_cast %7 : vector<1x84x256xbf16> to vector<84x256xbf16>
    %cst_9 = arith.constant dense<0.000000e+00> : vector<40x256xf32>
    %9 = tpu.matmul %6, %8, %cst_9 {dimension_numbers = #tpu.dot_dimension_numbers<[1], [0], [0], [1], [0, 0, 1, 1], [], []>} : vector<40x84xbf16>, vector<84x256xbf16>, vector<40x256xf32> -> vector<40x256xf32>
    %10 = arith.addf %4, %9 : vector<40x256xf32>
    %c1_10 = arith.constant 1 : index
    %c0_11 = arith.constant 0 : index
    %c0_12 = arith.constant 0 : index
    %11 = vector.load %arg1[%c1_10, %c0_11, %c0_12] : memref<14x8x84xbf16, #tpu.memory_space<vmem>>, vector<5x8x84xbf16>
    %12 = vector.shape_cast %11 : vector<5x8x84xbf16> to vector<40x84xbf16>
    %c2 = arith.constant 2 : index
    %c0_13 = arith.constant 0 : index
    %c0_14 = arith.constant 0 : index
    %13 = vector.load %arg2[%c2, %c0_13, %c0_14] : memref<5x84x256xbf16, #tpu.memory_space<vmem>>, vector<1x84x256xbf16>
    %14 = vector.shape_cast %13 : vector<1x84x256xbf16> to vector<84x256xbf16>
    %cst_15 = arith.constant dense<0.000000e+00> : vector<40x256xf32>
    %15 = tpu.matmul %12, %14, %cst_15 {dimension_numbers = #tpu.dot_dimension_numbers<[1], [0], [0], [1], [0, 0, 1, 1], [], []>} : vector<40x84xbf16>, vector<84x256xbf16>, vector<40x256xf32> -> vector<40x256xf32>
    %16 = arith.addf %10, %15 : vector<40x256xf32>
    %c8 = arith.constant 8 : index
    %c0_16 = arith.constant 0 : index
    %c0_17 = arith.constant 0 : index
    %17 = vector.load %arg1[%c8, %c0_16, %c0_17] : memref<14x8x84xbf16, #tpu.memory_space<vmem>>, vector<5x8x84xbf16>
    %18 = vector.shape_cast %17 : vector<5x8x84xbf16> to vector<40x84xbf16>
    %c3 = arith.constant 3 : index
    %c0_18 = arith.constant 0 : index
    %c0_19 = arith.constant 0 : index
    %19 = vector.load %arg2[%c3, %c0_18, %c0_19] : memref<5x84x256xbf16, #tpu.memory_space<vmem>>, vector<1x84x256xbf16>
    %20 = vector.shape_cast %19 : vector<1x84x256xbf16> to vector<84x256xbf16>
    %cst_20 = arith.constant dense<0.000000e+00> : vector<40x256xf32>
    %21 = tpu.matmul %18, %20, %cst_20 {dimension_numbers = #tpu.dot_dimension_numbers<[1], [0], [0], [1], [0, 0, 1, 1], [], []>} : vector<40x84xbf16>, vector<84x256xbf16>, vector<40x256xf32> -> vector<40x256xf32>
    %22 = arith.addf %16, %21 : vector<40x256xf32>
    %c2_21 = arith.constant 2 : index
    %c0_22 = arith.constant 0 : index
    %c0_23 = arith.constant 0 : index
    %23 = vector.load %arg1[%c2_21, %c0_22, %c0_23] : memref<14x8x84xbf16, #tpu.memory_space<vmem>>, vector<5x8x84xbf16>
    %24 = vector.shape_cast %23 : vector<5x8x84xbf16> to vector<40x84xbf16>
    %c4 = arith.constant 4 : index
    %c0_24 = arith.constant 0 : index
    %c0_25 = arith.constant 0 : index
    %25 = vector.load %arg2[%c4, %c0_24, %c0_25] : memref<5x84x256xbf16, #tpu.memory_space<vmem>>, vector<1x84x256xbf16>
    %26 = vector.shape_cast %25 : vector<1x84x256xbf16> to vector<84x256xbf16>
    %cst_26 = arith.constant dense<0.000000e+00> : vector<40x256xf32>
    %27 = tpu.matmul %24, %26, %cst_26 {dimension_numbers = #tpu.dot_dimension_numbers<[1], [0], [0], [1], [0, 0, 1, 1], [], []>} : vector<40x84xbf16>, vector<84x256xbf16>, vector<40x256xf32> -> vector<40x256xf32>
    %28 = arith.addf %22, %27 : vector<40x256xf32>
    %c7_27 = arith.constant 7 : index
    %c0_28 = arith.constant 0 : index
    %c0_29 = arith.constant 0 : index
    %29 = vector.load %arg1[%c7_27, %c0_28, %c0_29] : memref<14x8x84xbf16, #tpu.memory_space<vmem>>, vector<5x8x84xbf16>
    %30 = vector.shape_cast %29 : vector<5x8x84xbf16> to vector<40x84xbf16>
    %c0_30 = arith.constant 0 : index
    %c0_31 = arith.constant 0 : index
    %c0_32 = arith.constant 0 : index
    %31 = vector.load %arg2[%c0_30, %c0_31, %c0_32] : memref<5x84x256xbf16, #tpu.memory_space<vmem>>, vector<1x84x256xbf16>
    %32 = vector.shape_cast %31 : vector<1x84x256xbf16> to vector<84x256xbf16>
    %cst_33 = arith.constant dense<0.000000e+00> : vector<40x256xf32>
    %33 = tpu.matmul %30, %32, %cst_33 {dimension_numbers = #tpu.dot_dimension_numbers<[1], [0], [0], [1], [0, 0, 1, 1], [], []>} : vector<40x84xbf16>, vector<84x256xbf16>, vector<40x256xf32> -> vector<40x256xf32>
    %c1_34 = arith.constant 1 : index
    %c0_35 = arith.constant 0 : index
    %c0_36 = arith.constant 0 : index
    %34 = vector.load %arg1[%c1_34, %c0_35, %c0_36] : memref<14x8x84xbf16, #tpu.memory_space<vmem>>, vector<5x8x84xbf16>
    %35 = vector.shape_cast %34 : vector<5x8x84xbf16> to vector<40x84xbf16>
    %c1_37 = arith.constant 1 : index
    %c0_38 = arith.constant 0 : index
    %c0_39 = arith.constant 0 : index
    %36 = vector.load %arg2[%c1_37, %c0_38, %c0_39] : memref<5x84x256xbf16, #tpu.memory_space<vmem>>, vector<1x84x256xbf16>
    %37 = vector.shape_cast %36 : vector<1x84x256xbf16> to vector<84x256xbf16>
    %cst_40 = arith.constant dense<0.000000e+00> : vector<40x256xf32>
    %38 = tpu.matmul %35, %37, %cst_40 {dimension_numbers = #tpu.dot_dimension_numbers<[1], [0], [0], [1], [0, 0, 1, 1], [], []>} : vector<40x84xbf16>, vector<84x256xbf16>, vector<40x256xf32> -> vector<40x256xf32>
    %39 = arith.addf %33, %38 : vector<40x256xf32>
    %c8_41 = arith.constant 8 : index
    %c0_42 = arith.constant 0 : index
    %c0_43 = arith.constant 0 : index
    %40 = vector.load %arg1[%c8_41, %c0_42, %c0_43] : memref<14x8x84xbf16, #tpu.memory_space<vmem>>, vector<5x8x84xbf16>
    %41 = vector.shape_cast %40 : vector<5x8x84xbf16> to vector<40x84xbf16>
    %c2_44 = arith.constant 2 : index
    %c0_45 = arith.constant 0 : index
    %c0_46 = arith.constant 0 : index
    %42 = vector.load %arg2[%c2_44, %c0_45, %c0_46] : memref<5x84x256xbf16, #tpu.memory_space<vmem>>, vector<1x84x256xbf16>
    %43 = vector.shape_cast %42 : vector<1x84x256xbf16> to vector<84x256xbf16>
    %cst_47 = arith.constant dense<0.000000e+00> : vector<40x256xf32>
    %44 = tpu.matmul %41, %43, %cst_47 {dimension_numbers = #tpu.dot_dimension_numbers<[1], [0], [0], [1], [0, 0, 1, 1], [], []>} : vector<40x84xbf16>, vector<84x256xbf16>, vector<40x256xf32> -> vector<40x256xf32>
    %45 = arith.addf %39, %44 : vector<40x256xf32>
    %c2_48 = arith.constant 2 : index
    %c0_49 = arith.constant 0 : index
    %c0_50 = arith.constant 0 : index
    %46 = vector.load %arg1[%c2_48, %c0_49, %c0_50] : memref<14x8x84xbf16, #tpu.memory_space<vmem>>, vector<5x8x84xbf16>
    %47 = vector.shape_cast %46 : vector<5x8x84xbf16> to vector<40x84xbf16>
    %c3_51 = arith.constant 3 : index
    %c0_52 = arith.constant 0 : index
    %c0_53 = arith.constant 0 : index
    %48 = vector.load %arg2[%c3_51, %c0_52, %c0_53] : memref<5x84x256xbf16, #tpu.memory_space<vmem>>, vector<1x84x256xbf16>
    %49 = vector.shape_cast %48 : vector<1x84x256xbf16> to vector<84x256xbf16>
    %cst_54 = arith.constant dense<0.000000e+00> : vector<40x256xf32>
    %50 = tpu.matmul %47, %49, %cst_54 {dimension_numbers = #tpu.dot_dimension_numbers<[1], [0], [0], [1], [0, 0, 1, 1], [], []>} : vector<40x84xbf16>, vector<84x256xbf16>, vector<40x256xf32> -> vector<40x256xf32>
    %51 = arith.addf %45, %50 : vector<40x256xf32>
    %c9 = arith.constant 9 : index
    %c0_55 = arith.constant 0 : index
    %c0_56 = arith.constant 0 : index
    %52 = vector.load %arg1[%c9, %c0_55, %c0_56] : memref<14x8x84xbf16, #tpu.memory_space<vmem>>, vector<5x8x84xbf16>
    %53 = vector.shape_cast %52 : vector<5x8x84xbf16> to vector<40x84xbf16>
    %c4_57 = arith.constant 4 : index
    %c0_58 = arith.constant 0 : index
    %c0_59 = arith.constant 0 : index
    %54 = vector.load %arg2[%c4_57, %c0_58, %c0_59] : memref<5x84x256xbf16, #tpu.memory_space<vmem>>, vector<1x84x256xbf16>
    %55 = vector.shape_cast %54 : vector<1x84x256xbf16> to vector<84x256xbf16>
    %cst_60 = arith.constant dense<0.000000e+00> : vector<40x256xf32>
    %56 = tpu.matmul %53, %55, %cst_60 {dimension_numbers = #tpu.dot_dimension_numbers<[1], [0], [0], [1], [0, 0, 1, 1], [], []>} : vector<40x84xbf16>, vector<84x256xbf16>, vector<40x256xf32> -> vector<40x256xf32>
    %57 = arith.addf %51, %56 : vector<40x256xf32>
    %58 = arith.maximumf %28, %57 : vector<40x256xf32>
    %59 = vector.extract_strided_slice %58 {offsets = [0, 0], sizes = [40, 80], strides = [1, 1]} : vector<40x256xf32> to vector<40x80xf32>
    %60 = vector.extract_strided_slice %58 {offsets = [0, 128], sizes = [40, 80], strides = [1, 1]} : vector<40x256xf32> to vector<40x80xf32>
    %61 = arith.maximumf %59, %60 : vector<40x80xf32>
    %c0_61 = arith.constant 0 : index
    %c0_62 = arith.constant 0 : index
    %62 = vector.load %arg3[%c0_61, %c0_62] : memref<1x80xf32, #tpu.memory_space<vmem>>, vector<1x80xf32>
    %63 = vector.broadcast %62 : vector<1x80xf32> to vector<40x80xf32>
    %64 = arith.addf %61, %63 : vector<40x80xf32>
    %cst_63 = arith.constant 0.000000e+00 : f32
    %65 = vector.broadcast %cst_63 : f32 to vector<40x80xf32>
    %66 = arith.maximumf %64, %65 : vector<40x80xf32>
    %67 = arith.truncf %66 : vector<40x80xf32> to vector<40x80xbf16>
    %68 = vector.extract_strided_slice %67 {offsets = [0, 0], sizes = [8, 80], strides = [1, 1]} : vector<40x80xbf16> to vector<8x80xbf16>
    %c0_64 = arith.constant 0 : index
    %c0_65 = arith.constant 0 : index
    %c0_66 = arith.constant 0 : index
    %69 = vector.load %arg4[%c0_64, %c0_65, %c0_66] : memref<5x80x128xbf16, #tpu.memory_space<vmem>>, vector<1x80x128xbf16>
    %70 = vector.shape_cast %69 : vector<1x80x128xbf16> to vector<80x128xbf16>
    %cst_67 = arith.constant dense<0.000000e+00> : vector<8x128xf32>
    %71 = tpu.matmul %68, %70, %cst_67 {dimension_numbers = #tpu.dot_dimension_numbers<[1], [0], [0], [1], [0, 0, 1, 1], [], []>} : vector<8x80xbf16>, vector<80x128xbf16>, vector<8x128xf32> -> vector<8x128xf32>
    %72 = vector.extract_strided_slice %67 {offsets = [8, 0], sizes = [8, 80], strides = [1, 1]} : vector<40x80xbf16> to vector<8x80xbf16>
    %c1_68 = arith.constant 1 : index
    %c0_69 = arith.constant 0 : index
    %c0_70 = arith.constant 0 : index
    %73 = vector.load %arg4[%c1_68, %c0_69, %c0_70] : memref<5x80x128xbf16, #tpu.memory_space<vmem>>, vector<1x80x128xbf16>
    %74 = vector.shape_cast %73 : vector<1x80x128xbf16> to vector<80x128xbf16>
    %cst_71 = arith.constant dense<0.000000e+00> : vector<8x128xf32>
    %75 = tpu.matmul %72, %74, %cst_71 {dimension_numbers = #tpu.dot_dimension_numbers<[1], [0], [0], [1], [0, 0, 1, 1], [], []>} : vector<8x80xbf16>, vector<80x128xbf16>, vector<8x128xf32> -> vector<8x128xf32>
    %76 = arith.addf %71, %75 : vector<8x128xf32>
    %77 = vector.extract_strided_slice %67 {offsets = [16, 0], sizes = [8, 80], strides = [1, 1]} : vector<40x80xbf16> to vector<8x80xbf16>
    %c2_72 = arith.constant 2 : index
    %c0_73 = arith.constant 0 : index
    %c0_74 = arith.constant 0 : index
    %78 = vector.load %arg4[%c2_72, %c0_73, %c0_74] : memref<5x80x128xbf16, #tpu.memory_space<vmem>>, vector<1x80x128xbf16>
    %79 = vector.shape_cast %78 : vector<1x80x128xbf16> to vector<80x128xbf16>
    %cst_75 = arith.constant dense<0.000000e+00> : vector<8x128xf32>
    %80 = tpu.matmul %77, %79, %cst_75 {dimension_numbers = #tpu.dot_dimension_numbers<[1], [0], [0], [1], [0, 0, 1, 1], [], []>} : vector<8x80xbf16>, vector<80x128xbf16>, vector<8x128xf32> -> vector<8x128xf32>
    %81 = arith.addf %76, %80 : vector<8x128xf32>
    %82 = vector.extract_strided_slice %67 {offsets = [24, 0], sizes = [8, 80], strides = [1, 1]} : vector<40x80xbf16> to vector<8x80xbf16>
    %c3_76 = arith.constant 3 : index
    %c0_77 = arith.constant 0 : index
    %c0_78 = arith.constant 0 : index
    %83 = vector.load %arg4[%c3_76, %c0_77, %c0_78] : memref<5x80x128xbf16, #tpu.memory_space<vmem>>, vector<1x80x128xbf16>
    %84 = vector.shape_cast %83 : vector<1x80x128xbf16> to vector<80x128xbf16>
    %cst_79 = arith.constant dense<0.000000e+00> : vector<8x128xf32>
    %85 = tpu.matmul %82, %84, %cst_79 {dimension_numbers = #tpu.dot_dimension_numbers<[1], [0], [0], [1], [0, 0, 1, 1], [], []>} : vector<8x80xbf16>, vector<80x128xbf16>, vector<8x128xf32> -> vector<8x128xf32>
    %86 = arith.addf %81, %85 : vector<8x128xf32>
    %87 = vector.extract_strided_slice %67 {offsets = [32, 0], sizes = [8, 80], strides = [1, 1]} : vector<40x80xbf16> to vector<8x80xbf16>
    %c4_80 = arith.constant 4 : index
    %c0_81 = arith.constant 0 : index
    %c0_82 = arith.constant 0 : index
    %88 = vector.load %arg4[%c4_80, %c0_81, %c0_82] : memref<5x80x128xbf16, #tpu.memory_space<vmem>>, vector<1x80x128xbf16>
    %89 = vector.shape_cast %88 : vector<1x80x128xbf16> to vector<80x128xbf16>
    %cst_83 = arith.constant dense<0.000000e+00> : vector<8x128xf32>
    %90 = tpu.matmul %87, %89, %cst_83 {dimension_numbers = #tpu.dot_dimension_numbers<[1], [0], [0], [1], [0, 0, 1, 1], [], []>} : vector<8x80xbf16>, vector<80x128xbf16>, vector<8x128xf32> -> vector<8x128xf32>
    %91 = arith.addf %86, %90 : vector<8x128xf32>
    %c0_84 = arith.constant 0 : index
    %c0_85 = arith.constant 0 : index
    %92 = vector.load %arg5[%c0_84, %c0_85] : memref<1x128xf32, #tpu.memory_space<vmem>>, vector<1x128xf32>
    %93 = vector.broadcast %92 : vector<1x128xf32> to vector<8x128xf32>
    %94 = arith.addf %91, %93 : vector<8x128xf32>
    %cst_86 = arith.constant 0.000000e+00 : f32
    %95 = vector.broadcast %cst_86 : f32 to vector<8x128xf32>
    %96 = arith.maximumf %94, %95 : vector<8x128xf32>
    %97 = arith.truncf %96 : vector<8x128xf32> to vector<8x128xbf16>
    %c0_87 = arith.constant 0 : index
    %c0_88 = arith.constant 0 : index
    %98 = vector.load %arg6[%c0_87, %c0_88] : memref<128x128xbf16, #tpu.memory_space<vmem>>, vector<128x128xbf16>
    %cst_89 = arith.constant dense<0.000000e+00> : vector<8x128xf32>
    %99 = tpu.matmul %97, %98, %cst_89 {dimension_numbers = #tpu.dot_dimension_numbers<[1], [0], [0], [1], [0, 0, 1, 1], [], []>} : vector<8x128xbf16>, vector<128x128xbf16>, vector<8x128xf32> -> vector<8x128xf32>
    %c0_90 = arith.constant 0 : index
    %c0_91 = arith.constant 0 : index
    %100 = vector.load %arg7[%c0_90, %c0_91] : memref<1x128xf32, #tpu.memory_space<vmem>>, vector<1x128xf32>
    %101 = vector.broadcast %100 : vector<1x128xf32> to vector<8x128xf32>
    %102 = arith.addf %99, %101 : vector<8x128xf32>
    %cst_92 = arith.constant 0.000000e+00 : f32
    %103 = vector.broadcast %cst_92 : f32 to vector<8x128xf32>
    %104 = arith.maximumf %102, %103 : vector<8x128xf32>
    %105 = arith.truncf %104 : vector<8x128xf32> to vector<8x128xbf16>
    %c0_93 = arith.constant 0 : index
    %c0_94 = arith.constant 0 : index
    %106 = vector.load %arg8[%c0_93, %c0_94] : memref<128x10xbf16, #tpu.memory_space<vmem>>, vector<128x10xbf16>
    %cst_95 = arith.constant dense<0.000000e+00> : vector<8x10xf32>
    %107 = tpu.matmul %105, %106, %cst_95 {dimension_numbers = #tpu.dot_dimension_numbers<[1], [0], [0], [1], [0, 0, 1, 1], [], []>} : vector<8x128xbf16>, vector<128x10xbf16>, vector<8x10xf32> -> vector<8x10xf32>
    %c0_96 = arith.constant 0 : index
    %c0_97 = arith.constant 0 : index
    %108 = vector.load %arg9[%c0_96, %c0_97] : memref<1x10xf32, #tpu.memory_space<vmem>>, vector<1x10xf32>
    %109 = vector.broadcast %108 : vector<1x10xf32> to vector<8x10xf32>
    %110 = arith.addf %107, %109 : vector<8x10xf32>
    %c0_98 = arith.constant 0 : index
    %c0_99 = arith.constant 0 : index
    %111 = vector.load %arg10[%c0_98, %c0_99] : memref<8x10xf32, #tpu.memory_space<vmem>>, vector<8x10xf32>
    tpu.vector_store %arg10[%c0_98, %c0_99], %110 {strides = array<i32>} : memref<8x10xf32, #tpu.memory_space<vmem>>, vector<8x10xf32>,
    return
  }
  func.func @transform_0(%arg0: i32) -> (i32, i32, i32) {
    %c0_i32 = arith.constant 0 : i32
    %c0_i32_0 = arith.constant 0 : i32
    %c0_i32_1 = arith.constant 0 : i32
    return %c0_i32, %arg0, %c0_i32_0 : i32, i32, i32
  }
  func.func @transform_1(%arg0: i32) -> (i32, i32, i32) {
    %c0_i32 = arith.constant 0 : i32
    %c0_i32_0 = arith.constant 0 : i32
    %c0_i32_1 = arith.constant 0 : i32
    %c0_i32_2 = arith.constant 0 : i32
    return %c0_i32, %c0_i32_0, %c0_i32_1 : i32, i32, i32
  }
  func.func @transform_2(%arg0: i32) -> (i32, i32) {
    %c0_i32 = arith.constant 0 : i32
    %c0_i32_0 = arith.constant 0 : i32
    %c0_i32_1 = arith.constant 0 : i32
    return %c0_i32, %c0_i32_0 : i32, i32
  }
  func.func @transform_3(%arg0: i32) -> (i32, i32, i32) {
    %c0_i32 = arith.constant 0 : i32
    %c0_i32_0 = arith.constant 0 : i32
    %c0_i32_1 = arith.constant 0 : i32
    %c0_i32_2 = arith.constant 0 : i32
    return %c0_i32, %c0_i32_0, %c0_i32_1 : i32, i32, i32
  }
  func.func @transform_4(%arg0: i32) -> (i32, i32) {
    %c0_i32 = arith.constant 0 : i32
    %c0_i32_0 = arith.constant 0 : i32
    %c0_i32_1 = arith.constant 0 : i32
    return %c0_i32, %c0_i32_0 : i32, i32
  }
  func.func @transform_5(%arg0: i32) -> (i32, i32) {
    %c0_i32 = arith.constant 0 : i32
    %c0_i32_0 = arith.constant 0 : i32
    %c0_i32_1 = arith.constant 0 : i32
    return %c0_i32, %c0_i32_0 : i32, i32
  }
  func.func @transform_6(%arg0: i32) -> (i32, i32) {
    %c0_i32 = arith.constant 0 : i32
    %c0_i32_0 = arith.constant 0 : i32
    %c0_i32_1 = arith.constant 0 : i32
    return %c0_i32, %c0_i32_0 : i32, i32
  }
  func.func @transform_7(%arg0: i32) -> (i32, i32) {
    %c0_i32 = arith.constant 0 : i32
    %c0_i32_0 = arith.constant 0 : i32
    %c0_i32_1 = arith.constant 0 : i32
    return %c0_i32, %c0_i32_0 : i32, i32
  }
  func.func @transform_8(%arg0: i32) -> (i32, i32) {
    %c0_i32 = arith.constant 0 : i32
    %c0_i32_0 = arith.constant 0 : i32
    %c0_i32_1 = arith.constant 0 : i32
    return %c0_i32, %c0_i32_0 : i32, i32
  }
  func.func @transform_9(%arg0: i32) -> (i32, i32) {
    %c0_i32 = arith.constant 0 : i32
    %c0_i32_0 = arith.constant 0 : i32
    return %arg0, %c0_i32 : i32, i32
  }
}

</mosaic_0001>

<bundles_post_ra>
// kernel: net_forward.2
= control target key start
LH: loop header
LB: loop body
LE: loop exit
PB: predicated region body
PF: predicated region fallthrough
CT: control target
= control target key end

     0   :  { %v3969_v1 = vmov 0   ;;  %vm164_vm0 = vcmask 785408   ;;  %vm2087_vm1 = vcmask 683008   ;;  %s3965_s1 = inlined_call_operand.vmem [shape: bf16[5,96,256], index: 1, kind: input, shape index: {}]   ;;  %s3966_s0 = inlined_call_operand.vmem [shape: bf16[32,8,96], index: 0, kind: input, shape index: {}]   ;;  %s3967_s2 = inlined_call_operand.vmem [shape: f32[1,84], index: 2, kind: input, shape index: {}]   ;;  %s3968_s3 = inlined_call_operand.vmem [shape: bf16[14,8,84], index: 3, kind: output, shape index: {}]  }
   0x1   :  { %v2622_v0 = vld [vmem:[%s3965_s1 + $0xb4] ss:$8 sps:$4 sm:$0xff]   ;;  %218 = vmatprep.mubr.bf16.mxu0 %v3969_v1  ;;  %437 = vmatprep.mubr.bf16.mxu1 %v3969_v1  ;;  %v2635_v3 = vld [vmem:[%s3965_s1 + $0xb0] ss:$8 sps:$4 sm:$0xff]   ;;  %v2646_v5 = vld [vmem:[%s3965_s1 + $0xa4] ss:$8 sps:$4 sm:$0xff]  }
   0x2   :  { %v2629_v2 = vld [vmem:[%s3965_s1 + $0x54] ss:$8 sps:$4 sm:$0xff]   ;;  %190 = vmatprep.subr.bf16.mxu0 %v2622_v0  ;;  %v2640_v4 = vld [vmem:[%s3965_s1 + $0x50] ss:$8 sps:$4 sm:$0xff]   ;;  %v2653_v6 = vld [vmem:[%s3965_s1 + $0x44] ss:$8 sps:$4 sm:$0xff]  }
   0x3   :  { %409 = vmatprep.subr.bf16.mxu1 %v2629_v2  ;;  %191 = vmatpush1.bf16.msra.mxu0 %v2635_v3  ;;  %v2658_v7 = vld [vmem:[%s3965_s1 + $0xa0] ss:$8 sps:$4 sm:$0xff]   ;;  %v2670_v9 = vld [vmem:[%s3965_s1 + $0x94] ss:$8 sps:$4 sm:$0xff]   ;;  %v2680_v11 = vld [vmem:[%s3965_s1 + $0x90] ss:$8 sps:$4 sm:$0xff]  }
   0x4   :  { %410 = vmatpush1.bf16.msra.mxu1 %v2640_v4  ;;  %192 = vmatprep.subr.bf16.mxu0 %v2646_v5  ;;  %v2664_v8 = vld [vmem:[%s3965_s1 + $0x40] ss:$8 sps:$4 sm:$0xff]   ;;  %v2675_v10 = vld [vmem:[%s3965_s1 + $0x34] ss:$8 sps:$4 sm:$0xff]   ;;  %v2685_v12 = vld [vmem:[%s3965_s1 + $0x30] ss:$8 sps:$4 sm:$0xff]  }
   0x5   :  { %411 = vmatprep.subr.bf16.mxu1 %v2653_v6  ;;  %v2692_v13 = vld [vmem:[%s3965_s1 + $0x84] ss:$8 sps:$4 sm:$0xff]   ;;  %v2704_v15 = vld [vmem:[%s3965_s1 + $0x80] ss:$8 sps:$4 sm:$0xff]   ;;  %v2716_v17 = vld [vmem:[%s3965_s1 + $0x74] ss:$8 sps:$4 sm:$0xff]  }
   0x6   :  { %v2699_v14 = vld [vmem:[%s3965_s1 + $0x24] ss:$8 sps:$4 sm:$0xff]   ;;  %v2711_v16 = vld [vmem:[%s3965_s1 + $0x20] ss:$8 sps:$4 sm:$0xff]   ;;  %v2723_v18 = vld [vmem:[%s3965_s1 + $0x14] ss:$8 sps:$4 sm:$0xff]  }
   0x7   :  { %193 = vmatpush1.bf16.msra.mxu0 %v2658_v7  ;;  %v2728_v19 = vld [vmem:[%s3965_s1 + $0x70] ss:$8 sps:$4 sm:$0xff]   ;;  %v2740_v21 = vld [vmem:[%s3965_s1 + $0x64] ss:$8 sps:$4 sm:$0xff]   ;;  %v2752_v23 = vld [vmem:[%s3965_s1 + $0x60] ss:$8 sps:$4 sm:$0xff]  }
   0x8   :  { %412 = vmatpush1.bf16.msra.mxu1 %v2664_v8  ;;  %194 = vmatprep.subr.bf16.mxu0 %v2670_v9  ;;  %v2733_v20 = vld [vmem:[%s3965_s1 + $0x10] ss:$8 sps:$4 sm:$0xff]   ;;  %v2747_v22 = vld [vmem:[%s3965_s1 + $0x4] ss:$8 sps:$4 sm:$0xff]   ;;  %v2759_v24 = vld [vmem:[%s3965_s1] ss:$8 sps:$4 sm:$0xff]  }
   0x9   :  { %413 = vmatprep.subr.bf16.mxu1 %v2675_v10  ;;  %v2764_v25 = vld [vmem:[%s3965_s1 + $0x114] ss:$8 sps:$4 sm:$0xff]   ;;  %v2776_v27 = vld [vmem:[%s3966_s0 + $0x40] sm:$0xff]   ;;  %v2784_v29 = vld [vmem:[%s3965_s1 + $0x110] ss:$8 sps:$4 sm:$0xff]  }
   0xa   :  { %v2771_v26 = vld [vmem:[%s3965_s1 + $0x174] ss:$8 sps:$4 sm:$0xff]   ;;  %v2503_v28 = vld [vmem:[%s3966_s0] sm:$0xff]   ;;  %v2791_v30 = vld [vmem:[%s3965_s1 + $0x170] ss:$8 sps:$4 sm:$0xff]  }
   0xb   :  { %195 = vmatpush1.bf16.msra.mxu0 %v2680_v11  ;;  %v2798_v31 = vld [vmem:[%s3965_s1 + $0x104] ss:$8 sps:$4 sm:$0xff]   ;;  %v2813_v33 = vld [vmem:[%s3965_s1 + $0x100] ss:$8 sps:$4 sm:$0xff]   ;;  %v2825_v35 = vld [vmem:[%s3965_s1 + $0xf4] ss:$8 sps:$4 sm:$0xff]  }
   0xc   :  { %414 = vmatpush1.bf16.msra.mxu1 %v2685_v12  ;;  %196 = vmatprep.subr.bf16.mxu0 %v2692_v13  ;;  %v2803_v32 = vld [vmem:[%s3965_s1 + $0x164] ss:$8 sps:$4 sm:$0xff]   ;;  %v2818_v34 = vld [vmem:[%s3965_s1 + $0x160] ss:$8 sps:$4 sm:$0xff]   ;;  %v2830_v36 = vld [vmem:[%s3965_s1 + $0x154] ss:$8 sps:$4 sm:$0xff]  }
   0xd   :  { %415 = vmatprep.subr.bf16.mxu1 %v2699_v14  ;;  %v2835_v37 = vld [vmem:[%s3966_s0 + $0x48] sm:$0xff]   ;;  %v2847_v39 = vld [vmem:[%s3965_s1 + $0xf0] ss:$8 sps:$4 sm:$0xff]   ;;  %v2893_v46 = vld [vmem:[%s3965_s1 + $0xd4] ss:$8 sps:$4 sm:$0xff]  }
   0xe   :  { %v2511_v38 = vld [vmem:[%s3966_s0 + $0x8] sm:$0xff]   ;;  %v2853_v40 = vld [vmem:[%s3965_s1 + $0x150] ss:$8 sps:$4 sm:$0xff]   ;;  %v2908_v49 = vld [vmem:[%s3965_s1 + $0x134] ss:$8 sps:$4 sm:$0xff]  }
   0xf   :  { %197 = vmatpush1.bf16.msra.mxu0 %v2704_v15  ;;  %v2859_v41 = vld [vmem:[%s3965_s1 + $0xe4] ss:$8 sps:$4 sm:$0xff]   ;;  %v2874_v43 = vld [vmem:[%s3966_s0 + $0x50] sm:$0xff]   ;;  %v2881_v44 = vld [vmem:[%s3965_s1 + $0xe0] ss:$8 sps:$4 sm:$0xff]  }
  0x10   :  { %416 = vmatpush1.bf16.msra.mxu1 %v2711_v16  ;;  %198 = vmatprep.subr.bf16.mxu0 %v2716_v17  ;;  %v2864_v42 = vld [vmem:[%s3965_s1 + $0x144] ss:$8 sps:$4 sm:$0xff]   ;;  %v2886_v45 = vld [vmem:[%s3965_s1 + $0x140] ss:$8 sps:$4 sm:$0xff]   ;;  %v2519_v47 = vld [vmem:[%s3966_s0 + $0x10] sm:$0xff]  }
  0x11   :  { %417 = vmatprep.subr.bf16.mxu1 %v2723_v18  ;;  %v2901_v48 = vld [vmem:[%s3965_s1 + $0xd0] ss:$8 sps:$4 sm:$0xff]   ;;  %v2919_v51 = vld [vmem:[%s3965_s1 + $0xc4] ss:$8 sps:$4 sm:$0xff]   ;;  %v2936_v53 = vld [vmem:[%s3965_s1 + $0xc0] ss:$8 sps:$4 sm:$0xff]  }
  0x12   :  { %v2914_v50 = vld [vmem:[%s3965_s1 + $0x130] ss:$8 sps:$4 sm:$0xff]   ;;  %v2941_v54 = vld [vmem:[%s3965_s1 + $0x124] ss:$8 sps:$4 sm:$0xff]   ;;  %v2948_v55 = vld [vmem:[%s3965_s1 + $0x120] ss:$8 sps:$4 sm:$0xff]  }
  0x13   :  { %199 = vmatpush1.bf16.msra.mxu0 %v2728_v19  ;;  %v2929_v52 = vld [vmem:[%s3966_s0 + $0x58] sm:$0xff]   ;;  %v2971_v58 = vld [vmem:[%s3966_s0 + $0x60] sm:$0xff]   ;;  %v2984_v60 = vld [vmem:[%s3966_s0 + $0x68] sm:$0xff]  }
  0x14   :  { %418 = vmatpush1.bf16.msra.mxu1 %v2733_v20  ;;  %200 = vmatprep.subr.bf16.mxu0 %v2740_v21  ;;  %v2527_v56 = vld [vmem:[%s3966_s0 + $0x18] sm:$0xff]   ;;  %3977 = vst [vmem:[#allocation2_spill] sm:$0xff] %v2971_v58  ;;  %v2535_v59 = vld [vmem:[%s3966_s0 + $0x20] sm:$0xff]   ;;  %3978 = vst [vmem:[#allocation3_spill] sm:$0xff] %v2984_v60 }
  0x15   :  { %419 = vmatprep.subr.bf16.mxu1 %v2747_v22  ;;  %v2958_v57 = vld [vmem:[%s3965_s1 + $0x1d4] ss:$8 sps:$4 sm:$0xff]   ;;  %v2540_v61 = vld [vmem:[%s3966_s0 + $0x28] sm:$0xff]  }
  0x16   :  { %v2997_v62 = vld [vmem:[%s3966_s0 + $0x70] sm:$0xff]  }
  0x17   :  { %201 = vmatpush1.bf16.msra.mxu0 %v2752_v23  ;;  %3979 = vst [vmem:[#allocation4_spill] sm:$0xff] %v2997_v62  ;;  %v2548_v63 = vld [vmem:[%s3966_s0 + $0x30] sm:$0xff]  }
  0x18   :  { %420 = vmatpush1.bf16.msra.mxu1 %v2759_v24  ;;  %656 = vmatprep.subr.bf16.mxu0 %v2764_v25 }
  0x19   :  { %931 = vmatprep.subr.bf16.mxu1 %v2771_v26 }
  0x1a   :  { %2192 = vmatmul.mubr.msk.bf16.vlgmr.msra.gmra.mxu0 %vm164_vm0, %v2776_v27 }
  0x1b   :  { %2218 = vmatmul.mubr.msk.bf16.vlgmr.msra.gmra.mxu1 %vm164_vm0, %v2503_v28  ;;  %657 = vmatpush1.bf16.msra.mxu0 %v2784_v29  ;;  %v3015_v28 = vld [vmem:[%s3966_s0 + $0x44] sm:$0xff]  }
  0x1c   :  { %932 = vmatpush1.bf16.msra.mxu1 %v2791_v30  ;;  %228 = vmatprep.mubr.bf16.mxu0 %v3969_v1 }
  0x1d   :  { %447 = vmatprep.mubr.bf16.mxu1 %v3969_v1  ;;  %658 = vmatprep.subr.bf16.mxu0 %v2798_v31 }
  0x1e   :  { %933 = vmatprep.subr.bf16.mxu1 %v2803_v32 }
  0x1f   :  { %659 = vmatpush1.bf16.msra.mxu0 %v2813_v33 }
  0x20   :  { %934 = vmatpush1.bf16.msra.mxu1 %v2818_v34  ;;  %660 = vmatprep.subr.bf16.mxu0 %v2825_v35 }
  0x21   :  { %935 = vmatprep.subr.bf16.mxu1 %v2830_v36 }
  0x22   :  { %2193 = vmatmul.mubr.msk.bf16.gmra.mxu0 %vm164_vm0, %v2835_v37 }
  0x23   :  { %2219 = vmatmul.mubr.msk.bf16.gmra.mxu1 %vm164_vm0, %v2511_v38  ;;  %238 = vmatprep.mubr.bf16.mxu0 %v3969_v1  ;;  %v3020_v38 = vld [vmem:[%s3965_s1 + $0x1d0] ss:$8 sps:$4 sm:$0xff]  }
  0x24   :  { %457 = vmatprep.mubr.bf16.mxu1 %v3969_v1  ;;  %661 = vmatpush1.bf16.msra.mxu0 %v2847_v39 }
  0x25   :  { %936 = vmatpush1.bf16.msra.mxu1 %v2853_v40  ;;  %662 = vmatprep.subr.bf16.mxu0 %v2859_v41 }
  0x26   :  { %937 = vmatprep.subr.bf16.mxu1 %v2864_v42 }
  0x28   :  { %663 = vmatpush1.bf16.msra.mxu0 %v2881_v44 }
  0x29   :  { %938 = vmatpush1.bf16.msra.mxu1 %v2886_v45  ;;  %664 = vmatprep.subr.bf16.mxu0 %v2893_v46 }
  0x2a   :  { %2194 = vmatmul.mubr.msk.bf16.gmra.mxu0 %vm164_vm0, %v2874_v43  ;;  %939 = vmatprep.subr.bf16.mxu1 %v2908_v49 }
  0x2b   :  { %2220 = vmatmul.mubr.msk.bf16.gmra.mxu1 %vm164_vm0, %v2519_v47  ;;  %248 = vmatprep.mubr.bf16.mxu0 %v3969_v1  ;;  %v3025_v47 = vld [vmem:[%s3965_s1 + $0x1c4] ss:$8 sps:$4 sm:$0xff]  }
  0x2c   :  { %467 = vmatprep.mubr.bf16.mxu1 %v3969_v1  ;;  %665 = vmatpush1.bf16.msra.mxu0 %v2901_v48 }
  0x2d   :  { %940 = vmatpush1.bf16.msra.mxu1 %v2914_v50  ;;  %666 = vmatprep.subr.bf16.mxu0 %v2919_v51 }
  0x2e   :  { %941 = vmatprep.subr.bf16.mxu1 %v2941_v54 }
  0x30   :  { %667 = vmatpush1.bf16.msra.mxu0 %v2936_v53 }
  0x31   :  { %942 = vmatpush1.bf16.msra.mxu1 %v2948_v55  ;;  %1206 = vmatprep.subr.bf16.mxu0 %v2958_v57 }
  0x32   :  { %2195 = vmatmul.mubr.msk.bf16.gmra.mxu0 %vm164_vm0, %v2929_v52  ;;  %1337 = vmatprep.subr.bf16.mxu1 %v2622_v0  ;;  %v3010_v0 = vld [vmem:[%s3966_s0 + $0x4] sm:$0xff]  }
  0x33   :  { %2221 = vmatmul.mubr.msk.bf16.gmra.mxu1 %vm164_vm0, %v2527_v56  ;;  %258 = vmatprep.mubr.bf16.mxu0 %v3969_v1  ;;  %v3036_v56 = vld [vmem:[%s3965_s1 + $0x1c0] ss:$8 sps:$4 sm:$0xff]  }
  0x34   :  { %477 = vmatprep.mubr.bf16.mxu1 %v3969_v1 }
  0x3a   :  { %2196 = vmatmul.mubr.msk.bf16.gmra.mxu0 %vm164_vm0, %v2971_v58  ;;  %v3138_v58 = vld [vmem:[%s3966_s0 + $0x5c] sm:$0xff]  }
  0x3b   :  { %2222 = vmatmul.mubr.msk.bf16.gmra.mxu1 %vm164_vm0, %v2535_v59  ;;  %268 = vmatprep.mubr.bf16.mxu0 %v3969_v1  ;;  %v3043_v59 = vld [vmem:[%s3965_s1 + $0x1b4] ss:$8 sps:$4 sm:$0xff]  }
  0x3c   :  { %487 = vmatprep.mubr.bf16.mxu1 %v3969_v1 }
  0x42   :  { %2197 = vmatmul.mubr.msk.bf16.gmra.mxu0 %vm164_vm0, %v2984_v60  ;;  %v3133_v60 = vld [vmem:[%s3966_s0 + $0x1c] sm:$0xff]  }
  0x43   :  { %2223 = vmatmul.mubr.msk.bf16.gmra.mxu1 %vm164_vm0, %v2540_v61  ;;  %278 = vmatprep.mubr.bf16.mxu0 %v3969_v1  ;;  %v3055_v61 = vld [vmem:[%s3966_s0 + $0x4c] sm:$0xff]  }
  0x44   :  { %497 = vmatprep.mubr.bf16.mxu1 %v3969_v1 }
  0x4a   :  { %2198 = vmatmul.mubr.msk.bf16.gmra.mxu0 %vm164_vm0, %v2997_v62  ;;  %v3113_v62 = vld [vmem:[%s3965_s1 + $0x184] ss:$8 sps:$4 sm:$0xff]  }
  0x4b   :  { %2224 = vmatmul.mubr.msk.bf16.gmra.mxu1 %vm164_vm0, %v2548_v63  ;;  %684 = vmatprep.mubr.bf16.mxu0 %v3969_v1  ;;  %v3062_v63 = vld [vmem:[%s3965_s1 + $0x1b0] ss:$8 sps:$4 sm:$0xff]  }
  0x4c   :  { %959 = vmatprep.mubr.bf16.mxu1 %v3969_v1 }
  0x52   :  { %2270 = vmatmul.mubr.msk.bf16.vlgmr.msra.gmra.mxu0 %vm164_vm0, %v3010_v0 }
  0x53   :  { %2322 = vmatmul.mubr.msk.bf16.vlgmr.msra.gmra.mxu1 %vm164_vm0, %v3015_v28  ;;  %1207 = vmatpush1.bf16.msra.mxu0 %v3020_v38 }
  0x54   :  { %1338 = vmatpush1.bf16.msra.mxu1 %v2635_v3  ;;  %694 = vmatprep.mubr.bf16.mxu0 %v3969_v1  ;;  %v3050_v3 = vld [vmem:[%s3966_s0 + $0xc] sm:$0xff]  }
  0x55   :  { %969 = vmatprep.mubr.bf16.mxu1 %v3969_v1  ;;  %1208 = vmatprep.subr.bf16.mxu0 %v3025_v47 }
  0x56   :  { %1339 = vmatprep.subr.bf16.mxu1 %v2646_v5  ;;  %v3069_v5 = vld [vmem:[%s3965_s1 + $0x1a4] ss:$8 sps:$4 sm:$0xff]  }
  0x57   :  { %1209 = vmatpush1.bf16.msra.mxu0 %v3036_v56 }
  0x58   :  { %1340 = vmatpush1.bf16.msra.mxu1 %v2658_v7  ;;  %1210 = vmatprep.subr.bf16.mxu0 %v3043_v59  ;;  %v3082_v7 = vld [vmem:[%s3965_s1 + $0x1a0] ss:$8 sps:$4 sm:$0xff]  }
  0x59   :  { %1341 = vmatprep.subr.bf16.mxu1 %v2670_v9  ;;  %v3089_v9 = vld [vmem:[%s3965_s1 + $0x194] ss:$8 sps:$4 sm:$0xff]  }
  0x5a   :  { %2271 = vmatmul.mubr.msk.bf16.gmra.mxu0 %vm164_vm0, %v3050_v3 }
  0x5b   :  { %2323 = vmatmul.mubr.msk.bf16.gmra.mxu1 %vm164_vm0, %v3055_v61  ;;  %704 = vmatprep.mubr.bf16.mxu0 %v3969_v1 }
  0x5c   :  { %979 = vmatprep.mubr.bf16.mxu1 %v3969_v1  ;;  %1211 = vmatpush1.bf16.msra.mxu0 %v3062_v63  ;;  %v3094_v1 = vld [vmem:[%s3966_s0 + $0x14] sm:$0xff]  }
  0x5d   :  { %1342 = vmatpush1.bf16.msra.mxu1 %v2680_v11  ;;  %1212 = vmatprep.subr.bf16.mxu0 %v3069_v5  ;;  %v3099_v11 = vld [vmem:[%s3966_s0 + $0x54] sm:$0xff]  }
  0x5e   :  { %1343 = vmatprep.subr.bf16.mxu1 %v2692_v13  ;;  %v3106_v13 = vld [vmem:[%s3965_s1 + $0x190] ss:$8 sps:$4 sm:$0xff]  }
  0x60   :  { %1213 = vmatpush1.bf16.msra.mxu0 %v3082_v7 }
  0x61   :  { %1344 = vmatpush1.bf16.msra.mxu1 %v2704_v15  ;;  %1214 = vmatprep.subr.bf16.mxu0 %v3089_v9  ;;  %v3980_v15 = vmov 0  }
  0x62   :  { %1345 = vmatprep.subr.bf16.mxu1 %v2716_v17  ;;  %2272 = vmatmul.mubr.msk.bf16.gmra.mxu0 %vm164_vm0, %v3094_v1  ;;  %v3126_v17 = vld [vmem:[%s3965_s1 + $0x180] ss:$8 sps:$4 sm:$0xff]  }
  0x63   :  { %2324 = vmatmul.mubr.msk.bf16.gmra.mxu1 %vm164_vm0, %v3099_v11  ;;  %714 = vmatprep.mubr.bf16.mxu0 %v3980_v15 }
  0x64   :  { %989 = vmatprep.mubr.bf16.mxu1 %v3980_v15  ;;  %1215 = vmatpush1.bf16.msra.mxu0 %v3106_v13 }
  0x65   :  { %1346 = vmatpush1.bf16.msra.mxu1 %v2728_v19  ;;  %1216 = vmatprep.subr.bf16.mxu0 %v3113_v62  ;;  %v3153_v19 = vld [vmem:[%s3966_s0 + $0x24] sm:$0xff]  }
  0x66   :  { %1347 = vmatprep.subr.bf16.mxu1 %v2740_v21  ;;  %v3169_v21 = vld [vmem:[%s3966_s0 + $0x2c] sm:$0xff]  }
  0x68   :  { %1217 = vmatpush1.bf16.msra.mxu0 %v3126_v17 }
  0x69   :  { %1348 = vmatpush1.bf16.msra.mxu1 %v2752_v23  ;;  %1440 = vmatprep.subr.bf16.mxu0 %v2629_v2  ;;  %v3158_v2 = vld [vmem:[%s3966_s0 + $0x64] sm:$0xff]   ;;  %v3174_v23 = vld [vmem:[%s3966_s0 + $0x6c] sm:$0xff]  }
  0x6a   :  { %1543 = vmatprep.subr.bf16.mxu1 %v2764_v25  ;;  %2273 = vmatmul.mubr.msk.bf16.gmra.mxu0 %vm164_vm0, %v3133_v60  ;;  %3981 = vst [vmem:[#allocation5_spill] sm:$0xff] %v3158_v2  ;;  %3982 = vst [vmem:[#allocation6_spill] sm:$0xff] %v3174_v23  ;;  %v2582_v25 = vld [vmem:[%s3966_s0 + $0x34] sm:$0xff]  }
  0x6b   :  { %2325 = vmatmul.mubr.msk.bf16.gmra.mxu1 %vm164_vm0, %v3138_v58  ;;  %724 = vmatprep.mubr.bf16.mxu0 %v3980_v15 }
  0x6c   :  { %999 = vmatprep.mubr.bf16.mxu1 %v3980_v15 }
  0x72   :  { %2274 = vmatmul.mubr.msk.bf16.gmra.mxu0 %vm164_vm0, %v3153_v19 }
  0x73   :  { %2326 = vmatmul.mubr.msk.bf16.gmra.mxu1 %vm164_vm0, %v3158_v2  ;;  %734 = vmatprep.mubr.bf16.mxu0 %v3980_v15  ;;  %v3188_v2 = vld [vmem:[%s3966_s0 + $0x74] sm:$0xff]  }
  0x74   :  { %1009 = vmatprep.mubr.bf16.mxu1 %v3980_v15  ;;  %3983 = vst [vmem:[#allocation7_spill] sm:$0xff] %v3188_v2 }
  0x7a   :  { %2275 = vmatmul.mubr.msk.bf16.gmra.mxu0 %vm164_vm0, %v3169_v21 }
  0x7b   :  { %2327 = vmatmul.mubr.msk.bf16.gmra.mxu1 %vm164_vm0, %v3174_v23  ;;  %744 = vmatprep.mubr.bf16.mxu0 %v3980_v15  ;;  %v3198_v23 = vld [vmem:[%s3966_s0 + $0x8] sm:$0xff]  }
  0x7c   :  { %1019 = vmatprep.mubr.bf16.mxu1 %v3980_v15 }
  0x82   :  { %2276 = vmatmul.mubr.msk.bf16.gmra.mxu0 %vm164_vm0, %v2582_v25 }
  0x83   :  { %2328 = vmatmul.mubr.msk.bf16.gmra.mxu1 %vm164_vm0, %v3188_v2  ;;  %1234 = vmatprep.mubr.bf16.mxu0 %v3980_v15  ;;  %v3213_v2 = vld [vmem:[%s3966_s0 + $0x10] sm:$0xff]  }
  0x84   :  { %1365 = vmatprep.mubr.bf16.mxu1 %v3980_v15 }
  0x8a   :  { %2374 = vmatmul.mubr.msk.bf16.vlgmr.msra.gmra.mxu0 %vm164_vm0, %v3198_v23 }
  0x8b   :  { %2381 = vmatmul.mubr.msk.bf16.vlgmr.msra.gmra.mxu1 %vm164_vm0, %v3010_v0  ;;  %1441 = vmatpush1.bf16.msra.mxu0 %v2640_v4  ;;  %v3232_v4 = vld [vmem:[%s3966_s0 + $0x18] sm:$0xff]  }
  0x8c   :  { %1544 = vmatpush1.bf16.msra.mxu1 %v2784_v29  ;;  %1244 = vmatprep.mubr.bf16.mxu0 %v3980_v15 }
  0x8d   :  { %1375 = vmatprep.mubr.bf16.mxu1 %v3980_v15  ;;  %1442 = vmatprep.subr.bf16.mxu0 %v2653_v6  ;;  %v3251_v6 = vld [vmem:[%s3966_s0 + $0x20] sm:$0xff]  }
  0x8e   :  { %1545 = vmatprep.subr.bf16.mxu1 %v2798_v31 }
  0x8f   :  { %1443 = vmatpush1.bf16.msra.mxu0 %v2664_v8  ;;  %v3277_v8 = vld [vmem:[%s3966_s0 + $0x30] sm:$0xff]  }
  0x90   :  { %1546 = vmatpush1.bf16.msra.mxu1 %v2813_v33  ;;  %1444 = vmatprep.subr.bf16.mxu0 %v2675_v10  ;;  %v3288_v10 = vld [vmem:[%s3966_s0 + $0x38] sm:$0xff]  }
  0x91   :  { %1547 = vmatprep.subr.bf16.mxu1 %v2825_v35  ;;  %v3985_v35 = vld [vmem:[#allocation5_spill] sm:$0xff] }
  0x92   :  { %2375 = vmatmul.mubr.msk.bf16.gmra.mxu0 %vm164_vm0, %v3213_v2 }
  0x93   :  { %2382 = vmatmul.mubr.msk.bf16.gmra.mxu1 %vm164_vm0, %v3050_v3  ;;  %1254 = vmatprep.mubr.bf16.mxu0 %v3980_v15 }
  0x94   :  { %1385 = vmatprep.mubr.bf16.mxu1 %v3980_v15  ;;  %1445 = vmatpush1.bf16.msra.mxu0 %v2685_v12 }
  0x95   :  { %1548 = vmatpush1.bf16.msra.mxu1 %v2847_v39  ;;  %1446 = vmatprep.subr.bf16.mxu0 %v2699_v14 }
  0x96   :  { %1549 = vmatprep.subr.bf16.mxu1 %v2859_v41 }
  0x98   :  { %1447 = vmatpush1.bf16.msra.mxu0 %v2711_v16 }
  0x99   :  { %1550 = vmatpush1.bf16.msra.mxu1 %v2881_v44  ;;  %1448 = vmatprep.subr.bf16.mxu0 %v2723_v18 }
  0x9a   :  { %1551 = vmatprep.subr.bf16.mxu1 %v2893_v46  ;;  %2376 = vmatmul.mubr.msk.bf16.gmra.mxu0 %vm164_vm0, %v3232_v4 }
  0x9b   :  { %2383 = vmatmul.mubr.msk.bf16.gmra.mxu1 %vm164_vm0, %v3094_v1  ;;  %1264 = vmatprep.mubr.bf16.mxu0 %v3980_v15  ;;  %v3266_v1 = vld [vmem:[%s3966_s0 + $0x28] sm:$0xff]  }
  0x9c   :  { %1395 = vmatprep.mubr.bf16.mxu1 %v3980_v15  ;;  %1449 = vmatpush1.bf16.msra.mxu0 %v2733_v20 }
  0x9d   :  { %1552 = vmatpush1.bf16.msra.mxu1 %v2901_v48  ;;  %1450 = vmatprep.subr.bf16.mxu0 %v2747_v22 }
  0x9e   :  { %1553 = vmatprep.subr.bf16.mxu1 %v2919_v51  ;;  %v3987_v51 = vld [vmem:[#allocation6_spill] sm:$0xff] }
  0xa0   :  { %1451 = vmatpush1.bf16.msra.mxu0 %v2759_v24 }
  0xa1   :  { %1554 = vmatpush1.bf16.msra.mxu1 %v2936_v53  ;;  %1674 = vmatprep.subr.bf16.mxu0 %v2771_v26 }
  0xa2   :  { %1876 = vmatprep.subr.bf16.mxu1 %v2958_v57  ;;  %2377 = vmatmul.mubr.msk.bf16.gmra.mxu0 %vm164_vm0, %v3251_v6 }
  0xa3   :  { %2384 = vmatmul.mubr.msk.bf16.gmra.mxu1 %vm164_vm0, %v3133_v60  ;;  %1274 = vmatprep.mubr.bf16.mxu0 %v3980_v15 }
  0xa4   :  { %1405 = vmatprep.mubr.bf16.mxu1 %v3980_v15 }
  0xaa   :  { %2378 = vmatmul.mubr.msk.bf16.gmra.mxu0 %vm164_vm0, %v3266_v1 }
  0xab   :  { %2385 = vmatmul.mubr.msk.bf16.gmra.mxu1 %vm164_vm0, %v3153_v19  ;;  %1284 = vmatprep.mubr.bf16.mxu0 %v3980_v15 }
  0xac   :  { %1415 = vmatprep.mubr.bf16.mxu1 %v3980_v15 }
  0xb2   :  { %2379 = vmatmul.mubr.msk.bf16.gmra.mxu0 %vm164_vm0, %v3277_v8 }
  0xb3   :  { %2386 = vmatmul.mubr.msk.bf16.gmra.mxu1 %vm164_vm0, %v3169_v21  ;;  %1294 = vmatprep.mubr.bf16.mxu0 %v3980_v15 }
  0xb4   :  { %1425 = vmatprep.mubr.bf16.mxu1 %v3980_v15 }
  0xba   :  { %2380 = vmatmul.mubr.msk.bf16.gmra.mxu0 %vm164_vm0, %v3288_v10 }
  0xbb   :  { %2387 = vmatmul.mubr.msk.bf16.gmra.mxu1 %vm164_vm0, %v2582_v25  ;;  %1468 = vmatprep.mubr.bf16.mxu0 %v3980_v15 }
  0xbc   :  { %1571 = vmatprep.mubr.bf16.mxu1 %v3980_v15 }
  0xc2   :  { %2388 = vmatmul.mubr.msk.bf16.vlgmr.msra.gmra.mxu0 %vm164_vm0, %v2776_v27 }
  0xc3   :  { %2395 = vmatmul.mubr.msk.bf16.vlgmr.msra.gmra.mxu1 %vm164_vm0, %v3015_v28  ;;  %1675 = vmatpush1.bf16.msra.mxu0 %v2791_v30 }
  0xc4   :  { %1877 = vmatpush1.bf16.msra.mxu1 %v3020_v38  ;;  %1478 = vmatprep.mubr.bf16.mxu0 %v3980_v15 }
  0xc5   :  { %1581 = vmatprep.mubr.bf16.mxu1 %v3980_v15  ;;  %1676 = vmatprep.subr.bf16.mxu0 %v2803_v32 }
  0xc6   :  { %1878 = vmatprep.subr.bf16.mxu1 %v3025_v47 }
  0xc7   :  { %1677 = vmatpush1.bf16.msra.mxu0 %v2818_v34  ;;  %v3984_v34 = vld [vmem:[#allocation2_spill] sm:$0xff] }
  0xc8   :  { %1879 = vmatpush1.bf16.msra.mxu1 %v3036_v56  ;;  %1678 = vmatprep.subr.bf16.mxu0 %v2830_v36  ;;  %v3988_v56 = vld [vmem:[#allocation4_spill] sm:$0xff] }
  0xc9   :  { %1880 = vmatprep.subr.bf16.mxu1 %v3043_v59  ;;  %v3989_v59 = vld [vmem:[#allocation7_spill] sm:$0xff] }
  0xca   :  { %2389 = vmatmul.mubr.msk.bf16.gmra.mxu0 %vm164_vm0, %v2835_v37 }
  0xcb   :  { %2396 = vmatmul.mubr.msk.bf16.gmra.mxu1 %vm164_vm0, %v3055_v61  ;;  %1488 = vmatprep.mubr.bf16.mxu0 %v3980_v15 }
  0xcc   :  { %1591 = vmatprep.mubr.bf16.mxu1 %v3980_v15  ;;  %1679 = vmatpush1.bf16.msra.mxu0 %v2853_v40 }
  0xcd   :  { %1881 = vmatpush1.bf16.msra.mxu1 %v3062_v63  ;;  %1680 = vmatprep.subr.bf16.mxu0 %v2864_v42 }
  0xce   :  { %1882 = vmatprep.subr.bf16.mxu1 %v3069_v5 }
  0xd0   :  { %1681 = vmatpush1.bf16.msra.mxu0 %v2886_v45 }
  0xd1   :  { %1883 = vmatpush1.bf16.msra.mxu1 %v3082_v7  ;;  %1682 = vmatprep.subr.bf16.mxu0 %v2908_v49 }
  0xd2   :  { %1884 = vmatprep.subr.bf16.mxu1 %v3089_v9  ;;  %2390 = vmatmul.mubr.msk.bf16.gmra.mxu0 %vm164_vm0, %v2874_v43 }
  0xd3   :  { %2397 = vmatmul.mubr.msk.bf16.gmra.mxu1 %vm164_vm0, %v3099_v11  ;;  %1498 = vmatprep.mubr.bf16.mxu0 %v3980_v15  ;;  %v2591_v11 = vld [vmem:[%s3966_s0 + $0x48] sm:$0xff]  }
  0xd4   :  { %1601 = vmatprep.mubr.bf16.mxu1 %v3980_v15  ;;  %1683 = vmatpush1.bf16.msra.mxu0 %v2914_v50  ;;  %v3986_v50 = vld [vmem:[#allocation3_spill] sm:$0xff] }
  0xd5   :  { %1885 = vmatpush1.bf16.msra.mxu1 %v3106_v13  ;;  %1684 = vmatprep.subr.bf16.mxu0 %v2941_v54 }
  0xd6   :  { %1886 = vmatprep.subr.bf16.mxu1 %v3113_v62 }
  0xd8   :  { %1685 = vmatpush1.bf16.msra.mxu0 %v2948_v55 }
  0xd9   :  { %1887 = vmatpush1.bf16.msra.mxu1 %v3126_v17 }
  0xda   :  { %v220_v12 = vpop.f32.mrf.mxu0  ;;  %2391 = vmatmul.mubr.msk.bf16.gmra.mxu0 %vm164_vm0, %v2929_v52 }
  0xdb   :  { %v439_v14 = vpop.f32.mrf.mxu1  ;;  %2398 = vmatmul.mubr.msk.bf16.gmra.mxu1 %vm164_vm0, %v3138_v58  ;;  %1508 = vmatprep.mubr.bf16.mxu0 %v3980_v15 }
  0xdc   :  { %v3339_v16 = vadd.f32 %v439_v14, %v220_v12  ;;  %1611 = vmatprep.mubr.bf16.mxu1 %v3980_v15  ;;  %v222_v18 = vpop.f32.mrf.mxu0 }
  0xdd   :  { %v441_v20 = vpop.f32.mrf.mxu1 }
  0xde   :  { %v3343_v22 = vadd.f32 %v441_v20, %v222_v18  ;;  %v224_v24 = vpop.f32.mrf.mxu0 }
  0xdf   :  { %v443_v26 = vpop.f32.mrf.mxu1 }
  0xe0   :  { %v3345_v27 = vadd.f32 %v443_v26, %v224_v24  ;;  %v226_v29 = vpop.f32.mrf.mxu0 }
  0xe1   :  { %v445_v30 = vpop.f32.mrf.mxu1 }
  0xe2   :  { %v3347_v31 = vadd.f32 %v445_v30, %v226_v29  ;;  %v230_v32 = vpop.f32.mrf.mxu0  ;;  %2392 = vmatmul.mubr.msk.bf16.gmra.mxu0 %vm164_vm0, %v3984_v34  ;;  %v2592_v30 = vld [vmem:[%s3966_s0 + $0x50] sm:$0xff]  }
  0xe3   :  { %v449_v33 = vpop.f32.mrf.mxu1  ;;  %2399 = vmatmul.mubr.msk.bf16.gmra.mxu1 %vm164_vm0, %v3985_v35  ;;  %1518 = vmatprep.mubr.bf16.mxu0 %v3980_v15 }
  0xe4   :  { %v3353_v36 = vadd.f32 %v449_v33, %v230_v32  ;;  %1621 = vmatprep.mubr.bf16.mxu1 %v3980_v15  ;;  %v232_v37 = vpop.f32.mrf.mxu0 }
  0xe5   :  { %v451_v39 = vpop.f32.mrf.mxu1 }
  0xe6   :  { %v3357_v40 = vadd.f32 %v451_v39, %v232_v37  ;;  %v234_v41 = vpop.f32.mrf.mxu0 }
  0xe7   :  { %v453_v42 = vpop.f32.mrf.mxu1 }
  0xe8   :  { %v3359_v43 = vadd.f32 %v453_v42, %v234_v41  ;;  %v236_v44 = vpop.f32.mrf.mxu0 }
  0xe9   :  { %v455_v45 = vpop.f32.mrf.mxu1 }
  0xea   :  { %v3361_v46 = vadd.f32 %v455_v45, %v236_v44  ;;  %v240_v48 = vpop.f32.mrf.mxu0  ;;  %2393 = vmatmul.mubr.msk.bf16.gmra.mxu0 %vm164_vm0, %v3986_v50 }
  0xeb   :  { %v459_v49 = vpop.f32.mrf.mxu1  ;;  %2400 = vmatmul.mubr.msk.bf16.gmra.mxu1 %vm164_vm0, %v3987_v51  ;;  %1528 = vmatprep.mubr.bf16.mxu0 %v3980_v15 }
  0xec   :  { %v3367_v52 = vadd.f32 %v459_v49, %v240_v48  ;;  %1631 = vmatprep.mubr.bf16.mxu1 %v3980_v15  ;;  %v242_v53 = vpop.f32.mrf.mxu0  ;;  %v2593_v49 = vld [vmem:[%s3966_s0 + $0x58] sm:$0xff]  }
  0xed   :  { %v461_v54 = vpop.f32.mrf.mxu1 }
  0xee   :  { %v3371_v55 = vadd.f32 %v461_v54, %v242_v53  ;;  %v244_v57 = vpop.f32.mrf.mxu0 }
  0xef   :  { %v463_v58 = vpop.f32.mrf.mxu1 }
  0xf0   :  { %v3373_v60 = vadd.f32 %v463_v58, %v244_v57  ;;  %v246_v62 = vpop.f32.mrf.mxu0 }
  0xf1   :  { %v465_v0 = vpop.f32.mrf.mxu1 }
  0xf2   :  { %v3375_v28 = vadd.f32 %v465_v0, %v246_v62  ;;  %v250_v38 = vpop.f32.mrf.mxu0  ;;  %2394 = vmatmul.mubr.msk.bf16.gmra.mxu0 %vm164_vm0, %v3988_v56 }
  0xf3   :  { %v469_v47 = vpop.f32.mrf.mxu1  ;;  %2401 = vmatmul.mubr.msk.bf16.gmra.mxu1 %vm164_vm0, %v3989_v59  ;;  %1702 = vmatprep.mubr.bf16.mxu0 %v3980_v15  ;;  %v2594_v59 = vld [vmem:[%s3966_s0 + $0x60] sm:$0xff]  }
  0xf4   :  { %v3381_v3 = vadd.f32 %v469_v47, %v250_v38  ;;  %1904 = vmatprep.mubr.bf16.mxu1 %v3980_v15  ;;  %v252_v61 = vpop.f32.mrf.mxu0 }
  0xf5   :  { %v471_v63 = vpop.f32.mrf.mxu1 }
  0xf6   :  { %v3385_v5 = vadd.f32 %v471_v63, %v252_v61  ;;  %v254_v7 = vpop.f32.mrf.mxu0 }
  0xf7   :  { %v473_v9 = vpop.f32.mrf.mxu1 }
  0xf8   :  { %v3390_v13 = vadd.f32 %v473_v9, %v254_v7  ;;  %v256_v17 = vpop.f32.mrf.mxu0 }
  0xf9   :  { %v475_v19 = vpop.f32.mrf.mxu1 }
  0xfa   :  { %v3392_v21 = vadd.f32 %v475_v19, %v256_v17  ;;  %v260_v25 = vpop.f32.mrf.mxu0  ;;  %2402 = vmatmul.mubr.msk.bf16.vlgmr.msra.gmra.mxu0 %vm164_vm0, %v3198_v23 }
  0xfb   :  { %v479_v12 = vpop.f32.mrf.mxu1  ;;  %2430 = vmatmul.mubr.msk.bf16.vlgmr.msra.gmra.mxu1 %vm164_vm0, %v2591_v11  ;;  %1712 = vmatprep.mubr.bf16.mxu0 %v3980_v15 }
  0xfc   :  { %v3397_v14 = vadd.f32 %v479_v12, %v260_v25  ;;  %1914 = vmatprep.mubr.bf16.mxu1 %v3980_v15  ;;  %v262_v18 = vpop.f32.mrf.mxu0 }
  0xfd   :  { %v481_v20 = vpop.f32.mrf.mxu1 }
  0xfe   :  { %v3401_v24 = vadd.f32 %v481_v20, %v262_v18  ;;  %v264_v26 = vpop.f32.mrf.mxu0 }
  0xff   :  { %v483_v29 = vpop.f32.mrf.mxu1 }
 0x100   :  { %v3406_v32 = vadd.f32 %v483_v29, %v264_v26  ;;  %v266_v23 = vpop.f32.mrf.mxu0 }
 0x101   :  { %v485_v33 = vpop.f32.mrf.mxu1 }
 0x102   :  { %v3408_v34 = vadd.f32 %v485_v33, %v266_v23  ;;  %v270_v35 = vpop.f32.mrf.mxu0  ;;  %2403 = vmatmul.mubr.msk.bf16.gmra.mxu0 %vm164_vm0, %v3213_v2 }
 0x103   :  { %v489_v37 = vpop.f32.mrf.mxu1  ;;  %2431 = vmatmul.mubr.msk.bf16.gmra.mxu1 %vm164_vm0, %v2592_v30  ;;  %1722 = vmatprep.mubr.bf16.mxu0 %v3980_v15 }
 0x104   :  { %v3413_v39 = vadd.f32 %v489_v37, %v270_v35  ;;  %1924 = vmatprep.mubr.bf16.mxu1 %v3980_v15  ;;  %v272_v41 = vpop.f32.mrf.mxu0 }
 0x105   :  { %v491_v42 = vpop.f32.mrf.mxu1 }
 0x106   :  { %v3417_v44 = vadd.f32 %v491_v42, %v272_v41  ;;  %v274_v45 = vpop.f32.mrf.mxu0 }
 0x107   :  { %v493_v48 = vpop.f32.mrf.mxu1 }
 0x108   :  { %v3422_v50 = vadd.f32 %v493_v48, %v274_v45  ;;  %v276_v2 = vpop.f32.mrf.mxu0 }
 0x109   :  { %v495_v51 = vpop.f32.mrf.mxu1 }
 0x10a   :  { %v3424_v53 = vadd.f32 %v495_v51, %v276_v2  ;;  %v280_v54 = vpop.f32.mrf.mxu0  ;;  %2404 = vmatmul.mubr.msk.bf16.gmra.mxu0 %vm164_vm0, %v3232_v4 }
 0x10b   :  { %v499_v57 = vpop.f32.mrf.mxu1  ;;  %2432 = vmatmul.mubr.msk.bf16.gmra.mxu1 %vm164_vm0, %v2593_v49  ;;  %1732 = vmatprep.mubr.bf16.mxu0 %v3980_v15 }
 0x10c   :  { %v3429_v58 = vadd.f32 %v499_v57, %v280_v54  ;;  %1934 = vmatprep.mubr.bf16.mxu1 %v3980_v15  ;;  %v282_v62 = vpop.f32.mrf.mxu0 }
 0x10d   :  { %v501_v0 = vpop.f32.mrf.mxu1 }
 0x10e   :  { %v3433_v38 = vadd.f32 %v501_v0, %v282_v62  ;;  %v284_v47 = vpop.f32.mrf.mxu0 }
 0x10f   :  { %v503_v56 = vpop.f32.mrf.mxu1 }
 0x110   :  { %v3438_v61 = vadd.f32 %v503_v56, %v284_v47  ;;  %v286_v4 = vpop.f32.mrf.mxu0 }
 0x111   :  { %v505_v63 = vpop.f32.mrf.mxu1 }
 0x112   :  { %v3440_v7 = vadd.f32 %v505_v63, %v286_v4  ;;  %v686_v9 = vpop.f32.mrf.mxu0  ;;  %2405 = vmatmul.mubr.msk.bf16.gmra.mxu0 %vm164_vm0, %v3251_v6  ;;  %v2595_v6 = vld [vmem:[%s3966_s0 + $0x68] sm:$0xff]  }
 0x113   :  { %v961_v11 = vpop.f32.mrf.mxu1  ;;  %2433 = vmatmul.mubr.msk.bf16.gmra.mxu1 %vm164_vm0, %v2594_v59  ;;  %v755_v17 = vadd.f32 %v686_v9, %v3339_v16  ;;  %1742 = vmatprep.mubr.bf16.mxu0 %v3980_v15 }
 0x114   :  { %1944 = vmatprep.mubr.bf16.mxu1 %v3980_v15  ;;  %v688_v19 = vpop.f32.mrf.mxu0 }
 0x115   :  { %v963_v25 = vpop.f32.mrf.mxu1  ;;  %v3448_v12 = vadd.f32 %v961_v11, %v755_v17  ;;  %v756_v18 = vadd.f32 %v688_v19, %v3343_v22 }
 0x116   :  { %v690_v20 = vpop.f32.mrf.mxu0 }
 0x117   :  { %v965_v26 = vpop.f32.mrf.mxu1  ;;  %v3454_v29 = vadd.f32 %v963_v25, %v756_v18  ;;  %v757_v16 = vadd.f32 %v690_v20, %v3345_v27 }
 0x118   :  { %v692_v30 = vpop.f32.mrf.mxu0 }
 0x119   :  { %v967_v23 = vpop.f32.mrf.mxu1  ;;  %v3457_v33 = vadd.f32 %v965_v26, %v757_v16  ;;  %v758_v35 = vadd.f32 %v692_v30, %v3347_v31 }
 0x11a   :  { %v696_v37 = vpop.f32.mrf.mxu0  ;;  %2406 = vmatmul.mubr.msk.bf16.gmra.mxu0 %vm164_vm0, %v3266_v1  ;;  %v2596_v1 = vld [vmem:[%s3966_s0 + $0x70] sm:$0xff]  }
 0x11b   :  { %v971_v41 = vpop.f32.mrf.mxu1  ;;  %2434 = vmatmul.mubr.msk.bf16.gmra.mxu1 %vm164_vm0, %v2595_v6  ;;  %v3463_v22 = vadd.f32 %v967_v23, %v758_v35  ;;  %v759_v42 = vadd.f32 %v696_v37, %v3353_v36  ;;  %1752 = vmatprep.mubr.bf16.mxu0 %v3980_v15 }
 0x11c   :  { %1954 = vmatprep.mubr.bf16.mxu1 %v3980_v15  ;;  %v698_v27 = vpop.f32.mrf.mxu0 }
 0x11d   :  { %v973_v45 = vpop.f32.mrf.mxu1  ;;  %v3468_v48 = vadd.f32 %v971_v41, %v759_v42  ;;  %v760_v31 = vadd.f32 %v698_v27, %v3357_v40 }
 0x11e   :  { %v700_v49 = vpop.f32.mrf.mxu0 }
 0x11f   :  { %v975_v2 = vpop.f32.mrf.mxu1  ;;  %v3474_v51 = vadd.f32 %v973_v45, %v760_v31  ;;  %v761_v36 = vadd.f32 %v700_v49, %v3359_v43 }
 0x120   :  { %v702_v54 = vpop.f32.mrf.mxu0 }
 0x121   :  { %v977_v57 = vpop.f32.mrf.mxu1  ;;  %v3477_v62 = vadd.f32 %v975_v2, %v761_v36  ;;  %v762_v0 = vadd.f32 %v702_v54, %v3361_v46 }
 0x122   :  { %v706_v47 = vpop.f32.mrf.mxu0  ;;  %2407 = vmatmul.mubr.msk.bf16.gmra.mxu0 %vm164_vm0, %v3277_v8  ;;  %v2597_v8 = vld [vmem:[%s3966_s0 + $0x78] sm:$0xff]  }
 0x123   :  { %v981_v56 = vpop.f32.mrf.mxu1  ;;  %2435 = vmatmul.mubr.msk.bf16.gmra.mxu1 %vm164_vm0, %v2596_v1  ;;  %v3483_v40 = vadd.f32 %v977_v57, %v762_v0  ;;  %v763_v59 = vadd.f32 %v706_v47, %v3367_v52  ;;  %1762 = vmatprep.mubr.bf16.mxu0 %v3980_v15 }
 0x124   :  { %1964 = vmatprep.mubr.bf16.mxu1 %v3980_v15  ;;  %v708_v43 = vpop.f32.mrf.mxu0 }
 0x125   :  { %v983_v4 = vpop.f32.mrf.mxu1  ;;  %v3488_v63 = vadd.f32 %v981_v56, %v763_v59  ;;  %v764_v46 = vadd.f32 %v708_v43, %v3371_v55 }
 0x126   :  { %v710_v9 = vpop.f32.mrf.mxu0 }
 0x127   :  { %v985_v11 = vpop.f32.mrf.mxu1  ;;  %v3494_v17 = vadd.f32 %v983_v4, %v764_v46  ;;  %v765_v52 = vadd.f32 %v710_v9, %v3373_v60 }
 0x128   :  { %v712_v19 = vpop.f32.mrf.mxu0 }
 0x129   :  { %v987_v25 = vpop.f32.mrf.mxu1  ;;  %v3497_v18 = vadd.f32 %v985_v11, %v765_v52  ;;  %v766_v15 = vadd.f32 %v712_v19, %v3375_v28 }
 0x12a   :  { %v716_v20 = vpop.f32.mrf.mxu0  ;;  %2408 = vmatmul.mubr.msk.bf16.gmra.mxu0 %vm164_vm0, %v3288_v10 }
 0x12b   :  { %v991_v26 = vpop.f32.mrf.mxu1  ;;  %2436 = vmatmul.mubr.msk.bf16.gmra.mxu1 %vm164_vm0, %v2597_v8  ;;  %v3503_v55 = vadd.f32 %v987_v25, %v766_v15  ;;  %v767_v6 = vadd.f32 %v716_v20, %v3381_v3 }
 0x12c   :  { %v718_v16 = vpop.f32.mrf.mxu0 }
 0x12d   :  { %v993_v30 = vpop.f32.mrf.mxu1  ;;  %v3506_v60 = vadd.f32 %v991_v26, %v767_v6  ;;  %v768_v23 = vadd.f32 %v718_v16, %v3385_v5 }
 0x12e   :  { %v720_v35 = vpop.f32.mrf.mxu0 }
 0x12f   :  { %v995_v37 = vpop.f32.mrf.mxu1  ;;  %v3509_v28 = vadd.f32 %v993_v30, %v768_v23  ;;  %v769_v41 = vadd.f32 %v720_v35, %v3390_v13 }
 0x130   :  { %v722_v42 = vpop.f32.mrf.mxu0 }
 0x131   :  { %v997_v10 = vpop.f32.mrf.mxu1  ;;  %v3512_v27 = vadd.f32 %v995_v37, %v769_v41  ;;  %v770_v45 = vadd.f32 %v722_v42, %v3392_v21 }
 0x132   :  { %v726_v31 = vpop.f32.mrf.mxu0 }
 0x133   :  { %v1001_v3 = vpop.f32.mrf.mxu1  ;;  %v3515_v49 = vadd.f32 %v997_v10, %v770_v45  ;;  %v771_v2 = vadd.f32 %v726_v31, %v3397_v14 }
 0x134   :  { %v728_v1 = vpop.f32.mrf.mxu0 }
 0x135   :  { %v1003_v5 = vpop.f32.mrf.mxu1  ;;  %v3518_v36 = vadd.f32 %v1001_v3, %v771_v2  ;;  %v772_v54 = vadd.f32 %v728_v1, %v3401_v24 }
 0x136   :  { %v730_v57 = vpop.f32.mrf.mxu0 }
 0x137   :  { %v1005_v13 = vpop.f32.mrf.mxu1  ;;  %v3521_v0 = vadd.f32 %v1003_v5, %v772_v54  ;;  %v773_v47 = vadd.f32 %v730_v57, %v3406_v32 }
 0x138   :  { %v732_v56 = vpop.f32.mrf.mxu0 }
 0x139   :  { %v1007_v21 = vpop.f32.mrf.mxu1  ;;  %v3524_v59 = vadd.f32 %v1005_v13, %v773_v47  ;;  %v774_v43 = vadd.f32 %v732_v56, %v3408_v34 }
 0x13a   :  { %v736_v4 = vpop.f32.mrf.mxu0 }
 0x13b   :  { %v1011_v14 = vpop.f32.mrf.mxu1  ;;  %v3527_v46 = vadd.f32 %v1007_v21, %v774_v43  ;;  %v775_v9 = vadd.f32 %v736_v4, %v3413_v39 }
 0x13c   :  { %v738_v11 = vpop.f32.mrf.mxu0 }
 0x13d   :  { %v1013_v24 = vpop.f32.mrf.mxu1  ;;  %v3530_v8 = vadd.f32 %v1011_v14, %v775_v9  ;;  %v776_v52 = vadd.f32 %v738_v11, %v3417_v44 }
 0x13e   :  { %v740_v19 = vpop.f32.mrf.mxu0 }
 0x13f   :  { %v1015_v32 = vpop.f32.mrf.mxu1  ;;  %v3533_v25 = vadd.f32 %v1013_v24, %v776_v52  ;;  %v777_v15 = vadd.f32 %v740_v19, %v3422_v50 }
 0x140   :  { %v742_v20 = vpop.f32.mrf.mxu0 }
 0x141   :  { %v1017_v34 = vpop.f32.mrf.mxu1  ;;  %v3536_v26 = vadd.f32 %v1015_v32, %v777_v15  ;;  %v778_v6 = vadd.f32 %v742_v20, %v3424_v53 }
 0x142   :  { %v746_v16 = vpop.f32.mrf.mxu0 }
 0x143   :  { %v1021_v39 = vpop.f32.mrf.mxu1  ;;  %v3539_v30 = vadd.f32 %v1017_v34, %v778_v6  ;;  %v779_v23 = vadd.f32 %v746_v16, %v3429_v58 }
 0x144   :  { %v748_v35 = vpop.f32.mrf.mxu0 }
 0x145   :  { %v1023_v44 = vpop.f32.mrf.mxu1  ;;  %v3542_v37 = vadd.f32 %v1021_v39, %v779_v23  ;;  %v780_v41 = vadd.f32 %v748_v35, %v3433_v38 }
 0x146   :  { %v750_v42 = vpop.f32.mrf.mxu0 }
 0x147   :  { %v1025_v50 = vpop.f32.mrf.mxu1  ;;  %v3545_v10 = vadd.f32 %v1023_v44, %v780_v41  ;;  %v781_v45 = vadd.f32 %v750_v42, %v3438_v61 }
 0x148   :  { %v752_v31 = vpop.f32.mrf.mxu0 }
 0x149   :  { %v1027_v53 = vpop.f32.mrf.mxu1  ;;  %v3548_v3 = vadd.f32 %v1025_v50, %v781_v45  ;;  %v782_v2 = vadd.f32 %v752_v31, %v3440_v7 }
 0x14a   :  { %v1236_v1 = vpop.f32.mrf.mxu0 }
 0x14b   :  { %v3551_v58 = vpop.f32.mrf.mxu1  ;;  %v3553_v5 = vadd.f32 %v1027_v53, %v782_v2  ;;  %v3556_v54 = vadd.f32 %v1236_v1, %v3448_v12 }
 0x14c   :  { %v1238_v38 = vpop.f32.mrf.mxu0 }
 0x14d   :  { %v3558_v57 = vpop.f32.mrf.mxu1  ;;  %v3561_v13 = vadd.f32 %v1238_v38, %v3454_v29 }
 0x14e   :  { %v1240_v61 = vpop.f32.mrf.mxu0 }
 0x14f   :  { %v3563_v47 = vpop.f32.mrf.mxu1  ;;  %v3566_v56 = vadd.f32 %v1240_v61, %v3457_v33 }
 0x150   :  { %v1242_v7 = vpop.f32.mrf.mxu0 }
 0x151   :  { %v3568_v21 = vpop.f32.mrf.mxu1  ;;  %v3571_v43 = vadd.f32 %v1242_v7, %v3463_v22 }
 0x152   :  { %v1246_v12 = vpop.f32.mrf.mxu0 }
 0x153   :  { %v3573_v4 = vpop.f32.mrf.mxu1  ;;  %v3576_v14 = vadd.f32 %v1246_v12, %v3468_v48 }
 0x154   :  { %v1248_v29 = vpop.f32.mrf.mxu0 }
 0x155   :  { %v3578_v9 = vpop.f32.mrf.mxu1  ;;  %v3581_v11 = vadd.f32 %v1248_v29, %v3474_v51 }
 0x156   :  { %v1250_v33 = vpop.f32.mrf.mxu0 }
 0x157   :  { %v3583_v24 = vpop.f32.mrf.mxu1  ;;  %v3586_v52 = vadd.f32 %v1250_v33, %v3477_v62 }
 0x158   :  { %v1252_v22 = vpop.f32.mrf.mxu0 }
 0x159   :  { %v3588_v19 = vpop.f32.mrf.mxu1  ;;  %v3591_v32 = vadd.f32 %v1252_v22, %v3483_v40 }
 0x15a   :  { %v1256_v48 = vpop.f32.mrf.mxu0 }
 0x15b   :  { %v3593_v15 = vpop.f32.mrf.mxu1  ;;  %v3596_v20 = vadd.f32 %v1256_v48, %v3488_v63 }
 0x15c   :  { %v1258_v51 = vpop.f32.mrf.mxu0 }
 0x15d   :  { %3990 = vst [vmem:[#allocation2_spill] sm:$0xff] %v3596_v20  ;;  %v3598_v34 = vpop.f32.mrf.mxu1  ;;  %v3601_v6 = vadd.f32 %v1258_v51, %v3494_v17 }
 0x15e   :  { %v1260_v62 = vpop.f32.mrf.mxu0 }
 0x15f   :  { %3991 = vst [vmem:[#allocation5_spill] sm:$0xff] %v3601_v6  ;;  %v3603_v16 = vpop.f32.mrf.mxu1  ;;  %v3606_v39 = vadd.f32 %v1260_v62, %v3497_v18 }
 0x160   :  { %v1262_v40 = vpop.f32.mrf.mxu0 }
 0x161   :  { %3992 = vst [vmem:[#allocation3_spill] sm:$0xff] %v3606_v39  ;;  %v3608_v23 = vpop.f32.mrf.mxu1  ;;  %v3611_v35 = vadd.f32 %v1262_v40, %v3503_v55 }
 0x162   :  { %v1266_v63 = vpop.f32.mrf.mxu0 }
 0x163   :  { %3993 = vst [vmem:[#allocation6_spill] sm:$0xff] %v3611_v35  ;;  %v3613_v44 = vpop.f32.mrf.mxu1  ;;  %v3616_v41 = vadd.f32 %v1266_v63, %v3506_v60 }
 0x164   :  { %v1268_v17 = vpop.f32.mrf.mxu0 }
 0x165   :  { %3994 = vst [vmem:[#allocation4_spill] sm:$0xff] %v3616_v41  ;;  %v3618_v42 = vpop.f32.mrf.mxu1  ;;  %v3621_v50 = vadd.f32 %v1268_v17, %v3509_v28 }
 0x166   :  { %v1270_v18 = vpop.f32.mrf.mxu0 }
 0x167   :  { %3995 = vst [vmem:[#allocation7_spill] sm:$0xff] %v3621_v50  ;;  %v3623_v45 = vpop.f32.mrf.mxu1  ;;  %v3626_v31 = vadd.f32 %v1270_v18, %v3512_v27 }
 0x168   :  { %v1272_v55 = vpop.f32.mrf.mxu0 }
 0x169   :  { %3996 = vst [vmem:[#allocation8_spill] sm:$0xff] %v3626_v31  ;;  %v3628_v53 = vpop.f32.mrf.mxu1  ;;  %v3631_v2 = vadd.f32 %v1272_v55, %v3515_v49 }
 0x16a   :  { %3997 = vst [vmem:[#allocation9_spill] sm:$0xff] %v3628_v53  ;;  %v1276_v60 = vpop.f32.mrf.mxu0 }
 0x16b   :  { %3998 = vst [vmem:[#allocation10_spill] sm:$0xff] %v3631_v2  ;;  %v3633_v1 = vpop.f32.mrf.mxu1  ;;  %v3636_v38 = vadd.f32 %v1276_v60, %v3518_v36 }
 0x16c   :  { %3999 = vst [vmem:[#allocation11_spill] sm:$0xff] %v3633_v1  ;;  %v1278_v28 = vpop.f32.mrf.mxu0 }
 0x16d   :  { %4000 = vst [vmem:[#allocation12_spill] sm:$0xff] %v3636_v38  ;;  %v3638_v61 = vpop.f32.mrf.mxu1  ;;  %v3641_v7 = vadd.f32 %v1278_v28, %v3521_v0 }
 0x16e   :  { %4001 = vst [vmem:[#allocation13_spill] sm:$0xff] %v3638_v61  ;;  %v1280_v27 = vpop.f32.mrf.mxu0 }
 0x16f   :  { %4002 = vst [vmem:[#allocation14_spill] sm:$0xff] %v3641_v7  ;;  %v3643_v12 = vpop.f32.mrf.mxu1  ;;  %v3646_v29 = vadd.f32 %v1280_v27, %v3524_v59 }
 0x170   :  { %4003 = vst [vmem:[#allocation15_spill] sm:$0xff] %v3643_v12  ;;  %v1282_v49 = vpop.f32.mrf.mxu0 }
 0x171   :  { %4004 = vst [vmem:[#allocation16_spill] sm:$0xff] %v3646_v29  ;;  %v3648_v33 = vpop.f32.mrf.mxu1  ;;  %v3651_v22 = vadd.f32 %v1282_v49, %v3527_v46 }
 0x172   :  { %4005 = vst [vmem:[#allocation17_spill] sm:$0xff] %v3648_v33  ;;  %v1286_v36 = vpop.f32.mrf.mxu0 }
 0x173   :  { %4006 = vst [vmem:[#allocation18_spill] sm:$0xff] %v3651_v22  ;;  %v3653_v48 = vpop.f32.mrf.mxu1  ;;  %v3656_v51 = vadd.f32 %v1286_v36, %v3530_v8 }
 0x174   :  { %4007 = vst [vmem:[#allocation19_spill] sm:$0xff] %v3653_v48  ;;  %v1288_v0 = vpop.f32.mrf.mxu0 }
 0x175   :  { %4008 = vst [vmem:[#allocation20_spill] sm:$0xff] %v3656_v51  ;;  %v3658_v62 = vpop.f32.mrf.mxu1  ;;  %v3661_v40 = vadd.f32 %v1288_v0, %v3533_v25 }
 0x176   :  { %4009 = vst [vmem:[#allocation21_spill] sm:$0xff] %v3658_v62  ;;  %v1290_v59 = vpop.f32.mrf.mxu0 }
 0x177   :  { %4010 = vst [vmem:[#allocation22_spill] sm:$0xff] %v3661_v40  ;;  %v3663_v63 = vpop.f32.mrf.mxu1  ;;  %v3666_v17 = vadd.f32 %v1290_v59, %v3536_v26 }
 0x178   :  { %4011 = vst [vmem:[#allocation23_spill] sm:$0xff] %v3663_v63  ;;  %v1292_v46 = vpop.f32.mrf.mxu0 }
 0x179   :  { %4012 = vst [vmem:[#allocation24_spill] sm:$0xff] %v3666_v17  ;;  %v3668_v18 = vpop.f32.mrf.mxu1  ;;  %v3671_v55 = vadd.f32 %v1292_v46, %v3539_v30 }
 0x17a   :  { %4013 = vst [vmem:[#allocation25_spill] sm:$0xff] %v3668_v18  ;;  %v1296_v8 = vpop.f32.mrf.mxu0 }
 0x17b   :  { %4014 = vst [vmem:[#allocation26_spill] sm:$0xff] %v3671_v55  ;;  %v3673_v60 = vpop.f32.mrf.mxu1  ;;  %v3676_v28 = vadd.f32 %v1296_v8, %v3542_v37 }
 0x17c   :  { %4015 = vst [vmem:[#allocation27_spill] sm:$0xff] %v3673_v60  ;;  %v1298_v25 = vpop.f32.mrf.mxu0 }
 0x17d   :  { %4016 = vst [vmem:[#allocation28_spill] sm:$0xff] %v3676_v28  ;;  %v3678_v27 = vpop.f32.mrf.mxu1  ;;  %v3681_v49 = vadd.f32 %v1298_v25, %v3545_v10 }
 0x17e   :  { %4017 = vst [vmem:[#allocation29_spill] sm:$0xff] %v3678_v27  ;;  %v1300_v26 = vpop.f32.mrf.mxu0 }
 0x17f   :  { %4018 = vst [vmem:[#allocation30_spill] sm:$0xff] %v3681_v49  ;;  %v3683_v36 = vpop.f32.mrf.mxu1  ;;  %v3686_v0 = vadd.f32 %v1300_v26, %v3548_v3 }
 0x180   :  { %4019 = vst [vmem:[#allocation31_spill] sm:$0xff] %v3683_v36  ;;  %v1302_v30 = vpop.f32.mrf.mxu0 }
 0x181   :  { %4020 = vst [vmem:[#allocation32_spill] sm:$0xff] %v3686_v0  ;;  %v3688_v59 = vpop.f32.mrf.mxu1  ;;  %v3691_v46 = vadd.f32 %v1302_v30, %v3553_v5 }
 0x182   :  { %4021 = vst [vmem:[#allocation33_spill] sm:$0xff] %v3688_v59  ;;  %v1470_v37 = vpop.f32.mrf.mxu0 }
 0x183   :  { %4022 = vst [vmem:[#allocation34_spill] sm:$0xff] %v3691_v46  ;;  %v1573_v8 = vpop.f32.mrf.mxu1 }
 0x184   :  { %v1472_v28 = vpop.f32.mrf.mxu0 }
 0x185   :  { %v1575_v55 = vpop.f32.mrf.mxu1 }
 0x186   :  { %v1474_v17 = vpop.f32.mrf.mxu0 }
 0x187   :  { %v1577_v40 = vpop.f32.mrf.mxu1 }
 0x188   :  { %v1476_v10 = vpop.f32.mrf.mxu0 }
 0x189   :  { %v3693_v25 = vpop.f32.mrf.mxu1 }
 0x18a   :  { %v1480_v49 = vpop.f32.mrf.mxu0 }
 0x18b   :  { %v3695_v36 = vpop.f32.mrf.mxu1 }
 0x18c   :  { %v1482_v3 = vpop.f32.mrf.mxu0 }
 0x18d   :  { %v3697_v26 = vpop.f32.mrf.mxu1 }
 0x18e   :  { %v3699_v0 = vpop.f32.mrf.mxu0 }
 0x18f   :  { %v3701_v59 = vpop.f32.mrf.mxu1 }
 0x190   :  { %v3703_v5 = vpop.f32.mrf.mxu0 }
 0x191   :  { %v3705_v30 = vpop.f32.mrf.mxu1 }
 0x192   :  { %v3707_v46 = vpop.f32.mrf.mxu0 }
 0x193   :  { %v3709_v27 = vpop.f32.mrf.mxu1 }
 0x194   :  { %v3711_v51 = vpop.f32.mrf.mxu0 }
 0x195   :  { %v3713_v22 = vpop.f32.mrf.mxu1 }
 0x196   :  { %v3715_v60 = vpop.f32.mrf.mxu0 }
 0x197   :  { %v3717_v29 = vpop.f32.mrf.mxu1 }
 0x198   :  { %v3719_v7 = vpop.f32.mrf.mxu0 }
 0x199   :  { %v3721_v18 = vpop.f32.mrf.mxu1 }
 0x19a   :  { %v3723_v63 = vpop.f32.mrf.mxu0 }
 0x19b   :  { %v3725_v62 = vpop.f32.mrf.mxu1 }
 0x19c   :  { %4023 = vst [vmem:[#allocation35_spill] sm:$0xff] %v3725_v62  ;;  %v3727_v38 = vpop.f32.mrf.mxu0 }
 0x19d   :  { %v3729_v2 = vpop.f32.mrf.mxu1 }
 0x19e   :  { %4024 = vst [vmem:[#allocation36_spill] sm:$0xff] %v3729_v2  ;;  %v3731_v48 = vpop.f32.mrf.mxu0 }
 0x19f   :  { %v3733_v31 = vpop.f32.mrf.mxu1 }
 0x1a0   :  { %4025 = vst [vmem:[#allocation37_spill] sm:$0xff] %v3733_v31  ;;  %v3735_v50 = vpop.f32.mrf.mxu0 }
 0x1a1   :  { %4026 = vst [vmem:[#allocation38_spill] sm:$0xff] %v3735_v50  ;;  %v3737_v33 = vpop.f32.mrf.mxu1 }
 0x1a2   :  { %4027 = vst [vmem:[#allocation39_spill] sm:$0xff] %v3737_v33  ;;  %v3739_v12 = vpop.f32.mrf.mxu0 }
 0x1a3   :  { %4028 = vst [vmem:[#allocation40_spill] sm:$0xff] %v3739_v12  ;;  %v3741_v61 = vpop.f32.mrf.mxu1 }
 0x1a4   :  { %4029 = vst [vmem:[#allocation41_spill] sm:$0xff] %v3741_v61  ;;  %v3743_v41 = vpop.f32.mrf.mxu0 }
 0x1a5   :  { %4030 = vst [vmem:[#allocation42_spill] sm:$0xff] %v3743_v41  ;;  %v3745_v35 = vpop.f32.mrf.mxu1 }
 0x1a6   :  { %4031 = vst [vmem:[#allocation43_spill] sm:$0xff] %v3745_v35  ;;  %v3747_v1 = vpop.f32.mrf.mxu0 }
 0x1a7   :  { %4032 = vst [vmem:[#allocation44_spill] sm:$0xff] %v3747_v1  ;;  %v3749_v39 = vpop.f32.mrf.mxu1 }
 0x1a8   :  { %4033 = vst [vmem:[#allocation45_spill] sm:$0xff] %v3749_v39  ;;  %v3751_v2 = vpop.f32.mrf.mxu0 }
 0x1a9   :  { %4034 = vst [vmem:[#allocation46_spill] sm:$0xff] %v3751_v2  ;;  %v3753_v6 = vpop.f32.mrf.mxu1 }
 0x1aa   :  { %4035 = vst [vmem:[#allocation47_spill] sm:$0xff] %v3753_v6  ;;  %v3755_v31 = vpop.f32.mrf.mxu0 }
 0x1ab   :  { %4036 = vst [vmem:[#allocation48_spill] sm:$0xff] %v3755_v31  ;;  %v3757_v50 = vpop.f32.mrf.mxu1 }
 0x1ac   :  { %4037 = vst [vmem:[#allocation49_spill] sm:$0xff] %v3757_v50  ;;  %v3759_v33 = vpop.f32.mrf.mxu0  ;;  %v1471_v50 = vadd.f32 %v1470_v37, %v3551_v58 }
 0x1ad   :  { %4038 = vst [vmem:[#allocation50_spill] sm:$0xff] %v3759_v33  ;;  %v3761_v12 = vpop.f32.mrf.mxu1 }
 0x1ae   :  { %4039 = vst [vmem:[#allocation51_spill] sm:$0xff] %v3761_v12  ;;  %v3763_v61 = vpop.f32.mrf.mxu0 }
 0x1af   :  { %4040 = vst [vmem:[#allocation52_spill] sm:$0xff] %v3763_v61  ;;  %v3765_v41 = vpop.f32.mrf.mxu1 }
 0x1b0   :  { %4041 = vst [vmem:[#allocation53_spill] sm:$0xff] %v3765_v41  ;;  %v3767_v35 = vpop.f32.mrf.mxu0  ;;  %v1473_v41 = vadd.f32 %v1472_v28, %v3558_v57  ;;  %v1483_v28 = vadd.f32 %v1482_v3, %v3578_v9  ;;  %v1485_v9 = vadd.f32 %v3699_v0, %v3583_v24  ;;  %v1491_v24 = vadd.f32 %v3707_v46, %v3593_v15 }
 0x1b1   :  { %4042 = vst [vmem:[#allocation54_spill] sm:$0xff] %v3767_v35  ;;  %v3769_v1 = vpop.f32.mrf.mxu1 }
 0x1b2   :  { %4043 = vst [vmem:[#allocation55_spill] sm:$0xff] %v3769_v1  ;;  %v3771_v39 = vpop.f32.mrf.mxu0  ;;  %v1642_v1 = vadd.f32 %v1573_v8, %v1471_v50 }
 0x1b3   :  { %4044 = vst [vmem:[#allocation56_spill] sm:$0xff] %v3771_v39  ;;  %v3773_v2 = vpop.f32.mrf.mxu1  ;;  %v1475_v39 = vadd.f32 %v1474_v17, %v3563_v47 }
 0x1b4   :  { %4045 = vst [vmem:[#allocation57_spill] sm:$0xff] %v3773_v2  ;;  %v3775_v6 = vpop.f32.mrf.mxu0 }
 0x1b5   :  { %4046 = vst [vmem:[#allocation58_spill] sm:$0xff] %v3775_v6  ;;  %v3777_v31 = vpop.f32.mrf.mxu1  ;;  %v1643_v6 = vadd.f32 %v1575_v55, %v1473_v41 }
 0x1b6   :  { %4047 = vst [vmem:[#allocation59_spill] sm:$0xff] %v3777_v31  ;;  %v3780_v33 = vpop.f32.mrf.mxu0  ;;  %v1477_v31 = vadd.f32 %v1476_v10, %v3568_v21 }
 0x1b7   :  { %4048 = vst [vmem:[#allocation60_spill] sm:$0xff] %v3780_v33  ;;  %v3782_v12 = vpop.f32.mrf.mxu1  ;;  %v1644_v33 = vadd.f32 %v1577_v40, %v1475_v39 }
 0x1b8   :  { %4049 = vst [vmem:[#allocation61_spill] sm:$0xff] %v3782_v12  ;;  %v3785_v61 = vpop.f32.mrf.mxu0  ;;  %v1481_v12 = vadd.f32 %v1480_v49, %v3573_v4  ;;  %v1645_v50 = vadd.f32 %v3693_v25, %v1477_v31  ;;  %v1487_v31 = vadd.f32 %v3703_v5, %v3588_v19  ;;  %v1493_v5 = vadd.f32 %v3711_v51, %v3598_v34 }
 0x1b9   :  { %4050 = vst [vmem:[#allocation62_spill] sm:$0xff] %v3785_v61  ;;  %v3787_v35 = vpop.f32.mrf.mxu1 }
 0x1ba   :  { %4051 = vst [vmem:[#allocation63_spill] sm:$0xff] %v3787_v35  ;;  %v1704_v2 = vpop.f32.mrf.mxu0  ;;  %v1649_v25 = vadd.f32 %v3705_v30, %v1487_v31  ;;  %v4052_v31 = vld [vmem:[#allocation2_spill] sm:$0xff] }
 0x1bb   :  { %v1906_v53 = vpop.f32.mrf.mxu1  ;;  %v1773_v62 = vadd.f32 %v1704_v2, %v1642_v1  ;;  %v1646_v2 = vadd.f32 %v3695_v36, %v1481_v12  ;;  %v1648_v36 = vadd.f32 %v3701_v59, %v1485_v9  ;;  %v1650_v59 = vadd.f32 %v3709_v27, %v1491_v24  ;;  %v4054_v24 = vld [vmem:[#allocation9_spill] sm:$0xff] }
 0x1bc   :  { %v1706_v58 = vpop.f32.mrf.mxu0 }
 0x1bd   :  { %v1908_v37 = vpop.f32.mrf.mxu1  ;;  %v1975_v20 = vadd.f32 %v1906_v53, %v1773_v62  ;;  %v1774_v57 = vadd.f32 %v1706_v58, %v1643_v6  ;;  %v1647_v6 = vadd.f32 %v3697_v26, %v1483_v28 }
 0x1be   :  { %v1708_v61 = vpop.f32.mrf.mxu0 }
 0x1bf   :  { %v1910_v35 = vpop.f32.mrf.mxu1  ;;  %v2003_v47 = vmax.f32 %v3556_v54, %v1975_v20  ;;  %v1976_v17 = vadd.f32 %v1908_v37, %v1774_v57  ;;  %v1775_v41 = vadd.f32 %v1708_v61, %v1644_v33  ;;  %v3805_v61 = vld [vmem:[%s3967_s2] ss:$0 sm:$0xff] }
 0x1c0   :  { %v1710_v55 = vpop.f32.mrf.mxu0 }
 0x1c1   :  { %v1912_v21 = vpop.f32.mrf.mxu1  ;;  %v2004_v39 = vmax.f32 %v3561_v13, %v1976_v17  ;;  %v1977_v1 = vadd.f32 %v1910_v35, %v1775_v41  ;;  %v1776_v4 = vadd.f32 %v1710_v55, %v1645_v50  ;;  %v1651_v41 = vadd.f32 %v3713_v22, %v1493_v5 }
 0x1c2   :  { %v1714_v53 = vpop.f32.mrf.mxu0 }
 0x1c3   :  { %v1916_v54 = vpop.f32.mrf.mxu1  ;;  %v2031_v20 = vmax.f32 %v2003_v47, %v2004_v39  ;;  %v2005_v13 = vmax.f32 %v3566_v56, %v1977_v1  ;;  %v1978_v35 = vadd.f32 %v1912_v21, %v1776_v4  ;;  %v1777_v12 = vadd.f32 %v1714_v53, %v1646_v2 }
 0x1c4   :  { %v1716_v33 = vpop.f32.mrf.mxu0 }
 0x1c5   :  { %v1918_v62 = vpop.f32.mrf.mxu1  ;;  %v2006_v40 = vmax.f32 %v3571_v43, %v1978_v35  ;;  %v1979_v19 = vadd.f32 %v1916_v54, %v1777_v12  ;;  %v1778_v49 = vadd.f32 %v1716_v33, %v1647_v6  ;;  %v2052_v0 = vadd.f32 %v3805_v61, %v2031_v20 }
 0x1c6   :  { %v1718_v8 = vpop.f32.mrf.mxu0  ;;  %v1495_v43 = vadd.f32 %v3715_v60, %v3603_v16 }
 0x1c7   :  { %v1920_v10 = vpop.f32.mrf.mxu1  ;;  %v2032_v56 = vmax.f32 %v2005_v13, %v2006_v40  ;;  %v2007_v3 = vmax.f32 %v3576_v14, %v1979_v19  ;;  %v1980_v26 = vadd.f32 %v1918_v62, %v1778_v49  ;;  %v1779_v15 = vadd.f32 %v1718_v8, %v1648_v36  ;;  %v4053_v13 = vld [vmem:[#allocation35_spill] sm:$0xff]  ;;  %v4055_v40 = vld [vmem:[#allocation38_spill] sm:$0xff]  ;;  %v4056_v36 = vld [vmem:[#allocation5_spill] sm:$0xff] }
 0x1c8   :  { %v1720_v46 = vpop.f32.mrf.mxu0  ;;  %v1497_v14 = vadd.f32 %v3719_v7, %v3608_v23  ;;  %v2066_v28 = vmax.f32 %v2052_v0, 0.0  ;;  %v1652_v27 = vadd.f32 %v3717_v29, %v1495_v43  ;;  %v1501_v23 = vadd.f32 %v3723_v63, %v3613_v44  ;;  %v4060_v43 = vld [vmem:[#allocation11_spill] sm:$0xff] }
 0x1c9   :  { %v1922_v58 = vpop.f32.mrf.mxu1  ;;  %v2053_v37 = vadd.f32 %v3805_v61, %v2032_v56  ;;  %v2008_v57 = vmax.f32 %v3581_v11, %v1980_v26  ;;  %v1780_v30 = vadd.f32 %v1720_v46, %v1649_v25  ;;  %v1981_v50 = vadd.f32 %v1920_v10, %v1779_v15  ;;  %v4058_v56 = vld [vmem:[#allocation36_spill] sm:$0xff]  ;;  %v4059_v26 = vld [vmem:[#allocation37_spill] sm:$0xff] }
 0x1ca   :  { %v1724_v47 = vpop.f32.mrf.mxu0  ;;  %v1653_v29 = vadd.f32 %v3721_v18, %v1497_v14  ;;  %v1503_v44 = vadd.f32 %v3727_v38, %v3618_v42  ;;  %v1505_v63 = vadd.f32 %v3731_v48, %v3623_v45  ;;  %v1654_v35 = vadd.f32 %v4053_v13, %v1501_v23  ;;  %v4057_v48 = vld [vmem:[#allocation3_spill] sm:$0xff]  ;;  %v4061_v15 = vld [vmem:[#allocation40_spill] sm:$0xff]  ;;  %v4062_v14 = vld [vmem:[#allocation6_spill] sm:$0xff] }
 0x1cb   :  { %v1926_v34 = vpop.f32.mrf.mxu1  ;;  %v2067_v51 = vmax.f32 %v2053_v37, 0.0  ;;  %v2033_v17 = vmax.f32 %v2007_v3, %v2008_v57  ;;  %v1982_v16 = vadd.f32 %v1922_v58, %v1780_v30  ;;  %v1781_v60 = vadd.f32 %v1724_v47, %v1650_v59  ;;  %v4066_v23 = vld [vmem:[#allocation42_spill] sm:$0xff] }
 0x1cc   :  { %v2009_v55 = vmax.f32 %v3586_v52, %v1981_v50  ;;  %v1726_v11 = vpop.f32.mrf.mxu0  ;;  %v1507_v19 = vadd.f32 %v4055_v40, %v4054_v24  ;;  %v1655_v3 = vadd.f32 %v4058_v56, %v1503_v44  ;;  %v1656_v5 = vadd.f32 %v4059_v26, %v1505_v63  ;;  %v4070_v63 = vld [vmem:[#allocation17_spill] sm:$0xff] }
 0x1cd   :  { %v1928_v21 = vpop.f32.mrf.mxu1  ;;  %v2080_v7 = vpack.c.bf16 %v2067_v51, %v2066_v28  ;;  %v2458_v2 = vpack.c.bf16 %v2067_v51, %v2067_v51  ;;  %v2010_v39 = vmax.f32 %v3591_v32, %v1982_v16  ;;  %v2054_v1 = vadd.f32 %v3805_v61, %v2033_v17  ;;  %v4063_v16 = vld [vmem:[#allocation39_spill] sm:$0xff] }
 0x1ce   :  { %v1983_v4 = vadd.f32 %v1926_v34, %v1781_v60  ;;  %v1782_v6 = vadd.f32 %v1726_v11, %v1651_v41  ;;  %v1728_v9 = vpop.f32.mrf.mxu0  ;;  %v1511_v46 = vadd.f32 %v4061_v15, %v4060_v43  ;;  %v1657_v60 = vadd.f32 %v4063_v16, %v1507_v19  ;;  %v4074_v19 = vld [vmem:[#allocation43_spill] sm:$0xff] }
 0x1cf   :  { %v1930_v22 = vpop.f32.mrf.mxu1  ;;  %2088 = vst.msk [vmem:[%s3968_s3] sm:$0xf] %vm2087_vm1, %v2080_v7  ;;  %2439 = vst.msk [vmem:[%s3968_s3 + $0x1c] sm:$0xf] %vm2087_vm1, %v2458_v2  ;;  %v2034_v52 = vmax.f32 %v2009_v55, %v2010_v39  ;;  %v1783_v32 = vadd.f32 %v1728_v9, %v1652_v27  ;;  %v2068_v49 = vmax.f32 %v2054_v1, 0.0  ;;  %v4064_v27 = vld [vmem:[#allocation4_spill] sm:$0xff] }
 0x1d0   :  { %v2011_v18 = vmax.f32 %v4052_v31, %v1983_v4  ;;  %v1984_v53 = vadd.f32 %v1928_v21, %v1782_v6  ;;  %v1730_v54 = vpop.f32.mrf.mxu0  ;;  %v4065_v21 = vld [vmem:[#allocation13_spill] sm:$0xff]  ;;  %v4067_v2 = vld [vmem:[#allocation15_spill] sm:$0xff]  ;;  %v4068_v39 = vld [vmem:[#allocation44_spill] sm:$0xff] }
 0x1d1   :  { %v1932_v20 = vpop.f32.mrf.mxu1  ;;  %v2055_v12 = vadd.f32 %v3805_v61, %v2034_v52  ;;  %v1985_v33 = vadd.f32 %v1930_v22, %v1783_v32  ;;  %v1784_v62 = vadd.f32 %v1730_v54, %v1653_v29  ;;  %v1513_v7 = vadd.f32 %v4066_v23, %v4065_v21  ;;  %v4069_v22 = vld [vmem:[#allocation41_spill] sm:$0xff]  ;;  %v4071_v31 = vld [vmem:[#allocation46_spill] sm:$0xff]  ;;  %v4072_v54 = vld [vmem:[#allocation7_spill] sm:$0xff] }
 0x1d2   :  { %v2012_v42 = vmax.f32 %v4056_v36, %v1984_v53  ;;  %v1734_v38 = vpop.f32.mrf.mxu0  ;;  %v1515_v1 = vadd.f32 %v4068_v39, %v4067_v2  ;;  %v1658_v29 = vadd.f32 %v4069_v22, %v1511_v46  ;;  %v4075_v36 = vld [vmem:[#allocation45_spill] sm:$0xff]  ;;  %v4087_v39 = vld [vmem:[#allocation54_spill] sm:$0xff] }
 0x1d3   :  { %v1936_v0 = vpop.f32.mrf.mxu1  ;;  %v2069_v45 = vmax.f32 %v2055_v12, 0.0  ;;  %v2013_v8 = vmax.f32 %v4057_v48, %v1985_v33  ;;  %v1986_v10 = vadd.f32 %v1932_v20, %v1784_v62  ;;  %v1785_v25 = vadd.f32 %v1734_v38, %v1654_v35  ;;  %v4073_v33 = vld [vmem:[#allocation8_spill] sm:$0xff]  ;;  %v4076_v38 = vld [vmem:[#allocation19_spill] sm:$0xff]  ;;  %v4086_v2 = vld [vmem:[#allocation25_spill] sm:$0xff] }
 0x1d4   :  { %v2035_v58 = vmax.f32 %v2011_v18, %v2012_v42  ;;  %v1736_v59 = vpop.f32.mrf.mxu0  ;;  %v1517_v18 = vadd.f32 %v4071_v31, %v4070_v63  ;;  %v1660_v42 = vadd.f32 %v4075_v36, %v1515_v1  ;;  %v1527_v1 = vadd.f32 %v4087_v39, %v4086_v2 }
 0x1d5   :  { %v1938_v37 = vpop.f32.mrf.mxu1  ;;  %v2081_v57 = vpack.c.bf16 %v2069_v45, %v2068_v49  ;;  %v2459_v30 = vpack.c.bf16 %v2069_v45, %v2069_v45  ;;  %v2014_v28 = vmax.f32 %v4062_v14, %v1986_v10  ;;  %v1987_v50 = vadd.f32 %v1936_v0, %v1785_v25  ;;  %v4077_v0 = vld [vmem:[#allocation48_spill] sm:$0xff] }
 0x1d6   :  { %v2056_v47 = vadd.f32 %v3805_v61, %v2035_v58  ;;  %v1786_v34 = vadd.f32 %v1736_v59, %v1655_v3  ;;  %v1738_v51 = vpop.f32.mrf.mxu0  ;;  %v1659_v49 = vadd.f32 %v4074_v19, %v1513_v7  ;;  %v1521_v45 = vadd.f32 %v4077_v0, %v4076_v38  ;;  %v4078_v3 = vld [vmem:[#allocation10_spill] sm:$0xff]  ;;  %v4079_v59 = vld [vmem:[#allocation47_spill] sm:$0xff] }
 0x1d7   :  { %v1940_v17 = vpop.f32.mrf.mxu1  ;;  %2440 = vst.msk [vmem:[%s3968_s3 + $0x4] sm:$0xf] %vm2087_vm1, %v2081_v57  ;;  %2442 = vst.msk [vmem:[%s3968_s3 + $0x20] sm:$0xf] %vm2087_vm1, %v2459_v30  ;;  %v2036_v41 = vmax.f32 %v2013_v8, %v2014_v28  ;;  %v2015_v55 = vmax.f32 %v4064_v27, %v1987_v50  ;;  %v1787_v11 = vadd.f32 %v1738_v51, %v1656_v5  ;;  %v4080_v30 = vld [vmem:[#allocation12_spill] sm:$0xff]  ;;  %v4081_v50 = vld [vmem:[#allocation21_spill] sm:$0xff] }
 0x1d8   :  { %v1988_v4 = vadd.f32 %v1938_v37, %v1786_v34  ;;  %v1740_v6 = vpop.f32.mrf.mxu0  ;;  %v2070_v53 = vmax.f32 %v2056_v47, 0.0  ;;  %v1661_v37 = vadd.f32 %v4079_v59, %v1517_v18  ;;  %v4082_v47 = vld [vmem:[#allocation50_spill] sm:$0xff]  ;;  %v4083_v51 = vld [vmem:[#allocation23_spill] sm:$0xff] }
 0x1d9   :  { %v1942_v9 = vpop.f32.mrf.mxu1  ;;  %v2057_v52 = vadd.f32 %v3805_v61, %v2036_v41  ;;  %v1989_v32 = vadd.f32 %v1940_v17, %v1787_v11  ;;  %v1788_v44 = vadd.f32 %v1740_v6, %v1657_v60  ;;  %v1523_v34 = vadd.f32 %v4082_v47, %v4081_v50  ;;  %v4084_v17 = vld [vmem:[#allocation52_spill] sm:$0xff]  ;;  %v4088_v6 = vld [vmem:[#allocation14_spill] sm:$0xff]  ;;  %v4090_v18 = vld [vmem:[#allocation51_spill] sm:$0xff] }
 0x1da   :  { %v2016_v20 = vmax.f32 %v4072_v54, %v1988_v4  ;;  %v1744_v13 = vpop.f32.mrf.mxu0  ;;  %v1525_v16 = vadd.f32 %v4084_v17, %v4083_v51  ;;  %v4091_v54 = vld [vmem:[#allocation53_spill] sm:$0xff]  ;;  %v4103_v17 = vld [vmem:[#allocation62_spill] sm:$0xff] }
 0x1db   :  { %v1946_v35 = vpop.f32.mrf.mxu1  ;;  %v2071_v12 = vmax.f32 %v2057_v52, 0.0  ;;  %v2017_v62 = vmax.f32 %v4073_v33, %v1989_v32  ;;  %v1990_v24 = vadd.f32 %v1942_v9, %v1788_v44  ;;  %v1789_v40 = vadd.f32 %v1744_v13, %v1658_v29  ;;  %v4089_v32 = vld [vmem:[#allocation16_spill] sm:$0xff]  ;;  %v4092_v13 = vld [vmem:[#allocation27_spill] sm:$0xff]  ;;  %v4102_v51 = vld [vmem:[#allocation33_spill] sm:$0xff] }
 0x1dc   :  { %v2037_v48 = vmax.f32 %v2015_v55, %v2016_v20  ;;  %v1746_v8 = vpop.f32.mrf.mxu0  ;;  %v4085_v55 = vld [vmem:[#allocation49_spill] sm:$0xff]  ;;  %v1664_v20 = vadd.f32 %v4091_v54, %v1525_v16  ;;  %v1537_v16 = vadd.f32 %v4103_v17, %v4102_v51 }
 0x1dd   :  { %v1948_v10 = vpop.f32.mrf.mxu1  ;;  %v2082_v25 = vpack.c.bf16 %v2071_v12, %v2070_v53  ;;  %v2460_v56 = vpack.c.bf16 %v2071_v12, %v2071_v12  ;;  %v2018_v26 = vmax.f32 %v4078_v3, %v1990_v24  ;;  %v1991_v5 = vadd.f32 %v1946_v35, %v1789_v40  ;;  %v4093_v35 = vld [vmem:[#allocation56_spill] sm:$0xff] }
 0x1de   :  { %v2058_v43 = vadd.f32 %v3805_v61, %v2037_v48  ;;  %v1790_v15 = vadd.f32 %v1746_v8, %v1659_v49  ;;  %v1748_v46 = vpop.f32.mrf.mxu0  ;;  %v1662_v11 = vadd.f32 %v4085_v55, %v1521_v45  ;;  %v1663_v53 = vadd.f32 %v4090_v18, %v1523_v34  ;;  %v4094_v49 = vld [vmem:[#allocation18_spill] sm:$0xff]  ;;  %v4095_v8 = vld [vmem:[#allocation55_spill] sm:$0xff] }
 0x1df   :  { %v1950_v58 = vpop.f32.mrf.mxu1  ;;  %2443 = vst.msk [vmem:[%s3968_s3 + $0x8] sm:$0xf] %vm2087_vm1, %v2082_v25  ;;  %2445 = vst.msk [vmem:[%s3968_s3 + $0x24] sm:$0xf] %vm2087_vm1, %v2460_v56  ;;  %v2038_v57 = vmax.f32 %v2017_v62, %v2018_v26  ;;  %v2019_v14 = vmax.f32 %v4080_v30, %v1991_v5  ;;  %v1791_v28 = vadd.f32 %v1748_v46, %v1660_v42  ;;  %v4096_v56 = vld [vmem:[#allocation20_spill] sm:$0xff]  ;;  %v4097_v5 = vld [vmem:[#allocation29_spill] sm:$0xff] }
 0x1e0   :  { %v1992_v60 = vadd.f32 %v1948_v10, %v1790_v15  ;;  %v1750_v41 = vpop.f32.mrf.mxu0  ;;  %v2072_v4 = vmax.f32 %v2058_v43, 0.0  ;;  %v1531_v12 = vadd.f32 %v4093_v35, %v4092_v13  ;;  %v1665_v10 = vadd.f32 %v4095_v8, %v1527_v1  ;;  %v4098_v43 = vld [vmem:[#allocation58_spill] sm:$0xff]  ;;  %v4099_v46 = vld [vmem:[#allocation31_spill] sm:$0xff] }
 0x1e1   :  { %v1952_v27 = vpop.f32.mrf.mxu1  ;;  %v2059_v21 = vadd.f32 %v3805_v61, %v2038_v57  ;;  %v1993_v23 = vadd.f32 %v1950_v58, %v1791_v28  ;;  %v1792_v7 = vadd.f32 %v1750_v41, %v1661_v37  ;;  %v1533_v15 = vadd.f32 %v4098_v43, %v4097_v5  ;;  %v4100_v58 = vld [vmem:[#allocation60_spill] sm:$0xff]  ;;  %v4104_v41 = vld [vmem:[#allocation22_spill] sm:$0xff]  ;;  %v4106_v1 = vld [vmem:[#allocation59_spill] sm:$0xff] }
 0x1e2   :  { %v2020_v9 = vmax.f32 %v4088_v6, %v1992_v60  ;;  %v1754_v22 = vpop.f32.mrf.mxu0  ;;  %v1535_v59 = vadd.f32 %v4100_v58, %v4099_v46  ;;  %v4107_v6 = vld [vmem:[#allocation61_spill] sm:$0xff] }
 0x1e3   :  { %v1956_v29 = vpop.f32.mrf.mxu1  ;;  %v2073_v52 = vmax.f32 %v2059_v21, 0.0  ;;  %v2021_v44 = vmax.f32 %v4089_v32, %v1993_v23  ;;  %v1994_v63 = vadd.f32 %v1952_v27, %v1792_v7  ;;  %v1793_v31 = vadd.f32 %v1754_v22, %v1662_v11  ;;  %v4105_v23 = vld [vmem:[#allocation24_spill] sm:$0xff] }
 0x1e4   :  { %v2039_v33 = vmax.f32 %v2019_v14, %v2020_v9  ;;  %v1756_v62 = vpop.f32.mrf.mxu0  ;;  %v4101_v14 = vld [vmem:[#allocation57_spill] sm:$0xff]  ;;  %v1668_v9 = vadd.f32 %v4107_v6, %v1535_v59 }
 0x1e5   :  { %v1958_v24 = vpop.f32.mrf.mxu1  ;;  %v2083_v40 = vpack.c.bf16 %v2073_v52, %v2072_v4  ;;  %v2461_v19 = vpack.c.bf16 %v2073_v52, %v2073_v52  ;;  %v2022_v36 = vmax.f32 %v4094_v49, %v1994_v63  ;;  %v1995_v42 = vadd.f32 %v1956_v29, %v1793_v31  ;;  %v4108_v63 = vld [vmem:[#allocation26_spill] sm:$0xff] }
 0x1e6   :  { %v2060_v38 = vadd.f32 %v3805_v61, %v2039_v33  ;;  %v1794_v0 = vadd.f32 %v1756_v62, %v1663_v53  ;;  %v1758_v45 = vpop.f32.mrf.mxu0  ;;  %v1666_v28 = vadd.f32 %v4101_v14, %v1531_v12  ;;  %v1667_v4 = vadd.f32 %v4106_v1, %v1533_v15  ;;  %v4109_v53 = vld [vmem:[#allocation63_spill] sm:$0xff]  ;;  %v4110_v62 = vld [vmem:[#allocation28_spill] sm:$0xff]  ;;  %v4113_v15 = vld [vmem:[#allocation34_spill] sm:$0xff] }
 0x1e7   :  { %v1960_v48 = vpop.f32.mrf.mxu1  ;;  %2446 = vst.msk [vmem:[%s3968_s3 + $0xc] sm:$0xf] %vm2087_vm1, %v2083_v40  ;;  %2448 = vst.msk [vmem:[%s3968_s3 + $0x28] sm:$0xf] %vm2087_vm1, %v2461_v19  ;;  %v2040_v25 = vmax.f32 %v2021_v44, %v2022_v36  ;;  %v2023_v3 = vmax.f32 %v4096_v56, %v1995_v42  ;;  %v1795_v26 = vadd.f32 %v1758_v45, %v1664_v20 }
 0x1e8   :  { %v1996_v37 = vadd.f32 %v1958_v24, %v1794_v0  ;;  %v1760_v57 = vpop.f32.mrf.mxu0  ;;  %v2074_v60 = vmax.f32 %v2060_v38, 0.0  ;;  %v1669_v54 = vadd.f32 %v4109_v53, %v1537_v16  ;;  %v4111_v0 = vld [vmem:[#allocation30_spill] sm:$0xff] }
 0x1e9   :  { %v1962_v30 = vpop.f32.mrf.mxu1  ;;  %v2061_v50 = vadd.f32 %v3805_v61, %v2040_v25  ;;  %v1997_v47 = vadd.f32 %v1960_v48, %v1795_v26  ;;  %v1796_v34 = vadd.f32 %v1760_v57, %v1665_v10  ;;  %v4112_v25 = vld [vmem:[#allocation32_spill] sm:$0xff] }
 0x1ea   :  { %v2024_v27 = vmax.f32 %v4104_v41, %v1996_v37  ;;  %v1764_v55 = vpop.f32.mrf.mxu0 }
 0x1eb   :  { %v1966_v11 = vpop.f32.mrf.mxu1  ;;  %v2075_v21 = vmax.f32 %v2061_v50, 0.0  ;;  %v2025_v7 = vmax.f32 %v4105_v23, %v1997_v47  ;;  %v1998_v2 = vadd.f32 %v1962_v30, %v1796_v34  ;;  %v1797_v39 = vadd.f32 %v1764_v55, %v1666_v28 }
 0x1ec   :  { %v2041_v22 = vmax.f32 %v2023_v3, %v2024_v27  ;;  %v1766_v29 = vpop.f32.mrf.mxu0 }
 0x1ed   :  { %v1968_v52 = vpop.f32.mrf.mxu1  ;;  %v2084_v32 = vpack.c.bf16 %v2075_v21, %v2074_v60  ;;  %v2462_v44 = vpack.c.bf16 %v2075_v21, %v2075_v21  ;;  %v2026_v31 = vmax.f32 %v4108_v63, %v1998_v2  ;;  %v1999_v18 = vadd.f32 %v1966_v11, %v1797_v39 }
 0x1ee   :  { %v1798_v20 = vadd.f32 %v1766_v29, %v1667_v4  ;;  %v1768_v13 = vpop.f32.mrf.mxu0  ;;  %v2062_v12 = vadd.f32 %v3805_v61, %v2041_v22 }
 0x1ef   :  { %v1970_v35 = vpop.f32.mrf.mxu1  ;;  %2449 = vst.msk [vmem:[%s3968_s3 + $0x10] sm:$0xf] %vm2087_vm1, %v2084_v32  ;;  %2451 = vst.msk [vmem:[%s3968_s3 + $0x2c] sm:$0xf] %vm2087_vm1, %v2462_v44  ;;  %v2042_v33 = vmax.f32 %v2025_v7, %v2026_v31  ;;  %v2027_v24 = vmax.f32 %v4110_v62, %v1999_v18  ;;  %v1799_v40 = vadd.f32 %v1768_v13, %v1668_v9 }
 0x1f0   :  { %v2000_v19 = vadd.f32 %v1968_v52, %v1798_v20  ;;  %v1770_v49 = vpop.f32.mrf.mxu0  ;;  %v2076_v8 = vmax.f32 %v2062_v12, 0.0 }
 0x1f1   :  { %v2063_v36 = vadd.f32 %v3805_v61, %v2042_v33  ;;  %v2001_v42 = vadd.f32 %v1970_v35, %v1799_v40  ;;  %v1800_v38 = vadd.f32 %v1770_v49, %v1669_v54  ;;  %v1972_v48 = vpop.f32.mrf.mxu1 }
 0x1f2   :  { %v2028_v45 = vmax.f32 %v4111_v0, %v2000_v19 }
 0x1f3   :  { %v2077_v10 = vmax.f32 %v2063_v36, 0.0  ;;  %v2029_v56 = vmax.f32 %v4112_v25, %v2001_v42  ;;  %v2002_v3 = vadd.f32 %v1972_v48, %v1800_v38 }
 0x1f4   :  { %v2043_v26 = vmax.f32 %v2027_v24, %v2028_v45 }
 0x1f5   :  { %v2085_v5 = vpack.c.bf16 %v2077_v10, %v2076_v8  ;;  %v2463_v43 = vpack.c.bf16 %v2077_v10, %v2077_v10  ;;  %v2030_v46 = vmax.f32 %v4113_v15, %v2002_v3 }
 0x1f6   :  { %v2064_v58 = vadd.f32 %v3805_v61, %v2043_v26 }
 0x1f7   :  { %2452 = vst.msk [vmem:[%s3968_s3 + $0x14] sm:$0xf] %vm2087_vm1, %v2085_v5  ;;  %2454 = vst.msk [vmem:[%s3968_s3 + $0x30] sm:$0xf] %vm2087_vm1, %v2463_v43  ;;  %v2044_v59 = vmax.f32 %v2029_v56, %v2030_v46 }
 0x1f8   :  { %v2078_v57 = vmax.f32 %v2064_v58, 0.0 }
 0x1f9   :  { %v2065_v37 = vadd.f32 %v3805_v61, %v2044_v59 }
 0x1fb   :  { %v2079_v30 = vmax.f32 %v2065_v37, 0.0 }
 0x1fd   :  { %v2086_v14 = vpack.c.bf16 %v2079_v30, %v2078_v57  ;;  %v2464_v28 = vpack.c.bf16 %v2079_v30, %v2079_v30 }
 0x1ff   :  { %2455 = vst.msk [vmem:[%s3968_s3 + $0x18] sm:$0xf] %vm2087_vm1, %v2086_v14  ;;  %2457 = vst.msk [vmem:[%s3968_s3 + $0x34] sm:$0xf] %vm2087_vm1, %v2464_v28 }

// kernel: net_forward.3
= control target key start
LH: loop header
LB: loop body
LE: loop exit
PB: predicated region body
PF: predicated region fallthrough
CT: control target
= control target key end

     0   :  { %vm145_vm0 = vcmask 1041408   ;;  %v2520_v2 = vmov 0   ;;  %vm135_vm1 = vcmask 687104   ;;  %vm2522_vm2 = vmmov 0   ;;  %s3407_s1 = inlined_call_operand.vmem [shape: bf16[5,84,256], index: 1, kind: input, shape index: {}]   ;;  %s3408_s0 = inlined_call_operand.vmem [shape: bf16[14,8,84], index: 0, kind: input, shape index: {}]   ;;  %s3409_s3 = inlined_call_operand.vmem [shape: bf16[5,80,128], index: 3, kind: input, shape index: {}]   ;;  %s3410_s2 = inlined_call_operand.vmem [shape: f32[1,80], index: 2, kind: input, shape index: {}]   ;;  %s3411_s5 = inlined_call_operand.vmem [shape: bf16[128,128], index: 5, kind: input, shape index: {}]   ;;  %s3412_s7 = inlined_call_operand.vmem [shape: bf16[128,10], index: 7, kind: input, shape index: {}]   ;;  %s3413_s4 = inlined_call_operand.vmem [shape: f32[1,128], index: 4, kind: input, shape index: {}]   ;;  %s3414_s6 = inlined_call_operand.vmem [shape: f32[1,128], index: 6, kind: input, shape index: {}]   ;;  %s3415_s8 = inlined_call_operand.vmem [shape: f32[1,10], index: 8, kind: input, shape index: {}]   ;;  %s3416_s9 = inlined_call_operand.vmem [shape: f32[8,10], index: 9, kind: output, shape index: {}]  }
   0x1   :  { %v1953_v0 = vld [vmem:[%s3407_s1 + $0xa8] sm:$0x33]  ;;  %v48_v1 = vld [vmem:[%s3407_s1 + $0x50] sm:$0x33]  ;;  %184 = vmatprep.mubr.bf16.mxu0 %v2520_v2  ;;  %328 = vmatprep.mubr.bf16.mxu1 %v2520_v2  ;;  %v2588_v7 = vld [vmem:[%s3407_s1 + $0x9c] ss:$8 sps:$4 sm:$0xff]  }
   0x2   :  { %v2581_v3 = vcombine.high %v1953_v0, %v1953_v0  ;;  %v2583_v4 = vcombine.high %v48_v1, %v48_v1  ;;  %v1967_v5 = vcombine.low %v1953_v0, %v1953_v0  ;;  %v1986_v6 = vcombine.low %v48_v1, %v48_v1  ;;  %v2593_v8 = vld [vmem:[%s3407_s1 + $0x44] ss:$8 sps:$4 sm:$0xff]   ;;  %v2608_v11 = vld [vmem:[%s3407_s1 + $0x98] ss:$8 sps:$4 sm:$0xff]   ;;  %v2627_v14 = vld [vmem:[%s3407_s1 + $0x34] ss:$8 sps:$4 sm:$0xff]  }
   0x3   :  { %v2615_v12 = vld [vmem:[%s3407_s1 + $0x40] ss:$8 sps:$4 sm:$0xff]   ;;  %v2622_v13 = vld [vmem:[%s3407_s1 + $0x8c] ss:$8 sps:$4 sm:$0xff]   ;;  %v2639_v16 = vld [vmem:[%s3407_s1 + $0x30] ss:$8 sps:$4 sm:$0xff]  }
   0x4   :  { %1969 = vmatprep.subr.msk.bf16.mxu0 %vm145_vm0, %v2581_v3  ;;  %1988 = vmatprep.subr.msk.bf16.mxu1 %vm145_vm0, %v2583_v4  ;;  %v2600_v9 = vsel %vm145_vm0, %v1967_v5, 0  ;;  %v2603_v10 = vsel %vm145_vm0, %v1986_v6, 0  ;;  %v2632_v15 = vld [vmem:[%s3407_s1 + $0x88] ss:$8 sps:$4 sm:$0xff]   ;;  %v2644_v17 = vld [vmem:[%s3407_s1 + $0x7c] ss:$8 sps:$4 sm:$0xff]  }
   0x5   :  { %157 = vmatpush1.bf16.msra.mxu0 %v2600_v9  ;;  %301 = vmatpush1.bf16.msra.mxu1 %v2603_v10  ;;  %v2651_v18 = vld [vmem:[%s3407_s1 + $0x24] ss:$8 sps:$4 sm:$0xff]   ;;  %v2656_v19 = vld [vmem:[%s3407_s1 + $0x78] ss:$8 sps:$4 sm:$0xff]   ;;  %v2675_v22 = vld [vmem:[%s3407_s1 + $0x14] ss:$8 sps:$4 sm:$0xff]  }
   0x6   :  { %158 = vmatprep.subr.bf16.mxu0 %v2588_v7  ;;  %302 = vmatprep.subr.bf16.mxu1 %v2593_v8  ;;  %v2663_v20 = vld [vmem:[%s3407_s1 + $0x20] ss:$8 sps:$4 sm:$0xff]   ;;  %v2670_v21 = vld [vmem:[%s3407_s1 + $0x6c] ss:$8 sps:$4 sm:$0xff]   ;;  %v2687_v24 = vld [vmem:[%s3407_s1 + $0x10] ss:$8 sps:$4 sm:$0xff]  }
   0x7   :  { %v2680_v23 = vld [vmem:[%s3407_s1 + $0x68] ss:$8 sps:$4 sm:$0xff]   ;;  %v2692_v25 = vld [vmem:[%s3407_s1 + $0x5c] ss:$8 sps:$4 sm:$0xff]   ;;  %v2710_v29 = vld [vmem:[%s3407_s1 + $0x58] ss:$8 sps:$4 sm:$0xff]  }
   0x8   :  { %v2699_v26 = vld [vmem:[%s3407_s1 + $0x4] ss:$8 sps:$4 sm:$0xff]   ;;  %v2042_v28 = vld [vmem:[%s3407_s1 + $0x158] sm:$0x33]  ;;  %v2717_v30 = vld [vmem:[%s3407_s1] ss:$8 sps:$4 sm:$0xff]  }
   0x9   :  { %159 = vmatpush1.bf16.msra.mxu0 %v2608_v11  ;;  %303 = vmatpush1.bf16.msra.mxu1 %v2615_v12  ;;  %v2007_v27 = vld [vmem:[%s3407_s1 + $0x100] sm:$0x33]  ;;  %v2723_v32 = vcombine.high %v2042_v28, %v2042_v28  ;;  %v2056_v34 = vcombine.low %v2042_v28, %v2042_v28  ;;  %v2738_v37 = vld [vmem:[%s3407_s1 + $0xf4] ss:$8 sps:$4 sm:$0xff]   ;;  %v2761_v41 = vld [vmem:[%s3407_s1 + $0xf0] ss:$8 sps:$4 sm:$0xff]  }
   0xa   :  { %160 = vmatprep.subr.bf16.mxu0 %v2622_v13  ;;  %304 = vmatprep.subr.bf16.mxu1 %v2627_v14  ;;  %v2719_v31 = vcombine.high %v2007_v27, %v2007_v27  ;;  %v2021_v33 = vcombine.low %v2007_v27, %v2007_v27  ;;  %v2728_v35 = vld [vmem:[%s3408_s0 + $0x1c] sm:$0xff]   ;;  %v2753_v40 = vld [vmem:[%s3407_s1 + $0x14c] ss:$8 sps:$4 sm:$0xff]   ;;  %v2766_v42 = vld [vmem:[%s3407_s1 + $0x148] ss:$8 sps:$4 sm:$0xff]   ;;  %vm1324_vm3 = vcmask 654336  }
   0xb   :  { %v2411_v36 = vld [vmem:[%s3408_s0] sm:$0xff]   ;;  %v2748_v39 = vsel %vm145_vm0, %v2056_v34, 0  ;;  %v2423_v46 = vld [vmem:[%s3408_s0 + $0x8] sm:$0xff]   ;;  %v2807_v49 = vld [vmem:[%s3407_s1 + $0xd4] ss:$8 sps:$4 sm:$0xff]   ;;  %vm1932_vm4 = vcmask 80896  }
   0xc   :  { %v2745_v38 = vsel %vm145_vm0, %v2021_v33, 0  ;;  %v2773_v43 = vld [vmem:[%s3407_s1 + $0xe4] ss:$8 sps:$4 sm:$0xff]   ;;  %v2795_v47 = vld [vmem:[%s3407_s1 + $0xe0] ss:$8 sps:$4 sm:$0xff]  }
   0xd   :  { %161 = vmatpush1.bf16.msra.mxu0 %v2632_v15  ;;  %305 = vmatpush1.bf16.msra.mxu1 %v2639_v16  ;;  %v2780_v44 = vld [vmem:[%s3407_s1 + $0x13c] ss:$8 sps:$4 sm:$0xff]   ;;  %v2800_v48 = vld [vmem:[%s3407_s1 + $0x138] ss:$8 sps:$4 sm:$0xff]   ;;  %v2814_v50 = vld [vmem:[%s3407_s1 + $0x12c] ss:$8 sps:$4 sm:$0xff]  }
   0xe   :  { %162 = vmatprep.subr.bf16.mxu0 %v2644_v17  ;;  %306 = vmatprep.subr.bf16.mxu1 %v2651_v18  ;;  %v2787_v45 = vld [vmem:[%s3408_s0 + $0x24] sm:$0xff]   ;;  %v2822_v51 = vld [vmem:[%s3407_s1 + $0xd0] ss:$8 sps:$4 sm:$0xff]   ;;  %v2841_v54 = vld [vmem:[%s3408_s0 + $0x2c] ss:$0 sps:$4 sm:$0xff]  }
   0xf   :  { %v2829_v52 = vld [vmem:[%s3407_s1 + $0x128] ss:$8 sps:$4 sm:$0xff]   ;;  %v2834_v53 = vld [vmem:[%s3407_s1 + $0xc4] ss:$8 sps:$4 sm:$0xff]   ;;  %v2863_v58 = vld [vmem:[%s3407_s1 + $0x118] ss:$8 sps:$4 sm:$0xff]  }
  0x10   :  { %v2846_v55 = vld [vmem:[%s3407_s1 + $0x11c] ss:$8 sps:$4 sm:$0xff]   ;;  %v2437_v56 = vld [vmem:[%s3408_s0 + $0x10] ss:$0 sps:$4 sm:$0xff]   ;;  %v2856_v57 = vld [vmem:[%s3407_s1 + $0xc0] ss:$8 sps:$4 sm:$0xff]  }
  0x11   :  { %163 = vmatpush1.bf16.msra.mxu0 %v2656_v19  ;;  %307 = vmatpush1.bf16.msra.mxu1 %v2663_v20  ;;  %v2870_v59 = vld [vmem:[%s3407_s1 + $0xb4] ss:$8 sps:$4 sm:$0xff]   ;;  %v2886_v62 = vld [vmem:[%s3407_s1 + $0xb0] ss:$8 sps:$4 sm:$0xff]   ;;  %v2450_v5 = vld [vmem:[%s3408_s0 + $0x4] sm:$0xff]  }
  0x12   :  { %164 = vmatprep.subr.bf16.mxu0 %v2670_v21  ;;  %308 = vmatprep.subr.bf16.mxu1 %v2675_v22  ;;  %v2875_v60 = vld [vmem:[%s3407_s1 + $0x10c] ss:$8 sps:$4 sm:$0xff]   ;;  %v2893_v63 = vld [vmem:[%s3407_s1 + $0x108] ss:$8 sps:$4 sm:$0xff]   ;;  %v2907_v6 = vld [vmem:[%s3408_s0 + $0x20] sm:$0xff]  }
  0x13   :  { %v2077_v61 = vld [vmem:[%s3407_s1 + $0x1b0] sm:$0x33]  ;;  %v2914_v27 = vld [vmem:[%s3407_s1 + $0x1a4] ss:$8 sps:$4 sm:$0xff]   ;;  %v2931_v33 = vld [vmem:[%s3407_s1 + $0x1a0] ss:$8 sps:$4 sm:$0xff]  }
  0x14   :  { %v2897_v0 = vcombine.high %v2077_v61, %v2077_v61  ;;  %v2091_v1 = vcombine.low %v2077_v61, %v2077_v61  ;;  %v2948_v34 = vld [vmem:[%s3408_s0 + $0x28] sm:$0xff]  }
  0x15   :  { %165 = vmatpush1.bf16.msra.mxu0 %v2680_v23  ;;  %309 = vmatpush1.bf16.msra.mxu1 %v2687_v24 }
  0x16   :  { %166 = vmatprep.subr.bf16.mxu0 %v2692_v25  ;;  %310 = vmatprep.subr.bf16.mxu1 %v2699_v26  ;;  %v2921_v28 = vsel %vm145_vm0, %v2091_v1, 0 }
  0x19   :  { %167 = vmatpush1.bf16.msra.mxu0 %v2710_v29  ;;  %311 = vmatpush1.bf16.msra.mxu1 %v2717_v30 }
  0x1a   :  { %2023 = vmatprep.subr.msk.bf16.mxu0 %vm145_vm0, %v2719_v31  ;;  %2058 = vmatprep.subr.msk.bf16.mxu1 %vm145_vm0, %v2723_v32 }
  0x1c   :  { %1970 = vmatmul.mubr.msk.bf16.vlgmr.msra.gmra.mxu0 %vm135_vm1, %v2728_v35  ;;  %1989 = vmatmul.mubr.msk.bf16.vlgmr.msra.gmra.mxu1 %vm135_vm1, %v2411_v36  ;;  %v2962_v36 = vld [vmem:[%s3407_s1 + $0x184] ss:$8 sps:$4 sm:$0xff]  }
  0x1d   :  { %463 = vmatpush1.bf16.msra.mxu0 %v2745_v38  ;;  %635 = vmatpush1.bf16.msra.mxu1 %v2748_v39 }
  0x1e   :  { %464 = vmatprep.subr.bf16.mxu0 %v2738_v37  ;;  %636 = vmatprep.subr.bf16.mxu1 %v2753_v40 }
  0x1f   :  { %194 = vmatprep.mubr.bf16.mxu0 %v2520_v2  ;;  %338 = vmatprep.mubr.bf16.mxu1 %v2520_v2 }
  0x21   :  { %465 = vmatpush1.bf16.msra.mxu0 %v2761_v41  ;;  %637 = vmatpush1.bf16.msra.mxu1 %v2766_v42 }
  0x22   :  { %466 = vmatprep.subr.bf16.mxu0 %v2773_v43  ;;  %638 = vmatprep.subr.bf16.mxu1 %v2780_v44 }
  0x24   :  { %1971 = vmatmul.mubr.msk.bf16.gmra.mxu0 %vm135_vm1, %v2787_v45  ;;  %1990 = vmatmul.mubr.msk.bf16.gmra.mxu1 %vm135_vm1, %v2423_v46  ;;  %v2989_v46 = vld [vmem:[%s3408_s0 + $0x30] ss:$0 sps:$4 sm:$0xff]  }
  0x25   :  { %467 = vmatpush1.bf16.msra.mxu0 %v2795_v47  ;;  %639 = vmatpush1.bf16.msra.mxu1 %v2800_v48 }
  0x26   :  { %468 = vmatprep.subr.bf16.mxu0 %v2807_v49  ;;  %640 = vmatprep.subr.bf16.mxu1 %v2814_v50 }
  0x27   :  { %204 = vmatprep.mubr.bf16.mxu0 %v2520_v2  ;;  %348 = vmatprep.mubr.bf16.mxu1 %v2520_v2 }
  0x29   :  { %469 = vmatpush1.bf16.msra.mxu0 %v2822_v51  ;;  %641 = vmatpush1.bf16.msra.mxu1 %v2829_v52 }
  0x2a   :  { %470 = vmatprep.subr.bf16.mxu0 %v2834_v53  ;;  %642 = vmatprep.subr.bf16.mxu1 %v2846_v55 }
  0x2c   :  { %1972 = vmatmul.mubr.msk.bf16.gmra.mxu0 %vm135_vm1, %v2841_v54  ;;  %1991 = vmatmul.mubr.msk.bf16.gmra.mxu1 %vm135_vm1, %v2437_v56  ;;  %v3003_v56 = vld [vmem:[%s3407_s1 + $0x164] ss:$8 sps:$4 sm:$0xff]  }
  0x2d   :  { %471 = vmatpush1.bf16.msra.mxu0 %v2856_v57  ;;  %643 = vmatpush1.bf16.msra.mxu1 %v2863_v58 }
  0x2e   :  { %472 = vmatprep.subr.bf16.mxu0 %v2870_v59  ;;  %644 = vmatprep.subr.bf16.mxu1 %v2875_v60 }
  0x2f   :  { %490 = vmatprep.mubr.bf16.mxu0 %v2520_v2  ;;  %662 = vmatprep.mubr.bf16.mxu1 %v2520_v2 }
  0x31   :  { %473 = vmatpush1.bf16.msra.mxu0 %v2886_v62  ;;  %645 = vmatpush1.bf16.msra.mxu1 %v2893_v63 }
  0x32   :  { %2093 = vmatprep.subr.msk.bf16.mxu0 %vm145_vm0, %v2897_v0  ;;  %2097 = vmatprep.subr.msk.bf16.mxu1 %vm145_vm0, %v2581_v3  ;;  %v2938_v3 = vld [vmem:[%s3407_s1 + $0x194] ss:$8 sps:$4 sm:$0xff]  }
  0x34   :  { %2024 = vmatmul.mubr.msk.bf16.vlgmr.msra.gmra.mxu0 %vm135_vm1, %v2450_v5  ;;  %2059 = vmatmul.mubr.msk.bf16.vlgmr.msra.gmra.mxu1 %vm135_vm1, %v2907_v6 }
  0x35   :  { %807 = vmatpush1.bf16.msra.mxu0 %v2921_v28  ;;  %878 = vmatpush1.bf16.msra.mxu1 %v2600_v9  ;;  %v2457_v9 = vld [vmem:[%s3408_s0 + $0xc] sm:$0xff]  }
  0x36   :  { %808 = vmatprep.subr.bf16.mxu0 %v2914_v27  ;;  %879 = vmatprep.subr.bf16.mxu1 %v2588_v7  ;;  %v2955_v7 = vld [vmem:[%s3407_s1 + $0x190] ss:$8 sps:$4 sm:$0xff]  }
  0x37   :  { %500 = vmatprep.mubr.bf16.mxu0 %v2520_v2  ;;  %672 = vmatprep.mubr.bf16.mxu1 %v2520_v2 }
  0x39   :  { %809 = vmatpush1.bf16.msra.mxu0 %v2931_v33  ;;  %880 = vmatpush1.bf16.msra.mxu1 %v2608_v11  ;;  %v2972_v11 = vld [vmem:[%s3407_s1 + $0x180] ss:$8 sps:$4 sm:$0xff]  }
  0x3a   :  { %810 = vmatprep.subr.bf16.mxu0 %v2938_v3  ;;  %881 = vmatprep.subr.bf16.mxu1 %v2622_v13  ;;  %v2979_v13 = vld [vmem:[%s3407_s1 + $0x174] ss:$8 sps:$4 sm:$0xff]  }
  0x3c   :  { %2025 = vmatmul.mubr.msk.bf16.gmra.mxu0 %vm135_vm1, %v2457_v9  ;;  %2060 = vmatmul.mubr.msk.bf16.gmra.mxu1 %vm135_vm1, %v2948_v34 }
  0x3d   :  { %811 = vmatpush1.bf16.msra.mxu0 %v2955_v7  ;;  %882 = vmatpush1.bf16.msra.mxu1 %v2632_v15  ;;  %v2465_v15 = vld [vmem:[%s3408_s0 + $0x14] ss:$0 sps:$4 sm:$0xff]  }
  0x3e   :  { %812 = vmatprep.subr.bf16.mxu0 %v2962_v36  ;;  %883 = vmatprep.subr.bf16.mxu1 %v2644_v17  ;;  %v2996_v17 = vld [vmem:[%s3407_s1 + $0x170] ss:$8 sps:$4 sm:$0xff]  }
  0x3f   :  { %510 = vmatprep.mubr.bf16.mxu0 %v2520_v2  ;;  %682 = vmatprep.mubr.bf16.mxu1 %v2520_v2 }
  0x41   :  { %813 = vmatpush1.bf16.msra.mxu0 %v2972_v11  ;;  %884 = vmatpush1.bf16.msra.mxu1 %v2656_v19  ;;  %v3013_v19 = vld [vmem:[%s3407_s1 + $0x160] ss:$8 sps:$4 sm:$0xff]  }
  0x42   :  { %814 = vmatprep.subr.bf16.mxu0 %v2979_v13  ;;  %885 = vmatprep.subr.bf16.mxu1 %v2670_v21  ;;  %v3022_v21 = vld [vmem:[%s3408_s0 + $0x8] sm:$0xff]  }
  0x44   :  { %2026 = vmatmul.mubr.msk.bf16.gmra.mxu0 %vm135_vm1, %v2465_v15  ;;  %2061 = vmatmul.mubr.msk.bf16.gmra.mxu1 %vm135_vm1, %v2989_v46 }
  0x45   :  { %815 = vmatpush1.bf16.msra.mxu0 %v2996_v17  ;;  %886 = vmatpush1.bf16.msra.mxu1 %v2680_v23  ;;  %v2483_v23 = vld [vmem:[%s3409_s3 + $0x10] sm:$0xff]  }
  0x46   :  { %816 = vmatprep.subr.bf16.mxu0 %v3003_v56  ;;  %887 = vmatprep.subr.bf16.mxu1 %v2692_v25  ;;  %v2485_v25 = vld [vmem:[%s3409_s3 + $0x8] sm:$0xff]  }
  0x47   :  { %834 = vmatprep.mubr.bf16.mxu0 %v2520_v2  ;;  %905 = vmatprep.mubr.bf16.mxu1 %v2520_v2 }
  0x49   :  { %817 = vmatpush1.bf16.msra.mxu0 %v3013_v19  ;;  %888 = vmatpush1.bf16.msra.mxu1 %v2710_v29  ;;  %v2487_v29 = vld [vmem:[%s3409_s3] sm:$0xff]  }
  0x4a   :  { %2101 = vmatprep.subr.msk.bf16.mxu0 %vm145_vm0, %v2583_v4  ;;  %2105 = vmatprep.subr.msk.bf16.mxu1 %vm145_vm0, %v2719_v31  ;;  %v3042_v4 = vld [vmem:[%s3408_s0 + $0x10] sm:$0xff]  }
  0x4c   :  { %2094 = vmatmul.mubr.msk.bf16.vlgmr.msra.gmra.mxu0 %vm135_vm1, %v3022_v21  ;;  %2098 = vmatmul.mubr.msk.bf16.vlgmr.msra.gmra.mxu1 %vm135_vm1, %v2450_v5 }
  0x4d   :  { %939 = vmatpush1.bf16.msra.mxu0 %v2603_v10  ;;  %1000 = vmatpush1.bf16.msra.mxu1 %v2745_v38  ;;  %v2476_v10 = vld [vmem:[%s3408_s0 + $0x24] sm:$0xff]  }
  0x4e   :  { %940 = vmatprep.subr.bf16.mxu0 %v2593_v8  ;;  %1001 = vmatprep.subr.bf16.mxu1 %v2738_v37  ;;  %v2475_v8 = vld [vmem:[%s3408_s0 + $0x18] ss:$0 sps:$4 sm:$0xff]  }
  0x4f   :  { %844 = vmatprep.mubr.bf16.mxu0 %v2520_v2  ;;  %915 = vmatprep.mubr.bf16.mxu1 %v2520_v2 }
  0x51   :  { %941 = vmatpush1.bf16.msra.mxu0 %v2615_v12  ;;  %1002 = vmatpush1.bf16.msra.mxu1 %v2761_v41  ;;  %v2477_v12 = vld [vmem:[%s3408_s0 + $0x2c] sm:$0xff]  }
  0x52   :  { %942 = vmatprep.subr.bf16.mxu0 %v2627_v14  ;;  %1003 = vmatprep.subr.bf16.mxu1 %v2773_v43  ;;  %v2478_v14 = vld [vmem:[%s3408_s0 + $0x34] ss:$0 sps:$4 sm:$0xff]  }
  0x54   :  { %2095 = vmatmul.mubr.msk.bf16.gmra.mxu0 %vm135_vm1, %v3042_v4  ;;  %2099 = vmatmul.mubr.msk.bf16.gmra.mxu1 %vm135_vm1, %v2457_v9 }
  0x55   :  { %943 = vmatpush1.bf16.msra.mxu0 %v2639_v16  ;;  %1004 = vmatpush1.bf16.msra.mxu1 %v2795_v47  ;;  %v3417_v16 = vmov 0.0  }
  0x56   :  { %944 = vmatprep.subr.bf16.mxu0 %v2651_v18  ;;  %1005 = vmatprep.subr.bf16.mxu1 %v2807_v49  ;;  %v2480_v18 = vld [vmem:[%s3409_s3 + $0x20] sm:$0xff]  }
  0x57   :  { %854 = vmatprep.mubr.bf16.mxu0 %v2520_v2  ;;  %925 = vmatprep.mubr.bf16.mxu1 %v2520_v2 }
  0x59   :  { %945 = vmatpush1.bf16.msra.mxu0 %v2663_v20  ;;  %1006 = vmatpush1.bf16.msra.mxu1 %v2822_v51  ;;  %v2482_v20 = vld [vmem:[%s3409_s3 + $0x18] sm:$0xff]  }
  0x5a   :  { %946 = vmatprep.subr.bf16.mxu0 %v2675_v22  ;;  %1007 = vmatprep.subr.bf16.mxu1 %v2834_v53  ;;  %v2481_v22 = vld [vmem:[%s3409_s3 + $0x40] sm:$0xff]  }
  0x5c   :  { %2096 = vmatmul.mubr.msk.bf16.gmra.mxu0 %vm135_vm1, %v2475_v8  ;;  %2100 = vmatmul.mubr.msk.bf16.gmra.mxu1 %vm135_vm1, %v2465_v15 }
  0x5d   :  { %947 = vmatpush1.bf16.msra.mxu0 %v2687_v24  ;;  %1008 = vmatpush1.bf16.msra.mxu1 %v2856_v57  ;;  %v2484_v24 = vld [vmem:[%s3409_s3 + $0x38] sm:$0xff]  }
  0x5e   :  { %948 = vmatprep.subr.bf16.mxu0 %v2699_v26  ;;  %1009 = vmatprep.subr.bf16.mxu1 %v2870_v59  ;;  %v2486_v26 = vld [vmem:[%s3409_s3 + $0x30] sm:$0xff]  }
  0x5f   :  { %966 = vmatprep.mubr.bf16.mxu0 %v2520_v2  ;;  %1027 = vmatprep.mubr.bf16.mxu1 %v2520_v2 }
  0x61   :  { %949 = vmatpush1.bf16.msra.mxu0 %v2717_v30  ;;  %1010 = vmatpush1.bf16.msra.mxu1 %v2886_v62  ;;  %v2488_v30 = vld [vmem:[%s3409_s3 + $0x28] sm:$0xff]  }
  0x62   :  { %2109 = vmatprep.subr.msk.bf16.mxu0 %vm145_vm0, %v2723_v32  ;;  %2121 = vmatprep.subr.msk.bf16.mxu1 %vm145_vm0, %v2897_v0 }
  0x64   :  { %2102 = vmatmul.mubr.msk.bf16.vlgmr.msra.gmra.mxu0 %vm135_vm1, %v2728_v35  ;;  %2106 = vmatmul.mubr.msk.bf16.vlgmr.msra.gmra.mxu1 %vm135_vm1, %v2907_v6 }
  0x65   :  { %1071 = vmatpush1.bf16.msra.mxu0 %v2748_v39  ;;  %1170 = vmatpush1.bf16.msra.mxu1 %v2921_v28 }
  0x66   :  { %1072 = vmatprep.subr.bf16.mxu0 %v2753_v40  ;;  %1171 = vmatprep.subr.bf16.mxu1 %v2914_v27 }
  0x67   :  { %976 = vmatprep.mubr.bf16.mxu0 %v2520_v2  ;;  %1037 = vmatprep.mubr.bf16.mxu1 %v2520_v2 }
  0x69   :  { %1073 = vmatpush1.bf16.msra.mxu0 %v2766_v42  ;;  %1172 = vmatpush1.bf16.msra.mxu1 %v2931_v33 }
  0x6a   :  { %1074 = vmatprep.subr.bf16.mxu0 %v2780_v44  ;;  %1173 = vmatprep.subr.bf16.mxu1 %v2938_v3 }
  0x6c   :  { %2103 = vmatmul.mubr.msk.bf16.gmra.mxu0 %vm135_vm1, %v2787_v45  ;;  %2107 = vmatmul.mubr.msk.bf16.gmra.mxu1 %vm135_vm1, %v2948_v34 }
  0x6d   :  { %1075 = vmatpush1.bf16.msra.mxu0 %v2800_v48  ;;  %1174 = vmatpush1.bf16.msra.mxu1 %v2955_v7 }
  0x6e   :  { %1076 = vmatprep.subr.bf16.mxu0 %v2814_v50  ;;  %1175 = vmatprep.subr.bf16.mxu1 %v2962_v36 }
  0x6f   :  { %986 = vmatprep.mubr.bf16.mxu0 %v2520_v2  ;;  %1047 = vmatprep.mubr.bf16.mxu1 %v2520_v2 }
  0x71   :  { %1077 = vmatpush1.bf16.msra.mxu0 %v2829_v52  ;;  %1176 = vmatpush1.bf16.msra.mxu1 %v2972_v11 }
  0x72   :  { %1078 = vmatprep.subr.bf16.mxu0 %v2846_v55  ;;  %1177 = vmatprep.subr.bf16.mxu1 %v2979_v13 }
  0x74   :  { %2104 = vmatmul.mubr.msk.bf16.gmra.mxu0 %vm135_vm1, %v2841_v54  ;;  %2108 = vmatmul.mubr.msk.bf16.gmra.mxu1 %vm135_vm1, %v2989_v46 }
  0x75   :  { %1079 = vmatpush1.bf16.msra.mxu0 %v2863_v58  ;;  %1178 = vmatpush1.bf16.msra.mxu1 %v2996_v17 }
  0x76   :  { %1080 = vmatprep.subr.bf16.mxu0 %v2875_v60  ;;  %1179 = vmatprep.subr.bf16.mxu1 %v3003_v56 }
  0x77   :  { %1098 = vmatprep.mubr.bf16.mxu0 %v2520_v2  ;;  %1197 = vmatprep.mubr.bf16.mxu1 %v2520_v2 }
  0x79   :  { %1081 = vmatpush1.bf16.msra.mxu0 %v2893_v63  ;;  %1180 = vmatpush1.bf16.msra.mxu1 %v3013_v19 }
  0x7a   :  { %2263 = vmatprep.subr.bf16.mxu0 %v3417_v16  ;;  %2277 = vmatprep.subr.bf16.mxu1 %v3417_v16 }
  0x7c   :  { %2110 = vmatmul.mubr.msk.bf16.vlgmr.msra.gmra.mxu0 %vm135_vm1, %v3022_v21  ;;  %2122 = vmatmul.mubr.msk.bf16.vlgmr.msra.gmra.mxu1 %vm135_vm1, %v2476_v10 }
  0x7d   :  { %1108 = vmatprep.mubr.bf16.mxu0 %v2520_v2  ;;  %1207 = vmatprep.mubr.bf16.mxu1 %v2520_v2 }
  0x7e   :  { %2278 = vmatpush3.bf16.msra.mxu1 %v2480_v18 }
  0x7f   :  { %2279 = vmatprep.subr.bf16.mxu1 %v3417_v16 }
  0x82   :  { %2280 = vmatpush3.bf16.msra.mxu1 %v2482_v20 }
  0x83   :  { %2281 = vmatprep.subr.bf16.mxu1 %v3417_v16 }
  0x84   :  { %2111 = vmatmul.mubr.msk.bf16.gmra.mxu0 %vm135_vm1, %v3042_v4  ;;  %2123 = vmatmul.mubr.msk.bf16.gmra.mxu1 %vm135_vm1, %v2477_v12 }
  0x85   :  { %1118 = vmatprep.mubr.bf16.mxu0 %v2520_v2  ;;  %1217 = vmatprep.mubr.bf16.mxu1 %v2520_v2  ;;  %v2479_v2 = vld [vmem:[%s3409_s3 + $0x48] sm:$0xff]  }
  0x86   :  { %2264 = vmatpush3.bf16.msra.mxu0 %v2479_v2  ;;  %2282 = vmatpush3.bf16.msra.mxu1 %v2483_v23 }
  0x87   :  { %2265 = vmatprep.subr.bf16.mxu0 %v3417_v16  ;;  %2283 = vmatprep.subr.bf16.mxu1 %v3417_v16 }
  0x8a   :  { %2266 = vmatpush3.bf16.msra.mxu0 %v2481_v22  ;;  %2284 = vmatpush3.bf16.msra.mxu1 %v2485_v25 }
  0x8b   :  { %2267 = vmatprep.subr.bf16.mxu0 %v3417_v16  ;;  %2285 = vmatprep.subr.bf16.mxu1 %v3417_v16 }
  0x8c   :  { %2112 = vmatmul.mubr.msk.bf16.gmra.mxu0 %vm135_vm1, %v2475_v8  ;;  %2124 = vmatmul.mubr.msk.bf16.gmra.mxu1 %vm135_vm1, %v2478_v14 }
  0x8d   :  { %2287 = vmatprep.mubr.msk.bf16.mxu1 %vm2522_vm2, %v3417_v16  ;;  %2273 = vmatprep.mubr.msk.bf16.mxu0 %vm2522_vm2, %v3417_v16 }
  0x8e   :  { %2268 = vmatpush3.bf16.msra.mxu0 %v2484_v24  ;;  %2286 = vmatpush3.bf16.msra.mxu1 %v2487_v29 }
  0x8f   :  { %2269 = vmatprep.subr.bf16.mxu0 %v3417_v16  ;;  %2305 = vmatprep.subr.bf16.mxu1 %v3417_v16 }
  0x92   :  { %2270 = vmatpush3.bf16.msra.mxu0 %v2486_v26 }
  0x93   :  { %2271 = vmatprep.subr.bf16.mxu0 %v3417_v16 }
  0x96   :  { %2272 = vmatpush3.bf16.msra.mxu0 %v2488_v30 }
  0x97   :  { %2291 = vmatprep.subr.bf16.mxu0 %v3417_v16 }
  0xdc   :  { %v186_v31 = vpop.f32.mrf.mxu0  ;;  %v330_v32 = vpop.f32.mrf.mxu1 }
  0xdd   :  { %v331_v35 = vadd.f32 %v330_v32, %v186_v31 }
  0xde   :  { %v188_v37 = vpop.f32.mrf.mxu0  ;;  %v332_v38 = vpop.f32.mrf.mxu1 }
  0xdf   :  { %v333_v39 = vadd.f32 %v332_v38, %v188_v37 }
  0xe0   :  { %v190_v40 = vpop.f32.mrf.mxu0  ;;  %v334_v41 = vpop.f32.mrf.mxu1 }
  0xe1   :  { %v335_v42 = vadd.f32 %v334_v41, %v190_v40 }
  0xe2   :  { %v192_v43 = vpop.f32.mrf.mxu0  ;;  %v336_v44 = vpop.f32.mrf.mxu1 }
  0xe3   :  { %v337_v45 = vadd.f32 %v336_v44, %v192_v43 }
  0xe4   :  { %v196_v47 = vpop.f32.mrf.mxu0  ;;  %v340_v48 = vpop.f32.mrf.mxu1 }
  0xe5   :  { %v341_v49 = vadd.f32 %v340_v48, %v196_v47 }
  0xe6   :  { %v198_v50 = vpop.f32.mrf.mxu0  ;;  %v342_v51 = vpop.f32.mrf.mxu1 }
  0xe7   :  { %v343_v52 = vadd.f32 %v342_v51, %v198_v50 }
  0xe8   :  { %v200_v53 = vpop.f32.mrf.mxu0  ;;  %v344_v54 = vpop.f32.mrf.mxu1 }
  0xe9   :  { %v345_v55 = vadd.f32 %v344_v54, %v200_v53 }
  0xea   :  { %v202_v57 = vpop.f32.mrf.mxu0  ;;  %v346_v58 = vpop.f32.mrf.mxu1 }
  0xeb   :  { %v347_v59 = vadd.f32 %v346_v58, %v202_v57 }
  0xec   :  { %v206_v60 = vpop.f32.mrf.mxu0  ;;  %v350_v61 = vpop.f32.mrf.mxu1 }
  0xed   :  { %v351_v62 = vadd.f32 %v350_v61, %v206_v60 }
  0xee   :  { %v208_v63 = vpop.f32.mrf.mxu0  ;;  %v352_v0 = vpop.f32.mrf.mxu1 }
  0xef   :  { %v353_v1 = vadd.f32 %v352_v0, %v208_v63 }
  0xf0   :  { %v210_v5 = vpop.f32.mrf.mxu0  ;;  %v354_v6 = vpop.f32.mrf.mxu1 }
  0xf2   :  { %v211_v27 = vpop.f32.mrf.mxu0  ;;  %v355_v28 = vpop.f32.mrf.mxu1 }
  0xf4   :  { %v492_v33 = vpop.f32.mrf.mxu0  ;;  %v664_v3 = vpop.f32.mrf.mxu1 }
  0xf5   :  { %v519_v9 = vadd.f32 %v492_v33, %v331_v35 }
  0xf6   :  { %v494_v34 = vpop.f32.mrf.mxu0  ;;  %v666_v7 = vpop.f32.mrf.mxu1 }
  0xf7   :  { %v3185_v36 = vadd.f32 %v664_v3, %v519_v9  ;;  %v520_v11 = vadd.f32 %v494_v34, %v333_v39 }
  0xf8   :  { %v496_v13 = vpop.f32.mrf.mxu0  ;;  %v668_v15 = vpop.f32.mrf.mxu1 }
  0xf9   :  { %v3187_v46 = vadd.f32 %v666_v7, %v520_v11  ;;  %v521_v17 = vadd.f32 %v496_v13, %v335_v42 }
  0xfa   :  { %v498_v56 = vpop.f32.mrf.mxu0  ;;  %v670_v19 = vpop.f32.mrf.mxu1 }
  0xfb   :  { %v3189_v21 = vadd.f32 %v668_v15, %v521_v17  ;;  %v522_v4 = vadd.f32 %v498_v56, %v337_v45 }
  0xfc   :  { %v502_v8 = vpop.f32.mrf.mxu0  ;;  %v674_v10 = vpop.f32.mrf.mxu1 }
  0xfd   :  { %v3191_v12 = vadd.f32 %v670_v19, %v522_v4  ;;  %v523_v14 = vadd.f32 %v502_v8, %v341_v49 }
  0xfe   :  { %v504_v18 = vpop.f32.mrf.mxu0  ;;  %v676_v2 = vpop.f32.mrf.mxu1 }
  0xff   :  { %v695_v20 = vadd.f32 %v674_v10, %v523_v14  ;;  %v524_v22 = vadd.f32 %v504_v18, %v343_v52 }
 0x100   :  { %v506_v23 = vpop.f32.mrf.mxu0  ;;  %v678_v24 = vpop.f32.mrf.mxu1 }
 0x101   :  { %v696_v25 = vadd.f32 %v676_v2, %v524_v22  ;;  %v525_v26 = vadd.f32 %v506_v23, %v345_v55 }
 0x102   :  { %v508_v29 = vpop.f32.mrf.mxu0  ;;  %v680_v30 = vpop.f32.mrf.mxu1 }
 0x103   :  { %v3193_v31 = vadd.f32 %v678_v24, %v525_v26  ;;  %v526_v32 = vadd.f32 %v508_v29, %v347_v59 }
 0x104   :  { %v512_v35 = vpop.f32.mrf.mxu0  ;;  %v684_v37 = vpop.f32.mrf.mxu1 }
 0x105   :  { %v3195_v38 = vadd.f32 %v680_v30, %v526_v32  ;;  %v527_v39 = vadd.f32 %v512_v35, %v351_v62 }
 0x106   :  { %v514_v40 = vpop.f32.mrf.mxu0  ;;  %v686_v41 = vpop.f32.mrf.mxu1 }
 0x107   :  { %v699_v42 = vadd.f32 %v684_v37, %v527_v39  ;;  %v528_v43 = vadd.f32 %v514_v40, %v353_v1 }
 0x108   :  { %v516_v44 = vpop.f32.mrf.mxu0  ;;  %v688_v45 = vpop.f32.mrf.mxu1 }
 0x109   :  { %v700_v47 = vadd.f32 %v686_v41, %v528_v43 }
 0x10a   :  { %v517_v48 = vpop.f32.mrf.mxu0  ;;  %v689_v49 = vpop.f32.mrf.mxu1 }
 0x10c   :  { %v3197_v50 = vpop.f32.mrf.mxu0  ;;  %v907_v51 = vpop.f32.mrf.mxu1 }
 0x10e   :  { %v3199_v52 = vpop.f32.mrf.mxu0  ;;  %v909_v53 = vpop.f32.mrf.mxu1 }
 0x110   :  { %v3201_v54 = vpop.f32.mrf.mxu0  ;;  %v911_v55 = vpop.f32.mrf.mxu1 }
 0x112   :  { %v3203_v57 = vpop.f32.mrf.mxu0  ;;  %v913_v58 = vpop.f32.mrf.mxu1 }
 0x114   :  { %v846_v59 = vpop.f32.mrf.mxu0  ;;  %v917_v60 = vpop.f32.mrf.mxu1 }
 0x115   :  { %v3205_v61 = vadd.f32 %v846_v59, %v695_v20 }
 0x116   :  { %v848_v62 = vpop.f32.mrf.mxu0  ;;  %v919_v63 = vpop.f32.mrf.mxu1 }
 0x117   :  { %v3207_v0 = vadd.f32 %v848_v62, %v696_v25 }
 0x118   :  { %v3209_v1 = vpop.f32.mrf.mxu0  ;;  %v921_v5 = vpop.f32.mrf.mxu1 }
 0x11a   :  { %v3211_v6 = vpop.f32.mrf.mxu0  ;;  %v3213_v27 = vpop.f32.mrf.mxu1 }
 0x11c   :  { %v856_v28 = vpop.f32.mrf.mxu0  ;;  %v3215_v33 = vpop.f32.mrf.mxu1 }
 0x11d   :  { %v3217_v3 = vadd.f32 %v856_v28, %v699_v42 }
 0x11e   :  { %v858_v9 = vpop.f32.mrf.mxu0  ;;  %v3219_v34 = vpop.f32.mrf.mxu1 }
 0x11f   :  { %v3221_v7 = vadd.f32 %v858_v9, %v700_v47 }
 0x120   :  { %v860_v11 = vpop.f32.mrf.mxu0  ;;  %v931_v13 = vpop.f32.mrf.mxu1 }
 0x121   :  { %3419 = vst [vmem:[#allocation2_spill] sm:$0xff] %v3221_v7 }
 0x122   :  { %v861_v15 = vpop.f32.mrf.mxu0  ;;  %v932_v17 = vpop.f32.mrf.mxu1 }
 0x124   :  { %v968_v56 = vpop.f32.mrf.mxu0  ;;  %v1029_v19 = vpop.f32.mrf.mxu1 }
 0x125   :  { %v969_v40 = vadd.f32 %v968_v56, %v907_v51  ;;  %v863_v51 = vadd.f32 %v3197_v50, %v3185_v36  ;;  %v865_v36 = vadd.f32 %v3201_v54, %v3189_v21  ;;  %v866_v50 = vadd.f32 %v3203_v57, %v3191_v12 }
 0x126   :  { %v970_v4 = vpop.f32.mrf.mxu0  ;;  %v1031_v8 = vpop.f32.mrf.mxu1 }
 0x127   :  { %v971_v43 = vadd.f32 %v970_v4, %v909_v53  ;;  %v1056_v47 = vadd.f32 %v1029_v19, %v969_v40 }
 0x128   :  { %v972_v10 = vpop.f32.mrf.mxu0  ;;  %v1033_v14 = vpop.f32.mrf.mxu1 }
 0x129   :  { %v973_v48 = vadd.f32 %v972_v10, %v911_v55  ;;  %v1057_v62 = vadd.f32 %v1031_v8, %v971_v43  ;;  %v864_v55 = vadd.f32 %v3199_v52, %v3187_v46 }
 0x12a   :  { %v974_v18 = vpop.f32.mrf.mxu0  ;;  %v1035_v2 = vpop.f32.mrf.mxu1 }
 0x12b   :  { %v975_v28 = vadd.f32 %v974_v18, %v913_v58  ;;  %v1058_v17 = vadd.f32 %v1033_v14, %v973_v48 }
 0x12c   :  { %v978_v20 = vpop.f32.mrf.mxu0  ;;  %v1039_v22 = vpop.f32.mrf.mxu1 }
 0x12d   :  { %v979_v11 = vadd.f32 %v978_v20, %v917_v60  ;;  %v1059_v19 = vadd.f32 %v1035_v2, %v975_v28 }
 0x12e   :  { %v980_v23 = vpop.f32.mrf.mxu0  ;;  %v1041_v24 = vpop.f32.mrf.mxu1 }
 0x12f   :  { %v981_v56 = vadd.f32 %v980_v23, %v919_v63  ;;  %v1060_v58 = vadd.f32 %v1039_v22, %v979_v11 }
 0x130   :  { %v982_v25 = vpop.f32.mrf.mxu0  ;;  %v1043_v26 = vpop.f32.mrf.mxu1 }
 0x131   :  { %v983_v18 = vadd.f32 %v982_v25, %v921_v5  ;;  %v1061_v63 = vadd.f32 %v1041_v24, %v981_v56 }
 0x132   :  { %v984_v29 = vpop.f32.mrf.mxu0  ;;  %v1045_v30 = vpop.f32.mrf.mxu1 }
 0x133   :  { %v985_v52 = vadd.f32 %v984_v29, %v3213_v27  ;;  %v1062_v22 = vadd.f32 %v1043_v26, %v983_v18 }
 0x134   :  { %v988_v32 = vpop.f32.mrf.mxu0  ;;  %v3223_v35 = vpop.f32.mrf.mxu1 }
 0x135   :  { %v989_v21 = vadd.f32 %v988_v32, %v3215_v33 }
 0x136   :  { %v990_v37 = vpop.f32.mrf.mxu0  ;;  %v3225_v39 = vpop.f32.mrf.mxu1 }
 0x137   :  { %v991_v24 = vadd.f32 %v990_v37, %v3219_v34  ;;  %v1064_v33 = vadd.f32 %v3223_v35, %v989_v21  ;;  %v870_v37 = vadd.f32 %v3211_v6, %v3195_v38  ;;  %v2489_v38 = vld [vmem:[%s3409_s3 + $0x98] sm:$0xff]  }
 0x138   :  { %v992_v41 = vpop.f32.mrf.mxu0  ;;  %v1053_v42 = vpop.f32.mrf.mxu1  ;;  %v2497_v21 = vld [vmem:[%s3409_s3 + $0x78] sm:$0xff]  }
 0x13a   :  { %v993_v44 = vpop.f32.mrf.mxu0  ;;  %v1054_v45 = vpop.f32.mrf.mxu1 }
 0x13b   :  { %v1063_v45 = vadd.f32 %v1045_v30, %v985_v52  ;;  %v1065_v30 = vadd.f32 %v3225_v39, %v991_v24  ;;  %v2500_v24 = vld [vmem:[%s3409_s3 + $0xb8] sm:$0xff]  }
 0x13c   :  { %v1100_v49 = vpop.f32.mrf.mxu0  ;;  %v1199_v59 = vpop.f32.mrf.mxu1 }
 0x13d   :  { %v1127_v9 = vadd.f32 %v1100_v49, %v1056_v47  ;;  %v869_v49 = vadd.f32 %v3209_v1, %v3193_v31 }
 0x13e   :  { %v1102_v13 = vpop.f32.mrf.mxu0  ;;  %v1201_v15 = vpop.f32.mrf.mxu1 }
 0x13f   :  { %v1226_v16 = vadd.f32 %v1199_v59, %v1127_v9  ;;  %v1128_v7 = vadd.f32 %v1102_v13, %v1057_v62 }
 0x140   :  { %v1104_v53 = vpop.f32.mrf.mxu0  ;;  %v1203_v4 = vpop.f32.mrf.mxu1 }
 0x141   :  { %v1227_v10 = vadd.f32 %v1201_v15, %v1128_v7  ;;  %v1129_v8 = vadd.f32 %v1104_v53, %v1058_v17  ;;  %v1236_v40 = vmax.f32 %v863_v51, %v1226_v16  ;;  %v3239_v16 = vld [vmem:[%s3410_s2] ss:$0 sm:$0xff] }
 0x142   :  { %v1106_v60 = vpop.f32.mrf.mxu0  ;;  %v1205_v20 = vpop.f32.mrf.mxu1 }
 0x143   :  { %v1237_v14 = vmax.f32 %v864_v55, %v1227_v10  ;;  %v1228_v41 = vadd.f32 %v1203_v4, %v1129_v8  ;;  %v1130_v42 = vadd.f32 %v1106_v60, %v1059_v19  ;;  %v2490_v10 = vld [vmem:[%s3409_s3 + $0x70] sm:$0xff]  }
 0x144   :  { %v1110_v23 = vpop.f32.mrf.mxu0  ;;  %v1209_v46 = vpop.f32.mrf.mxu1 }
 0x145   :  { %v1246_v7 = vmax.f32 %v1236_v40, %v1237_v14  ;;  %v1229_v2 = vadd.f32 %v1205_v20, %v1130_v42  ;;  %v1131_v5 = vadd.f32 %v1110_v23, %v1060_v58  ;;  %v1238_v54 = vmax.f32 %v865_v36, %v1228_v41  ;;  %v2491_v14 = vld [vmem:[%s3409_s3 + $0x90] sm:$0xff]  }
 0x146   :  { %v1112_v25 = vpop.f32.mrf.mxu0  ;;  %v1211_v43 = vpop.f32.mrf.mxu1  ;;  %v3420_v41 = vmov 0.0  }
 0x147   :  { %v1239_v12 = vmax.f32 %v866_v50, %v1229_v2  ;;  %v1132_v57 = vadd.f32 %v1112_v25, %v1061_v63  ;;  %v1230_v44 = vadd.f32 %v1209_v46, %v1131_v5  ;;  %v1258_v26 = vadd.f32 %v3239_v16, %v1246_v7  ;;  %v3421_v63 = vld [vmem:[#allocation2_spill] sm:$0xff]  ;;  %v2493_v2 = vld [vmem:[%s3409_s3 + $0x88] sm:$0xff]  }
 0x148   :  { %v1114_v27 = vpop.f32.mrf.mxu0  ;;  %v1213_v29 = vpop.f32.mrf.mxu1  ;;  %v2495_v25 = vld [vmem:[%s3409_s3 + $0x80] sm:$0xff]  }
 0x149   :  { %v1247_v47 = vmax.f32 %v1238_v54, %v1239_v12  ;;  %v1133_v48 = vadd.f32 %v1114_v27, %v1062_v22  ;;  %v1231_v59 = vadd.f32 %v1211_v43, %v1132_v57  ;;  %v1240_v11 = vmax.f32 %v3205_v61, %v1230_v44  ;;  %v2494_v22 = vld [vmem:[%s3409_s3 + $0x60] sm:$0xff]   ;;  %v2496_v43 = vld [vmem:[%s3409_s3 + $0x58] sm:$0xff]   ;;  %v2498_v54 = vld [vmem:[%s3409_s3 + $0x50] sm:$0xff]  }
 0x14a   :  { %v1116_v62 = vpop.f32.mrf.mxu0  ;;  %v1215_v28 = vpop.f32.mrf.mxu1  ;;  %v1263_v1 = vmax.f32 %v1258_v26, 0.0  ;;  %v2499_v57 = vld [vmem:[%s3409_s3 + $0xc0] sm:$0xff]   ;;  %v2501_v44 = vld [vmem:[%s3409_s3 + $0xb0] sm:$0xff]   ;;  %v2502_v27 = vld [vmem:[%s3409_s3 + $0xa8] sm:$0xff]  }
 0x14b   :  { %v1259_v32 = vadd.f32 %v3239_v16, %v1247_v47  ;;  %v1134_v9 = vadd.f32 %v1116_v62, %v1063_v45  ;;  %v1232_v34 = vadd.f32 %v1213_v29, %v1133_v48  ;;  %v1241_v13 = vmax.f32 %v3207_v0, %v1231_v59  ;;  %v2503_v45 = vld [vmem:[%s3409_s3 + $0xa0] sm:$0xff]   ;;  %v2505_v48 = vld [vmem:[%s3411_s5 + $0x30] sm:$0xff]   ;;  %v2508_v62 = vld [vmem:[%s3411_s5 + $0x18] sm:$0xff]  }
 0x14c   :  { %v1120_v15 = vpop.f32.mrf.mxu0  ;;  %v1219_v31 = vpop.f32.mrf.mxu1  ;;  %v2507_v59 = vld [vmem:[%s3411_s5 + $0x20] sm:$0xff]  }
 0x14d   :  { %v1264_v17 = vmax.f32 %v1259_v32, 0.0  ;;  %v1135_v51 = vadd.f32 %v1120_v15, %v1064_v33  ;;  %v1233_v56 = vadd.f32 %v1215_v28, %v1134_v9  ;;  %v1248_v35 = vmax.f32 %v1240_v11, %v1241_v13  ;;  %v2509_v28 = vld [vmem:[%s3411_s5 + $0x10] sm:$0xff]   ;;  %v2510_v33 = vld [vmem:[%s3411_s5 + $0x8] sm:$0xff]   ;;  %v2511_v32 = vld [vmem:[%s3411_s5] sm:$0xff]  }
 0x14e   :  { %v1242_v53 = vmax.f32 %v869_v49, %v1232_v34  ;;  %v1122_v4 = vpop.f32.mrf.mxu0  ;;  %v1221_v55 = vpop.f32.mrf.mxu1  ;;  %v2506_v49 = vld [vmem:[%s3411_s5 + $0x28] sm:$0xff]   ;;  %v2512_v9 = vld [vmem:[%s3412_s7 + $0x38] sm:$0xff]   ;;  %v2513_v34 = vld [vmem:[%s3412_s7 + $0x30] sm:$0xff]  }
 0x14f   :  { %v1268_v6 = vpack.c.bf16 %v1264_v17, %v1263_v1  ;;  %v1243_v39 = vmax.f32 %v870_v37, %v1233_v56  ;;  %v1136_v61 = vadd.f32 %v1122_v4, %v1065_v30  ;;  %v1234_v19 = vadd.f32 %v1219_v31, %v1135_v51  ;;  %v2514_v37 = vld [vmem:[%s3412_s7 + $0x28] sm:$0xff]   ;;  %v2515_v30 = vld [vmem:[%s3412_s7 + $0x20] sm:$0xff]   ;;  %v2516_v11 = vld [vmem:[%s3412_s7 + $0x18] sm:$0xff]  }
 0x150   :  { %v1260_v0 = vadd.f32 %v3239_v16, %v1248_v35  ;;  %v1124_v8 = vpop.f32.mrf.mxu0  ;;  %v1223_v58 = vpop.f32.mrf.mxu1  ;;  %v2517_v13 = vld [vmem:[%s3412_s7 + $0x10] sm:$0xff]  }
 0x151   :  { %v1293_v18 = vrot.slane %v1268_v6, 4  ;;  %v1249_v60 = vmax.f32 %v1242_v53, %v1243_v39  ;;  %v1244_v20 = vmax.f32 %v3217_v3, %v1234_v19  ;;  %v1235_v40 = vadd.f32 %v1221_v55, %v1136_v61  ;;  %2288 = vmatmul.mubr.msk.bf16.vlgmr.msra.gmra.mxu1 %vm1324_vm3, %v1268_v6  ;;  %v2492_v3 = vld [vmem:[%s3409_s3 + $0x68] sm:$0xff]  }
 0x152   :  { %2306 = vmatpush3.bf16.msra.mxu1 %v2489_v38  ;;  %2315 = vmatprep.mubr.msk.bf16.mxu1 %vm2522_vm2, %v3420_v41  ;;  %v1125_v42 = vpop.f32.mrf.mxu0  ;;  %v1224_v36 = vpop.f32.mrf.mxu1  ;;  %v1265_v46 = vmax.f32 %v1260_v0, 0.0 }
 0x153   :  { %v1261_v50 = vadd.f32 %v3239_v16, %v1249_v60  ;;  %v1245_v23 = vmax.f32 %v3421_v63, %v1235_v40  ;;  %2274 = vmatmul.mubr.msk.bf16.vlgmr.msra.gmra.mxu0 %vm1324_vm3, %v1293_v18  ;;  %2307 = vmatprep.subr.bf16.mxu1 %v3420_v41  ;;  %v2196_v60 = vld [vmem:[%s3413_s4] ss:$0 sm:$0xff] }
 0x154   :  { %2292 = vmatpush3.bf16.msra.mxu0 %v2490_v10  ;;  %2301 = vmatprep.mubr.msk.bf16.mxu0 %vm2522_vm2, %v3420_v41 }
 0x155   :  { %v1266_v52 = vmax.f32 %v1261_v50, 0.0  ;;  %v1250_v7 = vmax.f32 %v1244_v20, %v1245_v23  ;;  %2293 = vmatprep.subr.bf16.mxu0 %v3420_v41  ;;  %v2518_v23 = vld [vmem:[%s3412_s7 + $0x8] sm:$0xff]  }
 0x156   :  { %2308 = vmatpush3.bf16.msra.mxu1 %v2491_v14 }
 0x157   :  { %v1269_v5 = vpack.c.bf16 %v1266_v52, %v1265_v46  ;;  %2309 = vmatprep.subr.bf16.mxu1 %v3420_v41  ;;  %v1262_v29 = vadd.f32 %v3239_v16, %v1250_v7  ;;  %v2504_v16 = vld [vmem:[%s3411_s5 + $0x38] sm:$0xff]   ;;  %v2197_v46 = vld [vmem:[%s3414_s6] ss:$0 sm:$0xff] }
 0x158   :  { %2294 = vmatpush3.bf16.msra.mxu0 %v2492_v3  ;;  %v2519_v3 = vld [vmem:[%s3412_s7] sm:$0xff]  }
 0x159   :  { %2295 = vmatprep.subr.bf16.mxu0 %v3420_v41  ;;  %v1538_v12 = vrot.slane %v1269_v5, 4  ;;  %v1267_v26 = vmax.f32 %v1262_v29, 0.0 }
 0x15a   :  { %2310 = vmatpush3.bf16.msra.mxu1 %v2493_v2 }
 0x15b   :  { %2311 = vmatprep.subr.bf16.mxu1 %v3420_v41  ;;  %v1270_v47 = vpack.c.bf16 %v1267_v26, %v1267_v26 }
 0x15c   :  { %2296 = vmatpush3.bf16.msra.mxu0 %v2494_v22 }
 0x15d   :  { %2297 = vmatprep.subr.bf16.mxu0 %v3420_v41 }
 0x15e   :  { %2312 = vmatpush3.bf16.msra.mxu1 %v2495_v25 }
 0x15f   :  { %2313 = vmatprep.subr.bf16.mxu1 %v3420_v41 }
 0x160   :  { %2298 = vmatpush3.bf16.msra.mxu0 %v2496_v43 }
 0x161   :  { %2299 = vmatprep.subr.bf16.mxu0 %v3420_v41 }
 0x162   :  { %2314 = vmatpush3.bf16.msra.mxu1 %v2497_v21 }
 0x163   :  { %2333 = vmatprep.subr.bf16.mxu1 %v3420_v41 }
 0x164   :  { %2300 = vmatpush3.bf16.msra.mxu0 %v2498_v54 }
 0x165   :  { %2316 = vmatmul.mubr.msk.bf16.vlgmr.msra.gmra.mxu1 %vm1324_vm3, %v1538_v12  ;;  %2319 = vmatprep.subr.bf16.mxu0 %v3420_v41 }
 0x166   :  { %2349 = vmatprep.mubr.msk.bf16.mxu1 %vm2522_vm2, %v3420_v41  ;;  %2334 = vmatpush3.bf16.msra.mxu1 %v2504_v16 }
 0x167   :  { %2302 = vmatmul.mubr.msk.bf16.vlgmr.msra.gmra.mxu0 %vm1324_vm3, %v1269_v5  ;;  %2335 = vmatprep.subr.bf16.mxu1 %v3420_v41 }
 0x168   :  { %2320 = vmatpush3.bf16.msra.mxu0 %v2499_v57  ;;  %2329 = vmatprep.mubr.msk.bf16.mxu0 %vm2522_vm2, %v3420_v41 }
 0x169   :  { %2321 = vmatprep.subr.bf16.mxu0 %v3420_v41 }
 0x16a   :  { %2336 = vmatpush3.bf16.msra.mxu1 %v2505_v48 }
 0x16b   :  { %2337 = vmatprep.subr.bf16.mxu1 %v3420_v41 }
 0x16c   :  { %2322 = vmatpush3.bf16.msra.mxu0 %v2500_v24 }
 0x16d   :  { %2323 = vmatprep.subr.bf16.mxu0 %v3420_v41 }
 0x16e   :  { %2338 = vmatpush3.bf16.msra.mxu1 %v2506_v49 }
 0x16f   :  { %2339 = vmatprep.subr.bf16.mxu1 %v3420_v41 }
 0x170   :  { %2324 = vmatpush3.bf16.msra.mxu0 %v2501_v44 }
 0x171   :  { %2325 = vmatprep.subr.bf16.mxu0 %v3420_v41 }
 0x172   :  { %2340 = vmatpush3.bf16.msra.mxu1 %v2507_v59 }
 0x173   :  { %2341 = vmatprep.subr.bf16.mxu1 %v3420_v41 }
 0x174   :  { %2326 = vmatpush3.bf16.msra.mxu0 %v2502_v27 }
 0x175   :  { %2327 = vmatprep.subr.bf16.mxu0 %v3420_v41 }
 0x176   :  { %2342 = vmatpush3.bf16.msra.mxu1 %v2508_v62 }
 0x177   :  { %2343 = vmatprep.subr.bf16.mxu1 %v3420_v41 }
 0x178   :  { %2328 = vmatpush3.bf16.msra.mxu0 %v2503_v45 }
 0x179   :  { %2353 = vmatprep.subr.bf16.mxu0 %v3420_v41 }
 0x17a   :  { %2344 = vmatpush3.bf16.msra.mxu1 %v2509_v28 }
 0x17b   :  { %2330 = vmatmul.mubr.msk.bf16.vlgmr.msra.gmra.mxu0 %vm1324_vm3, %v1270_v47  ;;  %2345 = vmatprep.subr.bf16.mxu1 %v3420_v41 }
 0x17c   :  { %2369 = vmatprep.mubr.msk.bf16.mxu0 %vm2522_vm2, %v3420_v41  ;;  %2354 = vmatpush3.bf16.msra.mxu0 %v2512_v9 }
 0x17d   :  { %2355 = vmatprep.subr.bf16.mxu0 %v3420_v41 }
 0x17e   :  { %2346 = vmatpush3.bf16.msra.mxu1 %v2510_v33 }
 0x17f   :  { %2347 = vmatprep.subr.bf16.mxu1 %v3420_v41 }
 0x180   :  { %2356 = vmatpush3.bf16.msra.mxu0 %v2513_v34 }
 0x181   :  { %2357 = vmatprep.subr.bf16.mxu0 %v3420_v41 }
 0x182   :  { %2348 = vmatpush3.bf16.msra.mxu1 %v2511_v32 }
 0x184   :  { %2358 = vmatpush3.bf16.msra.mxu0 %v2514_v37 }
 0x185   :  { %2359 = vmatprep.subr.bf16.mxu0 %v3420_v41 }
 0x188   :  { %2360 = vmatpush3.bf16.msra.mxu0 %v2515_v30 }
 0x189   :  { %2361 = vmatprep.subr.bf16.mxu0 %v3420_v41 }
 0x18c   :  { %2362 = vmatpush3.bf16.msra.mxu0 %v2516_v11 }
 0x18d   :  { %2363 = vmatprep.subr.bf16.mxu0 %v3420_v41 }
 0x190   :  { %2364 = vmatpush3.bf16.msra.mxu0 %v2517_v13 }
 0x191   :  { %2365 = vmatprep.subr.bf16.mxu0 %v3420_v41 }
 0x194   :  { %2366 = vmatpush3.bf16.msra.mxu0 %v2518_v23 }
 0x195   :  { %2367 = vmatprep.subr.bf16.mxu0 %v3420_v41  ;;  %v2206_v41 = vld [vmem:[%s3415_s8] ss:$0 sm:$0xff] }
 0x198   :  { %2368 = vmatpush3.bf16.msra.mxu0 %v2519_v3 }
 0x211   :  { %v1435_v15 = vpop.f32.mrf.mxu1 }
 0x213   :  { %v1362_v31 = vpop.f32.mrf.mxu0  ;;  %v2289_v1 = vpop.f32.mrf.mxu1 }
 0x214   :  { %v1436_v10 = vadd.f32 %v1435_v15, %v1362_v31 }
 0x215   :  { %v2275_v17 = vpop.f32.mrf.mxu0  ;;  %v1438_v51 = vpop.f32.mrf.mxu1 }
 0x217   :  { %v1365_v56 = vpop.f32.mrf.mxu0  ;;  %v2290_v35 = vpop.f32.mrf.mxu1 }
 0x219   :  { %v2276_v53 = vpop.f32.mrf.mxu0 }
 0x225   :  { %v1606_v4 = vpop.f32.mrf.mxu1 }
 0x227   :  { %v1519_v55 = vpop.f32.mrf.mxu0  ;;  %v2317_v38 = vpop.f32.mrf.mxu1 }
 0x228   :  { %v1525_v8 = vadd.f32 %v1519_v55, %v1436_v10 }
 0x229   :  { %v2303_v6 = vpop.f32.mrf.mxu0  ;;  %v1609_v39 = vpop.f32.mrf.mxu1 }
 0x22a   :  { %v1612_v58 = vadd.f32 %v1606_v4, %v1525_v8 }
 0x22b   :  { %v1522_v61 = vpop.f32.mrf.mxu0  ;;  %v2318_v19 = vpop.f32.mrf.mxu1 }
 0x22d   :  { %v2304_v0 = vpop.f32.mrf.mxu0 }
 0x23b   :  { %v1691_v18 = vpop.f32.mrf.mxu0 }
 0x23c   :  { %v1697_v20 = vadd.f32 %v1691_v18, %v1612_v58 }
 0x23d   :  { %v2331_v40 = vpop.f32.mrf.mxu0 }
 0x23e   :  { %v1705_v14 = vadd.f32 %v2196_v60, %v1697_v20 }
 0x23f   :  { %v1694_v42 = vpop.f32.mrf.mxu0 }
 0x240   :  { %v1706_v36 = vmax.f32 %v1705_v14, 0.0 }
 0x241   :  { %v2332_v50 = vpop.f32.mrf.mxu0 }
 0x242   :  { %v1707_v63 = vpack.c.bf16 %v1706_v36, %v1706_v36 }
 0x244   :  { %2350 = vmatmul.mubr.bf16.vlgmr.msra.gmra.mxu1 %v1707_v63 }
 0x304   :  { %v1813_v52 = vpop.f32.mrf.mxu1 }
 0x305   :  { %v1814_v7 = vadd.f32 %v2197_v46, %v1813_v52 }
 0x306   :  { %v2351_v2 = vpop.f32.mrf.mxu1 }
 0x307   :  { %v1819_v5 = vmax.f32 %v1814_v7, 0.0 }
 0x308   :  { %v1816_v22 = vpop.f32.mrf.mxu1 }
 0x309   :  { %v1820_v25 = vpack.c.bf16 %v1819_v5, %v1819_v5 }
 0x30a   :  { %v2352_v43 = vpop.f32.mrf.mxu1 }
 0x30b   :  { %2370 = vmatmul.mubr.bf16.vlgmr.msra.gmra.mxu0 %v1820_v25 }
 0x3cb   :  { %v1926_v21 = vpop.f32.mrf.mxu0 }
 0x3cc   :  { %v1927_v54 = vadd.f32 %v2206_v41, %v1926_v21 }
 0x3cd   :  { %v2371_v12 = vpop.f32.mrf.mxu0 }
 0x3ce   :  { %1933 = vst.msk [vmem:[%s3416_s9] sm:$0xff] %vm1932_vm4, %v1927_v54 }
 0x3cf   :  { %v1929_v57 = vpop.f32.mrf.mxu0 }
 0x3d1   :  { %v2372_v24 = vpop.f32.mrf.mxu0 }

</bundles_post_ra>
